<compile_context>
chip_gen: v5e
topology: v5e:2x2
jax: 0.10.0
libtpu: 0.0.40
codegen_flags: <defaults>
</compile_context>

<pallas_src>
import jax
import jax.numpy as jnp
from jax.experimental import pallas as pl
from jax.experimental.pallas import tpu as pltpu


def _round_up(x, m):
    return ((x + m - 1) // m) * m


def _pick_tn(K, M_pad, budget_bytes):
    """Largest multiple-of-128 tile of the fc1 output dim whose double-buffered
    weight stream (bf16 [K, tn] + f32 [2, tn]) fits the budget and divides M_pad."""
    per_128 = 2 * (K * 2 + 2 * 4) * 128       # 2 buffers x bytes per 128 lanes
    cap = max(1, budget_bytes // per_128) * 128
    if cap >= M_pad:
        return M_pad                          # whole weight set resident: 1 step
    best, d = 128, 256
    while d <= cap:
        if M_pad % d == 0:
            best = d
        d += 128
    return best


# ----------------------------------------------------------------------------
# Kernel: grid over the fc1 output dim M (often a single step).  Step 0 runs
# the fused affine on the stacked input, builds the merged [B, K] feature slab
# once, and zeroes the deferred-fc2 accumulator; every step does ONE MXU
# matmul against the streamed [K, tn] weight tile, ReLU, and a VPU FMA into
# the resident [B, tn] accumulator.  The cross-lane reduce + [B,1] store run
# once in the epilogue.
# ----------------------------------------------------------------------------
def _make_kernel(B, F, K):
    FF = F * F
    S_pad = K - 2 * FF                         # padded width of the (a+b) tail

    def kernel(x_ref, wT_ref, b_ref, w1_ref, brow_ref, out_ref,
               slab_scr, acc_scr):
        j = pl.program_id(0)

        @pl.when(j == 0)
        def _():
            # Single fused affine (lda∘wccn∘bn2) on both branches at once.
            ab = (jnp.dot(x_ref[...], wT_ref[...],
                          preferred_element_type=jnp.float32) + b_ref[...])
            a = ab[:B, :]
            b = ab[B:, :]
            s = a + b                          # also the `a + b` tail feature
            d = a - b

            def outer_flat(v):
                # Row-major flatten of v⊗v built directly in [B, F*F]:
                # element j*F+k = v[:, j] * v[:, k].  One-time cold path.
                row = jnp.broadcast_to(v[:, :, None], (B, F, F)).reshape(B, FF)
                col = jnp.broadcast_to(v[:, None, :], (B, F, F)).reshape(B, FF)
                return row * col

            parts = [outer_flat(s), outer_flat(d), s]
            if S_pad > F:                      # lane-align K to a multiple of 128
                parts.append(jnp.zeros((B, S_pad - F), jnp.float32))
            slab_scr[...] = jnp.concatenate(parts, axis=1).astype(slab_scr.dtype)
            acc_scr[...] = jnp.zeros_like(acc_scr)

        # One merged fc1 matmul for this M tile (Dropout == identity in eval).
        brow = brow_ref[...]                   # [2, tn]: row0 fc1 bias, row1 fc2 row
        h = (jnp.dot(slab_scr[...], w1_ref[...],
                     preferred_element_type=jnp.float32) + brow[0:1, :])
        h = jnp.maximum(h, 0.0)
        # Deferred fc2: pure VPU FMA into the resident accumulator.
        acc_scr[...] += h * brow[1:2, :]

        @pl.when(j == pl.num_programs(0) - 1)
        def _():
            # Single cross-lane reduce + masked [B,1] store, once per call.
            out_ref[...] = jnp.sum(acc_scr[...], axis=-1, keepdims=True)

    return kernel


def ldawccn_bn_forward(x1, x2, kp, *, tn=None, weight_vmem_budget=16 << 20):
    """x1, x2: [B, Din].  kp: kernel params from make_params.

    tn (fc1 output tile) defaults to the whole padded M when the double-
    buffered weight stream fits `weight_vmem_budget` (16 MiB keeps the kernel
    under the 32 MiB default scoped VMEM limit on v5e/v6e/v7x; on v7x — 64 MiB
    physical — don't raise the budget past ~24 MiB)."""
    B, Din = x1.shape
    F = int(kp["F"])
    K = int(kp["K"])
    M_pad = int(kp["M_pad"])
    if tn is None:
        tn = _pick_tn(K, M_pad, weight_vmem_budget)
    assert tn % 128 == 0 and M_pad % tn == 0

    x = jnp.concatenate([x1, x2], axis=0)          # [2B, Din]: both branches

    args = (x, kp["affine_wT"], kp["affine_b"], kp["w1_merged"], kp["brow"])

    flops = (2 * (2 * B) * Din * F                 # fused affine, both branches
             + 3 * B * K                           # slab build
             + 2 * B * K * M_pad                   # merged fc1
             + 2 * B * M_pad)                      # deferred fc2 FMA
    bytes_accessed = sum(int(a.size) * a.dtype.itemsize for a in args) + B * 4
    cost = pl.CostEstimate(flops=int(flops), transcendentals=0,
                           bytes_accessed=int(bytes_accessed))

    grid_spec = pltpu.PrefetchScalarGridSpec(
        num_scalar_prefetch=0,
        grid=(M_pad // tn,),                        # stream fc1/fc2 weights along M
        in_specs=[
            pl.BlockSpec((2 * B, Din), lambda j: (0, 0)),   # stacked input
            pl.BlockSpec((Din, F), lambda j: (0, 0)),       # fused affine W'
            pl.BlockSpec((1, F), lambda j: (0, 0)),         # fused affine b'
            pl.BlockSpec((K, tn), lambda j: (0, j)),        # merged fc1 weights (bf16)
            pl.BlockSpec((2, tn), lambda j: (0, j)),        # [fc1 bias; fc2 row]
        ],
        out_specs=pl.BlockSpec((B, 1), lambda j: (0, 0)),   # resident output
        scratch_shapes=[
            pltpu.VMEM((B, K), jnp.bfloat16),       # merged feature slab
            pltpu.VMEM((B, tn), jnp.float32),       # deferred fc2 accumulator
        ],
    )
    out = pl.pallas_call(
        _make_kernel(B, F, K),
        out_shape=jax.ShapeDtypeStruct((B, 1), jnp.float32),
        grid_spec=grid_spec,
        compiler_params=pltpu.CompilerParams(
            dimension_semantics=("arbitrary",)),    # M axis is a reduction
        cost_estimate=cost,
    )(*args)
    return out + kp["fc2_b"]                        # scalar fc2 bias in the wrapper


# ----------------------------------------------------------------------------
# Deterministic parameter construction (mirrors LDAWCCN_bn.__init__) plus all
# wrapper-side folding: fused affine, merged/stacked fc1 weights (Wp/Wm/Wvec in
# one [K, M_pad] bf16 array), stacked [fc1 bias; fc2 row], M padded to 128.
# ----------------------------------------------------------------------------
def make_params(key, F, Din, M):
    """kaldi_lda: [F, Din+1] (contains_bias=True).  Requires F == Din + 1 so the
    BatchNorm1d(kaldi_lda.shape[1]) width matches the wccn output width."""
    assert F == Din + 1
    ks = jax.random.split(key, 7)
    kaldi_lda = jax.random.normal(ks[0], (F, Din + 1), jnp.float32) * 0.5
    diag_T = jax.random.normal(ks[1], (F, F), jnp.float32) * 0.3
    plda_mean = jax.random.normal(ks[2], (F,), jnp.float32)

    lda_w = kaldi_lda[:, :-1]                       # [F, Din]
    lda_b = kaldi_lda[:, -1]                        # [F]
    wccn_w = diag_T                                 # [F, F]
    wccn_b = -diag_T @ plda_mean                    # [F]

    eps = 1e-5
    # bn2 at init, eval mode: y = (x - 0) / sqrt(1 + eps) * 1 + 0
    bn_scale = 1.0 / jnp.sqrt(1.0 + eps)

    FF = F * F
    Dfeat = 2 * FF + F

    def kaiming_uniform(k, shape):                  # nn.init.kaiming_uniform_ defaults
        bound = jnp.sqrt(6.0 / shape[1])
        return jax.random.uniform(k, shape, jnp.float32, -bound, bound)

    def linear_bias(k, fan_in, n):                  # default nn.Linear bias init
        bound = 1.0 / jnp.sqrt(fan_in)
        return jax.random.uniform(k, (n,), jnp.float32, -bound, bound)

    fc1_w = kaiming_uniform(ks[3], (M, Dfeat))
    fc1_b = linear_bias(ks[4], Dfeat, M)
    fc2_w = kaiming_uniform(ks[5], (1, M))
    fc2_b = linear_bias(ks[6], M, 1)

    raw = dict(lda_w=lda_w, lda_b=lda_b, wccn_w=wccn_w, wccn_b=wccn_b,
               fc1_w=fc1_w, fc1_b=fc1_b, fc2_w=fc2_w, fc2_b=fc2_b, eps=eps)

    # ---- kernel params: all folding done once, off the hot path -------------
    affine_wT = (lda_w.T @ wccn_w.T) * bn_scale                        # [Din, F]
    affine_b = ((lda_b @ wccn_w.T + wccn_b) * bn_scale).reshape(1, F)

    w1_dif = fc1_w[:, :FF].T                        # [F*F, M]
    w1_sam = fc1_w[:, FF:2 * FF].T                  # [F*F, M]
    w1_vec = fc1_w[:, 2 * FF:].T                    # [F, M]

    K = _round_up(2 * FF + F, 128)                  # merged slab width (lane-aligned)
    M_pad = _round_up(M, 128)                       # fc1 output dim padded to 128

    # Merged fc1 weights: rows [0:FF] hit (a+b)⊗(a+b), [FF:2FF] hit (a-b)⊗(a-b),
    # [2FF:2FF+F] hit (a+b); remaining rows / columns are zero padding.
    w1_merged = jnp.zeros((K, M_pad), jnp.float32)
    w1_merged = w1_merged.at[:FF, :M].set((w1_dif + w1_sam) * 0.5)
    w1_merged = w1_merged.at[FF:2 * FF, :M].set((w1_sam - w1_dif) * 0.5)
    w1_merged = w1_merged.at[2 * FF:2 * FF + F, :M].set(w1_vec)
    w1_merged = w1_merged.astype(jnp.bfloat16)

    brow = jnp.zeros((2, M_pad), jnp.float32)       # row 0: fc1 bias, row 1: fc2 row
    brow = brow.at[0, :M].set(fc1_b)
    brow = brow.at[1, :M].set(fc2_w[0])

    kernel_params = dict(
        affine_wT=affine_wT, affine_b=affine_b,
        w1_merged=w1_merged, brow=brow,
        fc2_b=fc2_b.reshape(1, 1),
        F=F, K=K, M_pad=M_pad,
    )
    return raw, kernel_params


def reference_forward(x1, x2, p):
    """Plain-JAX f32 mirror of the PyTorch module (eval mode) for verification."""
    def transform(x):
        h = x @ p["lda_w"].T + p["lda_b"]
        h = h @ p["wccn_w"].T + p["wccn_b"]
        return h / jnp.sqrt(1.0 + p["eps"])
    a = transform(x1)
    b = transform(x2)
    B = a.shape[0]
    dif = a[:, :, None] * b[:, None, :] + b[:, :, None] * a[:, None, :]
    sam = a[:, :, None] * a[:, None, :] + b[:, :, None] * b[:, None, :]
    feat = jnp.concatenate([dif.reshape(B, -1), sam.reshape(B, -1), a + b], axis=1)
    h = jnp.maximum(feat @ p["fc1_w"].T + p["fc1_b"], 0.0)
    return h @ p["fc2_w"].T + p["fc2_b"]


if __name__ == "__main__":
    F = 16          # kaldi_lda.shape[0] == kaldi_lda.shape[1]
    Din = F - 1     # lda input dim (contains_bias=True)
    M = 1000        # production mid_feature; exercises M padding to 1024
    B = 4

    key = jax.random.PRNGKey(0)
    kx1, kx2, kparam = jax.random.split(key, 3)
    x1 = jax.random.normal(kx1, (B, Din), jnp.float32)
    x2 = jax.random.normal(kx2, (B, Din), jnp.float32)

    raw, kp = make_params(kparam, F, Din, M)

    out = jax.block_until_ready(ldawccn_bn_forward(x1, x2, kp))
    ref = reference_forward(x1, x2, raw)

    assert out.shape == (B, 1), out.shape
    # Tolerance reflects the bf16 weight/slab stream (f32 MXU accumulation);
    # everything else is f32.
    assert bool(jnp.allclose(out, ref, rtol=2e-2, atol=1.0)), (out, ref)
    print("KERNEL_OK")
</pallas_src>

<mosaic_0001>
module attributes {stable_mosaic.version = 11 : i64} {
  func.func @kernel(%arg0: i32, %arg1: memref<8x15xf32, #tpu.memory_space<vmem>>, %arg2: memref<15x16xf32, #tpu.memory_space<vmem>>, %arg3: memref<1x16xf32, #tpu.memory_space<vmem>>, %arg4: memref<640x1024xbf16, #tpu.memory_space<vmem>>, %arg5: memref<2x1024xf32, #tpu.memory_space<vmem>>, %arg6: memref<4x1xf32, #tpu.memory_space<vmem>>, %arg7: memref<4x640xbf16, #tpu.memory_space<vmem>>, %arg8: memref<4x1024xf32, #tpu.memory_space<vmem>>) attributes {dimension_semantics = [#tpu.dimension_semantics<arbitrary>], iteration_bounds = array<i64: 1>, scalar_prefetch = 0 : i64, scratch_operands = 2 : i64, tpu.core_type = #tpu.core_type<tc>, window_params = [{pipeline_mode = #tpu.pipeline_mode<synchronous>, transform_indices = @transform_0, window_bounds = array<i64: 8, 15>}, {pipeline_mode = #tpu.pipeline_mode<synchronous>, transform_indices = @transform_1, window_bounds = array<i64: 15, 16>}, {pipeline_mode = #tpu.pipeline_mode<synchronous>, transform_indices = @transform_2, window_bounds = array<i64: 1, 16>}, {transform_indices = @transform_3, window_bounds = array<i64: 640, 1024>}, {transform_indices = @transform_4, window_bounds = array<i64: 2, 1024>}, {pipeline_mode = #tpu.pipeline_mode<synchronous>, transform_indices = @transform_5, window_bounds = array<i64: 4, 1>}]} {
    %c0_i32 = arith.constant 0 : i32
    %0 = arith.cmpi eq, %arg0, %c0_i32 : i32
    %1 = arith.extui %0 : i1 to i32
    %c0_i32_0 = arith.constant 0 : i32
    %2 = arith.cmpi ne, %1, %c0_i32_0 : i32
    scf.if %2 {
      %c0_13 = arith.constant 0 : index
      %c0_14 = arith.constant 0 : index
      %21 = vector.load %arg1[%c0_13, %c0_14] : memref<8x15xf32, #tpu.memory_space<vmem>>, vector<8x15xf32>
      %c0_15 = arith.constant 0 : index
      %c0_16 = arith.constant 0 : index
      %22 = vector.load %arg2[%c0_15, %c0_16] : memref<15x16xf32, #tpu.memory_space<vmem>>, vector<15x16xf32>
      %cst_17 = arith.constant dense<0.000000e+00> : vector<8x16xf32>
      %23 = tpu.matmul %21, %22, %cst_17 {dimension_numbers = #tpu.dot_dimension_numbers<[1], [0], [0], [1], [0, 0, 1, 1], [], []>} : vector<8x15xf32>, vector<15x16xf32>, vector<8x16xf32> -> vector<8x16xf32>
      %c0_18 = arith.constant 0 : index
      %c0_19 = arith.constant 0 : index
      %24 = vector.load %arg3[%c0_18, %c0_19] : memref<1x16xf32, #tpu.memory_space<vmem>>, vector<1x16xf32>
      %25 = vector.broadcast %24 : vector<1x16xf32> to vector<8x16xf32>
      %26 = arith.addf %23, %25 : vector<8x16xf32>
      %27 = vector.extract_strided_slice %26 {offsets = [0, 0], sizes = [4, 16], strides = [1, 1]} : vector<8x16xf32> to vector<4x16xf32>
      %28 = vector.extract_strided_slice %26 {offsets = [4, 0], sizes = [4, 16], strides = [1, 1]} : vector<8x16xf32> to vector<4x16xf32>
      %29 = arith.addf %27, %28 : vector<4x16xf32>
      %30 = arith.subf %27, %28 : vector<4x16xf32>
      %31 = vector.shape_cast %29 : vector<4x16xf32> to vector<4x16x1xf32>
      %32 = vector.shape_cast %31 : vector<4x16x1xf32> to vector<4x16x1xf32>
      %33 = vector.broadcast %32 : vector<4x16x1xf32> to vector<4x16x16xf32>
      %34 = vector.shape_cast %33 : vector<4x16x16xf32> to vector<4x256xf32>
      %35 = vector.shape_cast %29 : vector<4x16xf32> to vector<4x1x16xf32>
      %36 = vector.shape_cast %35 : vector<4x1x16xf32> to vector<4x1x16xf32>
      %37 = vector.broadcast %36 : vector<4x1x16xf32> to vector<4x16x16xf32>
      %38 = vector.shape_cast %37 : vector<4x16x16xf32> to vector<4x256xf32>
      %39 = arith.mulf %34, %38 : vector<4x256xf32>
      %40 = vector.shape_cast %30 : vector<4x16xf32> to vector<4x16x1xf32>
      %41 = vector.shape_cast %40 : vector<4x16x1xf32> to vector<4x16x1xf32>
      %42 = vector.broadcast %41 : vector<4x16x1xf32> to vector<4x16x16xf32>
      %43 = vector.shape_cast %42 : vector<4x16x16xf32> to vector<4x256xf32>
      %44 = vector.shape_cast %30 : vector<4x16xf32> to vector<4x1x16xf32>
      %45 = vector.shape_cast %44 : vector<4x1x16xf32> to vector<4x1x16xf32>
      %46 = vector.broadcast %45 : vector<4x1x16xf32> to vector<4x16x16xf32>
      %47 = vector.shape_cast %46 : vector<4x16x16xf32> to vector<4x256xf32>
      %48 = arith.mulf %43, %47 : vector<4x256xf32>
      %cst_20 = arith.constant 0.000000e+00 : f32
      %49 = vector.broadcast %cst_20 : f32 to vector<4x112xf32>
      %50 = tpu.concatenate %39, %48, %29, %49 in 1 : vector<4x256xf32>, vector<4x256xf32>, vector<4x16xf32>, vector<4x112xf32> -> vector<4x640xf32>
      %51 = arith.truncf %50 : vector<4x640xf32> to vector<4x640xbf16>
      %c0_21 = arith.constant 0 : index
      %c0_22 = arith.constant 0 : index
      %52 = vector.load %arg7[%c0_21, %c0_22] : memref<4x640xbf16, #tpu.memory_space<vmem>>, vector<4x640xbf16>
      tpu.vector_store %arg7[%c0_21, %c0_22], %51 {strides = array<i32>} : memref<4x640xbf16, #tpu.memory_space<vmem>>, vector<4x640xbf16>,
      %cst_23 = arith.constant 0.000000e+00 : f32
      %53 = vector.broadcast %cst_23 : f32 to vector<4x1024xf32>
      %c0_24 = arith.constant 0 : index
      %c0_25 = arith.constant 0 : index
      %54 = vector.load %arg8[%c0_24, %c0_25] : memref<4x1024xf32, #tpu.memory_space<vmem>>, vector<4x1024xf32>
      tpu.vector_store %arg8[%c0_24, %c0_25], %53 {strides = array<i32>} : memref<4x1024xf32, #tpu.memory_space<vmem>>, vector<4x1024xf32>,
    } else {
    }
    %c0 = arith.constant 0 : index
    %c0_1 = arith.constant 0 : index
    %3 = vector.load %arg5[%c0, %c0_1] : memref<2x1024xf32, #tpu.memory_space<vmem>>, vector<2x1024xf32>
    %c0_2 = arith.constant 0 : index
    %c0_3 = arith.constant 0 : index
    %4 = vector.load %arg7[%c0_2, %c0_3] : memref<4x640xbf16, #tpu.memory_space<vmem>>, vector<4x640xbf16>
    %c0_4 = arith.constant 0 : index
    %c0_5 = arith.constant 0 : index
    %5 = vector.load %arg4[%c0_4, %c0_5] : memref<640x1024xbf16, #tpu.memory_space<vmem>>, vector<640x1024xbf16>
    %cst = arith.constant dense<0.000000e+00> : vector<4x1024xf32>
    %6 = tpu.matmul %4, %5, %cst {dimension_numbers = #tpu.dot_dimension_numbers<[1], [0], [0], [1], [0, 0, 1, 1], [], []>} : vector<4x640xbf16>, vector<640x1024xbf16>, vector<4x1024xf32> -> vector<4x1024xf32>
    %7 = vector.extract_strided_slice %3 {offsets = [0, 0], sizes = [1, 1024], strides = [1, 1]} : vector<2x1024xf32> to vector<1x1024xf32>
    %8 = vector.broadcast %7 : vector<1x1024xf32> to vector<4x1024xf32>
    %9 = arith.addf %6, %8 : vector<4x1024xf32>
    %cst_6 = arith.constant 0.000000e+00 : f32
    %10 = vector.broadcast %cst_6 : f32 to vector<4x1024xf32>
    %11 = arith.maximumf %9, %10 : vector<4x1024xf32>
    %c0_7 = arith.constant 0 : index
    %c0_8 = arith.constant 0 : index
    %12 = vector.load %arg8[%c0_7, %c0_8] : memref<4x1024xf32, #tpu.memory_space<vmem>>, vector<4x1024xf32>
    %13 = vector.extract_strided_slice %3 {offsets = [1, 0], sizes = [1, 1024], strides = [1, 1]} : vector<2x1024xf32> to vector<1x1024xf32>
    %14 = vector.broadcast %13 : vector<1x1024xf32> to vector<4x1024xf32>
    %15 = arith.mulf %11, %14 : vector<4x1024xf32>
    %16 = arith.addf %12, %15 : vector<4x1024xf32>
    %c0_9 = arith.constant 0 : index
    %c0_10 = arith.constant 0 : index
    %17 = vector.load %arg8[%c0_9, %c0_10] : memref<4x1024xf32, #tpu.memory_space<vmem>>, vector<4x1024xf32>
    tpu.vector_store %arg8[%c0_9, %c0_10], %16 {strides = array<i32>} : memref<4x1024xf32, #tpu.memory_space<vmem>>, vector<4x1024xf32>,
    %c0_i32_11 = arith.constant 0 : i32
    %18 = arith.cmpi eq, %arg0, %c0_i32_11 : i32
    %19 = arith.extui %18 : i1 to i32
    %c0_i32_12 = arith.constant 0 : i32
    %20 = arith.cmpi ne, %19, %c0_i32_12 : i32
    scf.if %20 {
      %c0_13 = arith.constant 0 : index
      %c0_14 = arith.constant 0 : index
      %21 = vector.load %arg8[%c0_13, %c0_14] : memref<4x1024xf32, #tpu.memory_space<vmem>>, vector<4x1024xf32>
      %cst_15 = arith.constant dense<0.000000e+00> : vector<4xf32>
      %22 = vector.multi_reduction <add>, %21, %cst_15 [1] : vector<4x1024xf32> to vector<4xf32>
      %23 = vector.shape_cast %22 : vector<4xf32> to vector<4x1xf32>
      %c0_16 = arith.constant 0 : index
      %c0_17 = arith.constant 0 : index
      %24 = vector.load %arg6[%c0_16, %c0_17] : memref<4x1xf32, #tpu.memory_space<vmem>>, vector<4x1xf32>
      tpu.vector_store %arg6[%c0_16, %c0_17], %23 {strides = array<i32>} : memref<4x1xf32, #tpu.memory_space<vmem>>, vector<4x1xf32>,
    } else {
    }
    return
  }
  func.func @transform_0(%arg0: i32) -> (i32, i32) {
    %c0_i32 = arith.constant 0 : i32
    %c0_i32_0 = arith.constant 0 : i32
    %c0_i32_1 = arith.constant 0 : i32
    return %c0_i32, %c0_i32_0 : i32, i32
  }
  func.func @transform_1(%arg0: i32) -> (i32, i32) {
    %c0_i32 = arith.constant 0 : i32
    %c0_i32_0 = arith.constant 0 : i32
    %c0_i32_1 = arith.constant 0 : i32
    return %c0_i32, %c0_i32_0 : i32, i32
  }
  func.func @transform_2(%arg0: i32) -> (i32, i32) {
    %c0_i32 = arith.constant 0 : i32
    %c0_i32_0 = arith.constant 0 : i32
    %c0_i32_1 = arith.constant 0 : i32
    return %c0_i32, %c0_i32_0 : i32, i32
  }
  func.func @transform_3(%arg0: i32) -> (i32, i32) {
    %c0_i32 = arith.constant 0 : i32
    %c0_i32_0 = arith.constant 0 : i32
    return %c0_i32, %arg0 : i32, i32
  }
  func.func @transform_4(%arg0: i32) -> (i32, i32) {
    %c0_i32 = arith.constant 0 : i32
    %c0_i32_0 = arith.constant 0 : i32
    return %c0_i32, %arg0 : i32, i32
  }
  func.func @transform_5(%arg0: i32) -> (i32, i32) {
    %c0_i32 = arith.constant 0 : i32
    %c0_i32_0 = arith.constant 0 : i32
    %c0_i32_1 = arith.constant 0 : i32
    return %c0_i32, %c0_i32_0 : i32, i32
  }
}

</mosaic_0001>

<bundles_post_ra>
// kernel: tpu_custom_call.1
= control target key start
LH: loop header
LB: loop body
LE: loop exit
PB: predicated region body
PF: predicated region fallthrough
CT: control target
= control target key end

     0   :  { %10 = vsyncpa [#allocation5], 0  ;;  %s5879_s0 = inlined_call_operand.hbm [shape: f32[8,15], index: 0, kind: input, shape index: {}]   ;;  %s5880_s1 = inlined_call_operand.hbm [shape: f32[15,16], index: 1, kind: input, shape index: {}]   ;;  %s5881_s2 = inlined_call_operand.hbm [shape: f32[1,16], index: 2, kind: input, shape index: {}]   ;;  %s5882_s3 = inlined_call_operand.hbm [shape: bf16[640,1024], index: 3, kind: input, shape index: {}]   ;;  %s5883_s4 = inlined_call_operand.hbm [shape: f32[2,1024], index: 4, kind: input, shape index: {}]   ;;  %s5884_s5 = inlined_call_operand.vmem [shape: f32[4,1], index: 5, kind: output, shape index: {}]  }
   0x1   :  { %11 = vsyncpa [#allocation7], 0  ;;  %s28_s20 = sshll.u32 %s5880_s1, 4  ;;  %s29_s20 = int_to_ptr.hbm [resolvable:$true] %s28_s20 }
   0x2   :  { %12 = vsyncpa [#allocation10], 0  ;;  %s5236_s21 = smov [#allocation6]   ;;  %s52_s25 = sshll.u32 %s5882_s3, 4  ;;  %s53_s25 = int_to_ptr.hbm [resolvable:$true] %s52_s25 }
   0x3   :  { %s30_s22 = sshll.u32 %s5236_s21, 4  ;;  %s5237_s26 = smov 128   ;;  %s31_s22 = int_to_ptr.vmem [resolvable:$true] %s30_s22 }
   0x4   :  { %s5238_s27 = smov 8   ;;  %s5239_s28 = smov [#allocation9]  }
   0x5   :  { %36 = dma.hbm_to_vmem [thread:$0]  %s29_s20, 256, %s31_s22, [#allocation7], %s5237_s26, %s5237_s26, %s5238_s27  }
   0x6   :  { %s54_s29 = sshll.u32 %s5239_s28, 4  ;;  %s5240_s30 = smov 512   ;;  %s55_s29 = int_to_ptr.vmem [resolvable:$true] %s54_s29 }
   0x7   :  { %s5241_s6 = smov 32   ;;  %s18_s8 = sshll.u32 %s5879_s0, 4  ;;  %s19_s8 = int_to_ptr.hbm [resolvable:$true] %s18_s8 }
   0x8   :  { %60 = dma.hbm_to_vmem [thread:$0]  %s53_s25, 40960, %s55_s29, [#allocation10], %s5240_s30, %s5240_s30, %s5241_s6  }
   0x9   :  { %s5242_s9 = smov [#allocation4]   ;;  %s42_s12 = sshll.u32 %s5881_s2, 4  ;;  %s43_s12 = int_to_ptr.hbm [resolvable:$true] %s42_s12 }
   0xa   :  { %s20_s10 = sshll.u32 %s5242_s9, 4  ;;  %s5243_s13 = smov [#allocation8]   ;;  %s21_s10 = int_to_ptr.vmem [resolvable:$true] %s20_s10 }
   0xb   :  { %23 = dma.hbm_to_vmem [thread:$0]  %s19_s8, 128, %s21_s10, [#allocation5]  }
   0xc   :  { %s44_s14 = sshll.u32 %s5243_s13, 4  ;;  %s66_s17 = sshll.u32 %s5883_s4, 4  ;;  %s45_s14 = int_to_ptr.vmem [resolvable:$true] %s44_s14  ;;  %s67_s17 = int_to_ptr.hbm [resolvable:$true] %s66_s17 }
   0xd   :  { %47 = dma.hbm_to_vmem [thread:$0]  %s43_s12, 16, %s45_s14, [#allocation7]  }
   0xe   :  { %s5244_s0 = smov [#allocation11]  }
   0xf   :  { %s68_s18 = sshll.u32 %s5244_s0, 4  ;;  %s69_s18 = int_to_ptr.vmem [resolvable:$true] %s68_s18 }
  0x10   :  { %71 = dma.hbm_to_vmem [thread:$0]  %s67_s17, 256, %s69_s18, [#allocation10]  }
  0x11   :  { %5230 = dma.done.wait [#allocation5], 128  }
  0x12   :  { %5231 = vsyncadd [#allocation5], 4294967168 }
  0x13   :  { %5232 = dma.done.wait [#allocation7], 272  }
  0x14   :  { %5233 = vsyncadd [#allocation7], 4294967024 }
  0x15   :  { %5234 = dma.done.wait [#allocation10], 41216  }
  0x16   :  { %5235 = vsyncadd [#allocation10], 4294926080  ;;  %vm107_vm0 = vcmask 1046528   ;;  %v98_v0 = vld [vmem:[#allocation6 + $0x8] sm:$0x7f]  ;;  %v97_v1 = vld [vmem:[#allocation6] sm:$0xff]  ;;  %v137_v3 = vlaneseq }
  0x17   :  { %3472 = vmatpush.msk.msra.mxu0 %vm107_vm0, %v98_v0  ;;  %v96_v2 = vld [vmem:[#allocation4] sm:$0xff]  ;;  %vm103_vm1 = vcmask 121856   ;;  %v5104_v5 = vld [vmem:[#allocation8] ss:$0 sm:$0xff]  ;;  %vm357_vm2 = vcmask 130048   ;;  %vm833_vm3 = vcmask 1041408  }
  0x18   :  { %v5299_v4 = vshrl.u32 %v137_v3, 7  ;;  %v5245_v25 = vmov 1983009808   ;;  %vm189_vm4 = vcmask 1047556   ;;  %v5246_v44 = vmov 1934713408  }
  0x19   :  { %126 = vmatpush.msra.mxu0 %v97_v1  ;;  %v194_v26 = vunpack.c.l.s4 %v5245_v25  ;;  %v218_v45 = vunpack.c.l.s4 %v5246_v44  ;;  %s5247_s2 = smov 96   ;;  %s5248_s4 = smov 64   ;;  %vm359_vm5 = vcmask 261120   ;;  %vm361_vm6 = vcmask 392192  }
  0x1a   :  { %3473 = vmatmul.msk.f32.vlgmr.msra.gmra.mxu0 %vm103_vm1, %v96_v2  ;;  %5095 = vset.pattern.permute.xlu2 %v5299_v4  ;;  %v5308_v14 = vadd.s32 8, %v5299_v4  ;;  %s5249_s19 = smov 112   ;;  %s5250_s20 = smov 16   ;;  %vm363_vm7 = vcmask 523264   ;;  %vm365_vm8 = vcmask 654336   ;;  %vm367_vm9 = vcmask 785408  }
  0x1b   :  { %5093 = vset.pattern.permute.xlu1 %v5299_v4  ;;  %5091 = vset.pattern.permute.xlu0 %v5299_v4  ;;  %v5320_v32 = vunpack.c.0.s8 %v194_v26  ;;  %v5333_v51 = vunpack.c.0.s8 %v218_v45  ;;  %s5251_s21 = smov 48   ;;  %s5252_s22 = smov 80   ;;  %vm369_vm10 = vcmask 916480   ;;  %vm837_vm11 = vcmask 1045508  }
  0x1c   :  { %vm841_vm12 = vcmask 1043456   ;;  %vm3463_vm13 = vcmask 3072  }
  0x97   :  { %v128_v6 = vpop.f32.mrf.mxu0 }
  0x98   :  { %v129_v7 = vadd.f32 %v5104_v5, %v128_v6 }
  0x9a   :  { %v132_v8 = vrot.slane %v129_v7, 4 }
  0x9c   :  { %v134_v9 = vadd.f32 %v132_v8, %v129_v7  ;;  %v5304_v10 = vsub.f32 %v129_v7, %v132_v8 }
  0x9e   :  { %v522_v11 = vperm.slane %v5304_v10, 3  ;;  %v175_v12 = vperm.slane %v134_v9, 3  ;;  %v149_v13 = vperm.slane %v134_v9, 1  ;;  %v822_v15 = vsel %vm357_vm2, %v134_v9, 0.0 }
  0x9f   :  { %v825_v16 = vpack.c.bf16 %v822_v15, %v822_v15  ;;  %v162_v19 = vperm.slane %v134_v9, 2  ;;  %v496_v21 = vperm.slane %v5304_v10, 1  ;;  %v136_v22 = vperm.slane %v134_v9, 0 }
  0xa0   :  { %527 = vperm.xlu1 %5093, %v522_v11   ;;  %180 = vperm.xlu0 %5091, %v175_v12   ;;  %v379_v23 = vrot.slane %v134_v9, 1  ;;  %v380_v24 = vrot.slane %v134_v9, 2  ;;  %v381_v30 = vrot.slane %v134_v9, 3  ;;  %v509_v31 = vperm.slane %v5304_v10, 2 }
  0xa1   :  { %154 = vperm.xlu2 %5095, %v149_v13   ;;  %v832_v17 = vrot.slane %v825_v16, 2  ;;  %v392_v27 = vrot.slane %v136_v22, 4  ;;  %v483_v33 = vperm.slane %v5304_v10, 0  ;;  %v718_v36 = vrot.slane %v5304_v10, 1 }
  0xa2   :  { %v383_v28 = vperm.slane %v379_v23, 0  ;;  %v384_v29 = vperm.slane %v380_v24, 0  ;;  %v719_v37 = vrot.slane %v5304_v10, 2  ;;  %v385_v38 = vperm.slane %v381_v30, 0 }
  0xa3   :  { %v845_v18 = vsel %vm833_vm3, %v825_v16, %v832_v17  ;;  %v731_v41 = vrot.slane %v483_v33, 4  ;;  %v722_v42 = vperm.slane %v718_v36, 0  ;;  %v720_v46 = vrot.slane %v5304_v10, 3 }
  0xa4   :  { %849 = vst [vmem:[#allocation2 + $0x8] sm:$0x3] %v845_v18  ;;  %v393_v34 = vsel %vm189_vm4, %v384_v29, %v392_v27  ;;  %v404_v35 = vrot.slane %v383_v28, 4  ;;  %v723_v43 = vperm.slane %v719_v37, 0  ;;  %v390_v56 = vrot.slane %v384_v29, 4 }
  0xa5   :  { %v401_v39 = vperm.slane %v393_v34, %v5320_v32  ;;  %v743_v50 = vrot.slane %v722_v42, 4  ;;  %v724_v52 = vperm.slane %v720_v46, 0  ;;  %v402_v61 = vrot.slane %v385_v38, 4 }
  0xa6   :  { %v405_v40 = vsel %vm189_vm4, %v385_v38, %v404_v35  ;;  %v732_v49 = vsel %vm189_vm4, %v723_v43, %v731_v41  ;;  %v391_v60 = vsel %vm189_vm4, %v390_v56, %v136_v22  ;;  %v729_v0 = vrot.slane %v723_v43, 4 }
  0xa7   :  { %v413_v47 = vperm.slane %v405_v40, %v5320_v32  ;;  %v428_v48 = vrot.slane %v401_v39, 4  ;;  %v740_v54 = vperm.slane %v732_v49, %v5320_v32  ;;  %v744_v55 = vsel %vm189_vm4, %v724_v52, %v743_v50 }
  0xa8   :  { %5094 = vset.pattern.permute.xlu1 %v5308_v14  ;;  %5092 = vset.pattern.permute.xlu0 %v5308_v14  ;;  %v752_v58 = vperm.slane %v744_v55, %v5320_v32  ;;  %v397_v63 = vperm.slane %v391_v60, %v5320_v32  ;;  %v403_v2 = vsel %vm189_vm4, %v402_v61, %v383_v28  ;;  %v741_v7 = vrot.slane %v724_v52, 4 }
  0xa9   :  { %5096 = vset.pattern.permute.xlu2 %v5308_v14  ;;  %v429_v53 = vsel %vm189_vm4, %v413_v47, %v428_v48  ;;  %v767_v59 = vrot.slane %v740_v54, 4  ;;  %v730_v5 = vsel %vm189_vm4, %v729_v0, %v483_v33  ;;  %v409_v6 = vperm.slane %v403_v2, %v5320_v32 }
  0xaa   :  { %v437_v57 = vperm.slane %v429_v53, %v5333_v51  ;;  %v416_v3 = vrot.slane %v397_v63, 4  ;;  %v736_v9 = vperm.slane %v730_v5, %v5320_v32  ;;  %v426_v15 = vrot.slane %v413_v47, 4 }
  0xab   :  { %v857_v20 = vld [vmem:[#allocation2 + $0x8] sm:$0x3]  ;;  %v768_v62 = vsel %vm189_vm4, %v752_v58, %v767_v59  ;;  %v765_v18 = vrot.slane %v752_v58, 4 }
  0xac   :  { %1208 = vst [vmem:[#allocation1 + $0x20] ss:$4 sm:$0xff] %v857_v20  ;;  %v5346_v1 = vperm.slane %v768_v62, %v5333_v51  ;;  %v417_v8 = vsel %vm189_vm4, %v409_v6, %v416_v3  ;;  %v427_v16 = vsel %vm189_vm4, %v426_v15, %v401_v39 }
  0xad   :  { %v425_v10 = vperm.slane %v417_v8, %v5333_v51  ;;  %v433_v17 = vperm.slane %v427_v16, %v5333_v51 }
  0xae   :  { %v783_v2 = vrot.slane %v5346_v1, 4 }
  0xaf   :  { %v440_v36 = vrot.slane %v425_v10, 4  ;;  %v442_v45 = vrot.slane %v433_v17, 4 }
  0xb0   :  { %533 = vperm.xlu1 %5094, %v522_v11   ;;  %186 = vperm.xlu0 %5092, %v175_v12   ;;  %v742_v11 = vsel %vm189_vm4, %v741_v7, %v722_v42  ;;  %v755_v12 = vrot.slane %v736_v9, 4  ;;  %v784_v5 = vsel %vm189_vm4, 0.0, %v783_v2 }
  0xb1   :  { %160 = vperm.xlu2 %5096, %v149_v13   ;;  %v441_v37 = vsel %vm189_vm4, 0.0, %v440_v36  ;;  %v443_v47 = vsel %vm189_vm4, 0.0, %v442_v45 }
  0xb8   :  { %5097 = vset.pattern.permute.xlu1 %v5299_v4  ;;  %5098 = vset.pattern.permute.xlu0 %v5299_v4 }
  0xb9   :  { %173 = vperm.xlu2 %5096, %v162_v19  }
  0xc0   :  { %501 = vperm.xlu0 %5098, %v496_v21   ;;  %167 = vperm.xlu1 %5097, %v162_v19   ;;  %v766_v19 = vsel %vm189_vm4, %v765_v18, %v740_v54 }
  0xc1   :  { %5100 = vset.pattern.permute.xlu2 %v5299_v4  ;;  %v772_v20 = vperm.slane %v766_v19, %v5333_v51 }
  0xc3   :  { %v781_v53 = vrot.slane %v772_v20, 4 }
  0xc5   :  { %v782_v58 = vsel %vm189_vm4, 0.0, %v781_v53 }
  0xc8   :  { %5101 = vset.pattern.permute.xlu0 %v5308_v14  ;;  %5099 = vset.pattern.permute.xlu1 %v5308_v14 }
  0xc9   :  { %514 = vperm.xlu2 %5100, %v509_v31  }
  0xd0   :  { %507 = vperm.xlu1 %5099, %v496_v21   ;;  %147 = vperm.xlu0 %5101, %v136_v22   ;;  %v414_v21 = vrot.slane %v409_v6, 4 }
  0xd1   :  { %141 = vperm.xlu2 %5100, %v136_v22   ;;  %v444_v22 = vrot.slane %v437_v57, 4 }
  0xd2   :  { %v415_v23 = vsel %vm189_vm4, %v414_v21, %v397_v63 }
  0xd3   :  { %v445_v24 = vsel %vm189_vm4, 0.0, %v444_v22  ;;  %v5372_v25 = vperm.slane %v415_v23, %v5333_v51 }
  0xd5   :  { %v438_v27 = vrot.slane %v5372_v25, 4 }
  0xd7   :  { %v439_v29 = vsel %vm189_vm4, 0.0, %v438_v27 }
  0xd8   :  { %520 = vperm.xlu1 %5099, %v509_v31   ;;  %467 = vrot.lane.b32.xlu0 %v437_v57, %s5247_s2 }
  0xd9   :  { %5103 = vset.pattern.permute.xlu2 %v5308_v14 }
  0xe0   :  { %5102 = vset.pattern.permute.xlu1 %v5299_v4  ;;  %806 = vrot.lane.b32.xlu0 %v5346_v1, %s5247_s2  ;;  %v748_v4 = vperm.slane %v742_v11, %v5320_v32 }
  0xe1   :  { %494 = vperm.xlu2 %5103, %v483_v33  }
  0xe2   :  { %v756_v13 = vsel %vm189_vm4, %v748_v4, %v755_v12  ;;  %v753_v26 = vrot.slane %v748_v4, 4 }
  0xe3   :  { %v764_v14 = vperm.slane %v756_v13, %v5333_v51 }
  0xe4   :  { %v754_v28 = vsel %vm189_vm4, %v753_v26, %v736_v9 }
  0xe5   :  { %v5379_v30 = vperm.slane %v754_v28, %v5333_v51  ;;  %v779_v40 = vrot.slane %v764_v14, 4 }
  0xe7   :  { %v780_v41 = vsel %vm189_vm4, 0.0, %v779_v40 }
  0xe8   :  { %488 = vperm.xlu1 %5102, %v483_v33   ;;  %451 = vrot.lane.b32.xlu0 %v425_v10, %s5241_s6  ;;  %v777_v33 = vrot.slane %v5379_v30, 4 }
  0xea   :  { %v778_v34 = vsel %vm189_vm4, 0.0, %v777_v33 }
  0xf0   :  { %790 = vrot.lane.b32.xlu0 %v764_v14, %s5241_s6 }
  0xf8   :  { %459 = vrot.lane.b32.xlu0 %v433_v17, %s5248_s4 }
  0xfb   :  { %v5381_v31 = vpop.permute.xlu2 %154 }
  0xfc   :  { %v203_v53 = vrot.slane %v5381_v31, 4 }
 0x100   :  { %798 = vrot.lane.b32.xlu0 %v772_v20, %s5248_s4 }
 0x108   :  { %471 = vrot.lane.b32.xlu0 %v445_v24, %s5249_s19 }
 0x10b   :  { %v5386_v35 = vpop.permute.xlu2 %160 }
 0x10c   :  { %v259_v19 = vrot.slane %v5386_v35, 4 }
 0x110   :  { %447 = vrot.lane.b32.xlu0 %v439_v29, %s5250_s20 }
 0x112   :  { %v5391_v38 = vpop.permute.xlu1 %527  ;;  %v5395_v42 = vpop.permute.xlu0 %180 }
 0x113   :  { %v174_v39 = vpop.permute.xlu2 %173  ;;  %v201_v46 = vrot.slane %v5395_v42, 4 }
 0x114   :  { %v245_v6 = vrot.slane %v174_v39, 4 }
 0x115   :  { %v202_v48 = vsel %vm189_vm4, %v201_v46, %v5381_v31 }
 0x116   :  { %v208_v54 = vperm.slane %v202_v48, %v5320_v32 }
 0x118   :  { %786 = vrot.lane.b32.xlu0 %v778_v34, %s5250_s20  ;;  %v213_v59 = vrot.slane %v208_v54, 4 }
 0x120   :  { %455 = vrot.lane.b32.xlu0 %v441_v37, %s5251_s21 }
 0x122   :  { %v5397_v43 = vpop.permute.xlu1 %533  ;;  %v187_v49 = vpop.permute.xlu0 %186 }
 0x123   :  { %v5399_v44 = vpop.permute.xlu2 %514  ;;  %v257_v3 = vrot.slane %v187_v49, 4  ;;  %v603_v16 = vrot.slane %v5397_v43, 4  ;;  %v260_v24 = vsel %vm189_vm4, %v187_v49, %v259_v19 }
 0x124   :  { %v268_v29 = vperm.slane %v260_v24, %v5320_v32  ;;  %v535_v49 = vrot.slane %v5399_v44, 4 }
 0x125   :  { %v258_v9 = vsel %vm189_vm4, %v257_v3, %v5386_v35 }
 0x126   :  { %v5437_v12 = vperm.slane %v258_v9, %v5320_v32 }
 0x128   :  { %794 = vrot.lane.b32.xlu0 %v780_v41, %s5251_s21  ;;  %v281_v41 = vrot.slane %v268_v29, 4 }
 0x12b   :  { %v5410_v55 = vpop.permute.xlu2 %141 }
 0x12c   :  { %v191_v2 = vrot.slane %v5410_v55, 4 }
 0x130   :  { %463 = vrot.lane.b32.xlu0 %v443_v47, %s5252_s22  ;;  %v547_v47 = vrot.slane %v5391_v38, 4 }
 0x132   :  { %v5406_v50 = vpop.permute.xlu1 %167  ;;  %v502_v62 = vpop.permute.xlu0 %501 }
 0x133   :  { %v188_v52 = vrot.slane %v5406_v50, 4  ;;  %v549_v35 = vrot.slane %v502_v62, 4 }
 0x135   :  { %v190_v56 = vsel %vm189_vm4, %v188_v52, %v5410_v55 }
 0x136   :  { %v196_v57 = vperm.slane %v190_v56, %v5320_v32 }
 0x138   :  { %802 = vrot.lane.b32.xlu0 %v782_v58, %s5252_s22  ;;  %v215_v60 = vrot.slane %v196_v57, 4  ;;  %v5418_v61 = vsel %vm189_vm4, %v213_v59, %v196_v57 }
 0x13a   :  { %v216_v63 = vsel %vm189_vm4, %v208_v54, %v215_v60  ;;  %v548_v54 = vsel %vm189_vm4, %v547_v47, %v502_v62 }
 0x13b   :  { %v5422_v0 = vperm.slane %v216_v63, %v5333_v51  ;;  %v495_v18 = vpop.permute.xlu2 %494  ;;  %v204_v63 = vsel %vm189_vm4, %v5395_v42, %v203_v53  ;;  %v554_v3 = vperm.slane %v548_v54, %v5320_v32 }
 0x13c   :  { %v593_v45 = vrot.slane %v495_v18, 4  ;;  %v212_v42 = vperm.slane %v204_v63, %v5320_v32 }
 0x13d   :  { %306 = vrot.lane.b32.xlu1 %v5422_v0, %s5241_s6 }
 0x13e   :  { %v225_v19 = vrot.slane %v212_v42, 4 }
 0x140   :  { %810 = vrot.lane.b32.xlu0 %v784_v5, %s5249_s19 }
 0x142   :  { %v508_v7 = vpop.permute.xlu1 %507  ;;  %v148_v8 = vpop.permute.xlu0 %147 }
 0x143   :  { %v246_v10 = vsel %vm189_vm4, %v245_v6, %v148_v8  ;;  %v604_v20 = vsel %vm189_vm4, %v603_v16, %v508_v7  ;;  %v247_v21 = vrot.slane %v148_v8, 4  ;;  %v605_v36 = vrot.slane %v508_v7, 4 }
 0x144   :  { %v5433_v11 = vperm.slane %v246_v10, %v5320_v32  ;;  %v5457_v26 = vperm.slane %v604_v20, %v5320_v32  ;;  %v192_v10 = vsel %vm189_vm4, %v5406_v50, %v191_v2 }
 0x145   :  { %v248_v28 = vsel %vm189_vm4, %v174_v39, %v247_v21  ;;  %v550_v39 = vsel %vm189_vm4, %v5391_v38, %v549_v35  ;;  %v606_v46 = vsel %vm189_vm4, %v5397_v43, %v605_v36  ;;  %v200_v16 = vperm.slane %v192_v10, %v5320_v32 }
 0x146   :  { %v271_v1 = vrot.slane %v5433_v11, 4  ;;  %v256_v40 = vperm.slane %v248_v28, %v5320_v32  ;;  %v558_v56 = vperm.slane %v550_v39, %v5320_v32  ;;  %v614_v57 = vperm.slane %v606_v46, %v5320_v32 }
 0x147   :  { %v226_v21 = vsel %vm189_vm4, %v225_v19, %v200_v16  ;;  %v615_v46 = vrot.slane %v5457_v26, 4 }
 0x148   :  { %v272_v4 = vsel %vm189_vm4, %v5437_v12, %v271_v1  ;;  %v282_v48 = vsel %vm189_vm4, %v281_v41, %v256_v40  ;;  %v571_v6 = vrot.slane %v558_v56, 4  ;;  %v627_v7 = vrot.slane %v614_v57, 4 }
 0x149   :  { %v5442_v13 = vperm.slane %v272_v4, %v5333_v51  ;;  %v5488_v60 = vperm.slane %v282_v48, %v5333_v51  ;;  %v283_v20 = vrot.slane %v256_v40, 4  ;;  %v227_v40 = vrot.slane %v200_v16, 4 }
 0x14a   :  { %v521_v14 = vpop.permute.xlu1 %520  ;;  %v5444_v15 = vpop.permute.xlu0 %467 }
 0x14b   :  { %v591_v17 = vrot.slane %v521_v14, 4  ;;  %334 = vrot.lane.b32.xlu2 %v5442_v13, %s5241_s6  ;;  %v594_v52 = vsel %vm189_vm4, %v521_v14, %v593_v45  ;;  %v295_v63 = vrot.slane %v5442_v13, 4 }
 0x14c   :  { %v602_v31 = vperm.slane %v594_v52, %v5320_v32 }
 0x14d   :  { %v592_v22 = vsel %vm189_vm4, %v591_v17, %v495_v18 }
 0x14e   :  { %v5453_v23 = vperm.slane %v592_v22, %v5320_v32  ;;  %v628_v4 = vsel %vm189_vm4, %v627_v7, %v602_v31  ;;  %v284_v22 = vsel %vm189_vm4, %v268_v29, %v283_v20  ;;  %v629_v28 = vrot.slane %v602_v31, 4 }
 0x14f   :  { %v5517_v50 = vperm.slane %v628_v4, %v5333_v51 }
 0x150   :  { %v617_v27 = vrot.slane %v5453_v23, 4  ;;  %v630_v35 = vsel %vm189_vm4, %v614_v57, %v629_v28  ;;  %v616_v48 = vsel %vm189_vm4, %v615_v46, %v5453_v23  ;;  %v5575_v23 = vperm.slane %v5418_v61, %v5333_v51 }
 0x151   :  { %v5545_v39 = vperm.slane %v630_v35, %v5333_v51  ;;  %v5566_v53 = vperm.slane %v616_v48, %v5333_v51 }
 0x152   :  { %v5462_v33 = vpop.permute.xlu0 %806  ;;  %v618_v34 = vsel %vm189_vm4, %v5457_v26, %v617_v27  ;;  %v5529_v27 = vperm.slane %v284_v22, %v5333_v51 }
 0x153   :  { %v5467_v37 = vperm.slane %v618_v34, %v5333_v51  ;;  %v269_v34 = vrot.slane %v5437_v12, 4  ;;  %v228_v12 = vsel %vm189_vm4, %v212_v42, %v227_v40  ;;  %v639_v26 = vrot.slane %v5566_v53, 4 }
 0x154   :  { %v5556_v47 = vperm.slane %v228_v12, %v5333_v51  ;;  %v299_v16 = vrot.slane %v5529_v27, 4  ;;  %v645_v20 = vrot.slane %v5545_v39, 4 }
 0x155   :  { %680 = vrot.lane.b32.xlu2 %v5467_v37, %s5241_s6  ;;  %v270_v36 = vsel %vm189_vm4, %v269_v34, %v5433_v11  ;;  %v640_v57 = vsel %vm189_vm4, 0.0, %v639_v26  ;;  %v641_v13 = vrot.slane %v5467_v37, 4  ;;  %v297_v37 = vrot.slane %v5488_v60, 4 }
 0x156   :  { %v5548_v45 = vperm.slane %v270_v36, %v5333_v51  ;;  %v646_v22 = vsel %vm189_vm4, 0.0, %v645_v20 }
 0x157   :  { %v298_v10 = vsel %vm189_vm4, 0.0, %v297_v37 }
 0x158   :  { %v293_v11 = vrot.slane %v5548_v45, 4 }
 0x15a   :  { %v489_v58 = vpop.permute.xlu1 %488  ;;  %v5484_v59 = vpop.permute.xlu0 %451  ;;  %v294_v52 = vsel %vm189_vm4, 0.0, %v293_v11 }
 0x15b   :  { %v536_v43 = vsel %vm189_vm4, %v535_v49, %v489_v58  ;;  %v537_v38 = vrot.slane %v489_v58, 4  ;;  %v559_v58 = vrot.slane %v554_v3, 4 }
 0x15c   :  { %v542_v62 = vperm.slane %v536_v43, %v5320_v32  ;;  %v237_v43 = vrot.slane %v5575_v23, 4 }
 0x15d   :  { %v538_v5 = vsel %vm189_vm4, %v5399_v44, %v537_v38  ;;  %342 = vrot.lane.b32.xlu2 %v5488_v60, %s5248_s4 }
 0x15e   :  { %v546_v8 = vperm.slane %v538_v5, %v5320_v32  ;;  %v561_v9 = vrot.slane %v542_v62, 4  ;;  %v5524_v32 = vperm.slane %v226_v21, %v5333_v51  ;;  %v560_v38 = vsel %vm189_vm4, %v559_v58, %v542_v62 }
 0x15f   :  { %v238_v2 = vsel %vm189_vm4, 0.0, %v237_v43  ;;  %v5588_v61 = vperm.slane %v560_v38, %v5333_v51  ;;  %v296_v5 = vsel %vm189_vm4, 0.0, %v295_v63 }
 0x160   :  { %v573_v1 = vrot.slane %v546_v8, 4  ;;  %v562_v55 = vsel %vm189_vm4, %v554_v3, %v561_v9  ;;  %v572_v44 = vsel %vm189_vm4, %v571_v6, %v546_v8  ;;  %v642_v9 = vsel %vm189_vm4, 0.0, %v641_v13 }
 0x161   :  { %v5508_v14 = vperm.slane %v562_v55, %v5333_v51  ;;  %v5536_v29 = vperm.slane %v572_v44, %v5333_v51  ;;  %v583_v3 = vrot.slane %v5588_v61, 4  ;;  %v643_v55 = vrot.slane %v5517_v50, 4 }
 0x162   :  { %v5511_v17 = vpop.permute.xlu0 %790  ;;  %v574_v18 = vsel %vm189_vm4, %v558_v56, %v573_v1  ;;  %v241_v60 = vrot.slane %v5524_v32, 4 }
 0x163   :  { %652 = vrot.lane.b32.xlu1 %v5508_v14, %s5241_s6  ;;  %v5571_v54 = vperm.slane %v574_v18, %v5333_v51  ;;  %v584_v7 = vsel %vm189_vm4, 0.0, %v583_v3  ;;  %v585_v1 = vrot.slane %v5508_v14, 4  ;;  %v300_v14 = vsel %vm189_vm4, 0.0, %v299_v16  ;;  %v3956_v3 = vld [vmem:[#allocation9 + $0x3c0] sm:$0xf] }
 0x164   :  { %v242_v18 = vsel %vm189_vm4, 0.0, %v241_v60  ;;  %v4180_v60 = vld [vmem:[#allocation9 + $0x580] sm:$0xf] }
 0x165   :  { %688 = vrot.lane.b32.xlu2 %v5517_v50, %s5248_s4  ;;  %v586_v4 = vsel %vm189_vm4, 0.0, %v585_v1  ;;  %v587_v50 = vrot.slane %v5536_v29, 4  ;;  %v589_v28 = vrot.slane %v5571_v54, 4  ;;  %v3924_v1 = vld [vmem:[#allocation9 + $0x380] sm:$0xf] }
 0x167   :  { %v588_v21 = vsel %vm189_vm4, 0.0, %v587_v50  ;;  %v590_v35 = vsel %vm189_vm4, 0.0, %v589_v28  ;;  %v4998_v50 = vld [vmem:[#allocation9 + $0x79c] sm:$0xf0] }
 0x16a   :  { %v460_v24 = vpop.permute.xlu0 %459 }
 0x16b   :  { %314 = vrot.lane.b32.xlu1 %v5524_v32, %s5248_s4  ;;  %v243_v32 = vrot.slane %v5556_v47, 4 }
 0x16d   :  { %350 = vrot.lane.b32.xlu2 %v5529_v27, %s5247_s2  ;;  %v244_v27 = vsel %vm189_vm4, 0.0, %v243_v32  ;;  %v3892_v32 = vld [vmem:[#allocation9 + $0x340] sm:$0xf] }
 0x172   :  { %v5540_v41 = vpop.permute.xlu0 %798 }
 0x173   :  { %660 = vrot.lane.b32.xlu1 %v5536_v29, %s5248_s4 }
 0x175   :  { %696 = vrot.lane.b32.xlu2 %v5545_v39, %s5247_s2 }
 0x17a   :  { %v5560_v49 = vpop.permute.xlu0 %471 }
 0x17b   :  { %322 = vrot.lane.b32.xlu1 %v5556_v47, %s5247_s2 }
 0x17d   :  { %330 = vrot.lane.b32.xlu2 %v294_v52, %s5250_s20 }
 0x182   :  { %v448_v56 = vpop.permute.xlu0 %447 }
 0x183   :  { %668 = vrot.lane.b32.xlu1 %v5571_v54, %s5247_s2  ;;  %v474_v62 = vsel %vm357_vm2, %v5372_v25, %v448_v56  ;;  %v239_v25 = vrot.slane %v5422_v0, 4  ;;  %v644_v0 = vsel %vm189_vm4, 0.0, %v643_v55 }
 0x184   :  { %v475_v51 = vsel %vm359_vm5, %v474_v62, %v5484_v59 }
 0x185   :  { %676 = vrot.lane.b32.xlu2 %v640_v57, %s5250_s20  ;;  %v240_v59 = vsel %vm189_vm4, 0.0, %v239_v25  ;;  %v5006_v25 = vld [vmem:[#allocation9 + $0x7dc] sm:$0xf0] }
 0x18a   :  { %v5584_v31 = vpop.permute.xlu0 %786 }
 0x18b   :  { %302 = vrot.lane.b32.xlu1 %v238_v2, %s5250_s20  ;;  %v3700_v2 = vld [vmem:[#allocation9 + $0x1c0] sm:$0xf] }
 0x18d   :  { %338 = vrot.lane.b32.xlu2 %v296_v5, %s5251_s21  ;;  %v4814_v5 = vld [vmem:[#allocation9 + $0x1dc] sm:$0xf0] }
 0x18e   :  { %v3701_v13 = vor.u32 %v4814_v5, %v3700_v2  ;;  %v4854_v5 = vld [vmem:[#allocation9 + $0x31c] sm:$0xf0] }
 0x190   :  { %2819 = vmatpush.bf16.msra.mxu1 %v3701_v13  ;;  %v4918_v13 = vld [vmem:[#allocation9 + $0x51c] sm:$0xf0] }
 0x192   :  { %v456_v6 = vpop.permute.xlu0 %455 }
 0x193   :  { %v476_v8 = vsel %vm361_vm6, %v475_v51, %v456_v6  ;;  %648 = vrot.lane.b32.xlu1 %v584_v7, %s5250_s20  ;;  %v4878_v51 = vld [vmem:[#allocation9 + $0x3dc] sm:$0xf0] }
 0x194   :  { %v5604_v42 = vsel %vm363_vm7, %v476_v8, %v460_v24  ;;  %v4212_v6 = vld [vmem:[#allocation9 + $0x5c0] sm:$0xf] }
 0x195   :  { %684 = vrot.lane.b32.xlu2 %v642_v9, %s5251_s21  ;;  %v4942_v7 = vld [vmem:[#allocation9 + $0x5dc] sm:$0xf0] }
 0x196   :  { %v4213_v8 = vor.u32 %v4942_v7, %v4212_v6  ;;  %v4468_v9 = vld [vmem:[#allocation9 + $0x7c0] sm:$0xf] }
 0x197   :  { %v4469_v37 = vor.u32 %v5006_v25, %v4468_v9  ;;  %v4372_v6 = vld [vmem:[#allocation9 + $0x700] sm:$0xf] }
 0x198   :  { %2845 = vmatpush.bf16.msra.mxu3 %v4213_v8  ;;  %v4982_v7 = vld [vmem:[#allocation9 + $0x71c] sm:$0xf0] }
 0x199   :  { %2858 = vmatpush.bf16.msrb.mxu0 %v4469_v37  ;;  %v4373_v9 = vor.u32 %v4982_v7, %v4372_v6  ;;  %v4782_v25 = vld [vmem:[#allocation9 + $0xdc] sm:$0xf0] }
 0x19a   :  { %v5658_v43 = vpop.permute.xlu0 %794  ;;  %v3828_v37 = vld [vmem:[#allocation9 + $0x2c0] sm:$0xf] }
 0x19b   :  { %310 = vrot.lane.b32.xlu1 %v240_v59, %s5251_s21  ;;  %v3668_v59 = vld [vmem:[#allocation9 + $0x180] sm:$0xf] }
 0x19d   :  { %346 = vrot.lane.b32.xlu2 %v298_v10, %s5252_s22  ;;  %v4806_v10 = vld [vmem:[#allocation9 + $0x19c] sm:$0xf0] }
 0x1a3   :  { %656 = vrot.lane.b32.xlu1 %v586_v4, %s5251_s21  ;;  %v3669_v4 = vor.u32 %v4806_v10, %v3668_v59  ;;  %v4846_v59 = vld [vmem:[#allocation9 + $0x2dc] sm:$0xf0] }
 0x1a5   :  { %692 = vrot.lane.b32.xlu2 %v644_v0, %s5252_s22  ;;  %v335_v44 = vpop.permute.xlu2 %334  ;;  %v4870_v0 = vld [vmem:[#allocation9 + $0x39c] sm:$0xf0]  ;;  %2820 = vmatpush.bf16.msra.mxu1 %v3669_v4 }
 0x1a6   :  { %v3925_v16 = vor.u32 %v4870_v0, %v3924_v1  ;;  %v3829_v1 = vor.u32 %v4846_v59, %v3828_v37  ;;  %v4084_v4 = vld [vmem:[#allocation9 + $0x4c0] sm:$0xf] }
 0x1a7   :  { %v4910_v0 = vld [vmem:[#allocation9 + $0x4dc] sm:$0xf0] }
 0x1ab   :  { %318 = vrot.lane.b32.xlu1 %v242_v18, %s5252_s22 }
 0x1ad   :  { %354 = vrot.lane.b32.xlu2 %v300_v14, %s5249_s19  ;;  %v4436_v14 = vld [vmem:[#allocation9 + $0x780] sm:$0xf] }
 0x1af   :  { %v681_v19 = vpop.permute.xlu2 %680  ;;  %v5639_v36 = vpop.permute.xlu1 %306 }
 0x1b3   :  { %664 = vrot.lane.b32.xlu1 %v588_v21, %s5252_s22  ;;  %v4437_v21 = vor.u32 %v4998_v50, %v4436_v14  ;;  %v813_v50 = vsel %vm357_vm2, %v5379_v30, %v5584_v31 }
 0x1b4   :  { %v814_v30 = vsel %vm359_vm5, %v813_v50, %v5511_v17  ;;  %v4886_v50 = vld [vmem:[#allocation9 + $0x41c] sm:$0xf0] }
 0x1b5   :  { %700 = vrot.lane.b32.xlu2 %v646_v22, %s5249_s19  ;;  %v4798_v22 = vld [vmem:[#allocation9 + $0x15c] sm:$0xf0]  ;;  %2859 = vmatpush.bf16.msrb.mxu0 %v4437_v21 }
 0x1b6   :  { %v3540_v21 = vld [vmem:[#allocation9 + $0x80] sm:$0xf] }
 0x1b7   :  { %v343_v24 = vpop.permute.xlu2 %342 }
 0x1bb   :  { %326 = vrot.lane.b32.xlu1 %v244_v27, %s5249_s19 }
 0x1bf   :  { %v689_v34 = vpop.permute.xlu2 %688 }
 0x1c3   :  { %672 = vrot.lane.b32.xlu1 %v590_v35, %s5249_s19  ;;  %v4148_v35 = vld [vmem:[#allocation9 + $0x540] sm:$0xf] }
 0x1c7   :  { %v5637_v29 = vpop.permute.xlu2 %350 }
 0x1cf   :  { %v5641_v40 = vpop.permute.xlu2 %696 }
 0x1d5   :  { %v5643_v39 = vpop.permute.xlu1 %652 }
 0x1d7   :  { %v331_v12 = vpop.permute.xlu2 %330 }
 0x1d8   :  { %v371_v47 = vsel %vm357_vm2, %v5548_v45, %v331_v12  ;;  %v4926_v12 = vld [vmem:[#allocation9 + $0x55c] sm:$0xf0] }
 0x1d9   :  { %v372_v52 = vsel %vm359_vm5, %v371_v47, %v335_v44  ;;  %v4934_v44 = vld [vmem:[#allocation9 + $0x59c] sm:$0xf0]  ;;  %v464_v47 = vpop.permute.xlu0 %463 }
 0x1da   :  { %v4181_v18 = vor.u32 %v4934_v44, %v4180_v60  ;;  %v4340_v60 = vld [vmem:[#allocation9 + $0x6c0] sm:$0xf]  ;;  %v478_v44 = vsel %vm365_vm8, %v5604_v42, %v464_v47 }
 0x1db   :  { %v3508_v47 = vld [vmem:[#allocation9 + $0x40] sm:$0xf] }
 0x1dc   :  { %2846 = vmatpush.bf16.msra.mxu3 %v4181_v18  ;;  %v4974_v18 = vld [vmem:[#allocation9 + $0x6dc] sm:$0xf0] }
 0x1dd   :  { %v5645_v46 = vpop.permute.xlu1 %314  ;;  %v4341_v14 = vor.u32 %v4974_v18, %v4340_v60  ;;  %v4758_v60 = vld [vmem:[#allocation9 + $0x1c] sm:$0xf0] }
 0x1de   :  { %v4822_v18 = vld [vmem:[#allocation9 + $0x21c] sm:$0xf0] }
 0x1df   :  { %v677_v11 = vpop.permute.xlu2 %676 }
 0x1e0   :  { %v710_v57 = vsel %vm357_vm2, %v5566_v53, %v677_v11  ;;  %v3957_v53 = vor.u32 %v4878_v51, %v3956_v3  ;;  %v4404_v11 = vld [vmem:[#allocation9 + $0x740] sm:$0xf] }
 0x1e1   :  { %v711_v38 = vsel %vm359_vm5, %v710_v57, %v681_v19  ;;  %v3636_v19 = vld [vmem:[#allocation9 + $0x140] sm:$0xf] }
 0x1e2   :  { %2832 = vmatpush.bf16.msra.mxu2 %v3957_v53  ;;  %v3637_v28 = vor.u32 %v4798_v22, %v3636_v19  ;;  %v4116_v3 = vld [vmem:[#allocation9 + $0x500] sm:$0xf]  ;;  %v803_v19 = vpop.permute.xlu0 %802 }
 0x1e3   :  { %v3572_v53 = vld [vmem:[#allocation9 + $0xc0] sm:$0xf] }
 0x1e4   :  { %2821 = vmatpush.bf16.msra.mxu1 %v3637_v28  ;;  %v3573_v10 = vor.u32 %v4782_v25, %v3572_v53  ;;  %v4774_v22 = vld [vmem:[#allocation9 + $0x9c] sm:$0xf0] }
 0x1e5   :  { %v5649_v48 = vpop.permute.xlu1 %660  ;;  %v4052_v28 = vld [vmem:[#allocation9 + $0x480] sm:$0xf] }
 0x1e6   :  { %2833 = vmatpush.bf16.msra.mxu2 %v3925_v16  ;;  %v4085_v16 = vor.u32 %v4910_v0, %v4084_v4 }
 0x1e7   :  { %v339_v26 = vpop.permute.xlu2 %338 }
 0x1e8   :  { %v373_v54 = vsel %vm361_vm6, %v372_v52, %v339_v26  ;;  %v4149_v26 = vor.u32 %v4926_v12, %v4148_v35  ;;  %v4308_v12 = vld [vmem:[#allocation9 + $0x680] sm:$0xf] }
 0x1e9   :  { %v374_v56 = vsel %vm363_vm7, %v373_v54, %v343_v24  ;;  %v4862_v24 = vld [vmem:[#allocation9 + $0x35c] sm:$0xf0] }
 0x1ea   :  { %v4990_v54 = vld [vmem:[#allocation9 + $0x75c] sm:$0xf0]  ;;  %2847 = vmatpush.bf16.msra.mxu3 %v4149_v26  ;;  %v811_v25 = vpop.permute.xlu0 %810 }
 0x1eb   :  { %v4405_v57 = vor.u32 %v4990_v54, %v4404_v11  ;;  %v4966_v11 = vld [vmem:[#allocation9 + $0x69c] sm:$0xf0] }
 0x1ed   :  { %v5656_v58 = vpop.permute.xlu1 %322  ;;  %2860 = vmatpush.bf16.msrb.mxu0 %v4405_v57  ;;  %v4309_v57 = vor.u32 %v4966_v11, %v4308_v12  ;;  %v4214_v12 = vld [vmem:[#allocation9 + $0x5e0] sm:$0xf0] }
 0x1ef   :  { %v685_v63 = vpop.permute.xlu2 %684 }
 0x1f0   :  { %v712_v45 = vsel %vm361_vm6, %v711_v38, %v685_v63  ;;  %v4790_v38 = vld [vmem:[#allocation9 + $0x11c] sm:$0xf0] }
 0x1f1   :  { %v5663_v62 = vsel %vm363_vm7, %v712_v45, %v689_v34  ;;  %v3893_v34 = vor.u32 %v4862_v24, %v3892_v32  ;;  %v3860_v63 = vld [vmem:[#allocation9 + $0x300] sm:$0xf]  ;;  %2861 = vmatpush.bf16.msrb.mxu0 %v4373_v9  ;;  %v3541_v24 = vor.u32 %v4774_v22, %v3540_v21 }
 0x1f2   :  { %v3861_v51 = vor.u32 %v4854_v5, %v3860_v63  ;;  %v3796_v32 = vld [vmem:[#allocation9 + $0x280] sm:$0xf] }
 0x1f3   :  { %2834 = vmatpush.bf16.msra.mxu2 %v3893_v34  ;;  %v4902_v34 = vld [vmem:[#allocation9 + $0x49c] sm:$0xf0] }
 0x1f4   :  { %v4053_v35 = vor.u32 %v4902_v34, %v4052_v28  ;;  %v4830_v63 = vld [vmem:[#allocation9 + $0x25c] sm:$0xf0] }
 0x1f5   :  { %v5665_v55 = vpop.permute.xlu1 %668  ;;  %2862 = vmatpush.bf16.msrb.mxu0 %v4341_v14  ;;  %v3988_v14 = vld [vmem:[#allocation9 + $0x400] sm:$0xf] }
 0x1f6   :  { %v3989_v21 = vor.u32 %v4886_v50, %v3988_v14  ;;  %v4950_v22 = vld [vmem:[#allocation9 + $0x61c] sm:$0xf0] }
 0x1f7   :  { %v347_v20 = vpop.permute.xlu2 %346  ;;  %2835 = vmatpush.bf16.msra.mxu2 %v3861_v51  ;;  %v4596_v14 = vld [vmem:[#allocation9 + $0x8c0] sm:$0xf] }
 0x1f8   :  { %v375_v27 = vsel %vm365_vm8, %v374_v56, %v347_v20  ;;  %v3604_v56 = vld [vmem:[#allocation9 + $0x100] sm:$0xf]  ;;  %v479_v20 = vsel %vm367_vm9, %v478_v44, %v5444_v15  ;;  %v815_v15 = vsel %vm361_vm6, %v814_v30, %v5658_v43  ;;  %v4874_v30 = vld [vmem:[#allocation9 + $0x3c4] sm:$0xf] }
 0x1f9   :  { %v5670_v52 = vsel %vm367_vm9, %v375_v27, %v5637_v29  ;;  %v3605_v2 = vor.u32 %v4790_v38, %v3604_v56  ;;  %v4117_v29 = vor.u32 %v4918_v13, %v4116_v3  ;;  %v4838_v27 = vld [vmem:[#allocation9 + $0x29c] sm:$0xf0]  ;;  %v5689_v54 = vsel %vm369_vm10, %v479_v20, %v5560_v49  ;;  %2863 = vmatpush.bf16.msrb.mxu0 %v4309_v57  ;;  %v4802_v57 = vld [vmem:[#allocation9 + $0x184] sm:$0xf] }
 0x1fa   :  { %v3797_v31 = vor.u32 %v4838_v27, %v3796_v32  ;;  %v4766_v56 = vld [vmem:[#allocation9 + $0x5c] sm:$0xf0]  ;;  %v3702_v27 = vld [vmem:[#allocation9 + $0x1e0] sm:$0xf0] }
 0x1fb   :  { %2822 = vmatpush.bf16.msra.mxu1 %v3605_v2  ;;  %2848 = vmatpush.bf16.msra.mxu3 %v4117_v29  ;;  %v3764_v38 = vld [vmem:[#allocation9 + $0x240] sm:$0xf]  ;;  %v3509_v2 = vor.u32 %v4766_v56, %v3508_v47 }
 0x1fc   :  { %2836 = vmatpush.bf16.msra.mxu2 %v3829_v1  ;;  %v3765_v5 = vor.u32 %v4830_v63, %v3764_v38  ;;  %v4020_v3 = vld [vmem:[#allocation9 + $0x440] sm:$0xf]  ;;  %v3670_v63 = vld [vmem:[#allocation9 + $0x1a0] sm:$0xf0] }
 0x1fd   :  { %v5672_v45 = vpop.permute.xlu1 %302  ;;  %v4894_v13 = vld [vmem:[#allocation9 + $0x45c] sm:$0xf0] }
 0x1fe   :  { %v4276_v43 = vld [vmem:[#allocation9 + $0x640] sm:$0xf]  ;;  %v4021_v49 = vor.u32 %v4894_v13, %v4020_v3  ;;  %v358_v6 = vsel %vm357_vm2, %v5575_v23, %v5672_v45  ;;  %v3673_v3 = vor.u32 %v4802_v57, %v3670_v63 }
 0x1ff   :  { %v5674_v8 = vpop.permute.xlu2 %692  ;;  %2823 = vmatpush.bf16.msra.mxu1 %v3573_v10  ;;  %2849 = vmatpush.bf16.msra.mxu3 %v4085_v16  ;;  %v4958_v29 = vld [vmem:[#allocation9 + $0x65c] sm:$0xf0]  ;;  %v360_v37 = vsel %vm359_vm5, %v358_v6, %v5639_v36 }
 0x200   :  { %2837 = vmatpush.bf16.msra.mxu2 %v3797_v31  ;;  %v4277_v7 = vor.u32 %v4958_v29, %v4276_v43  ;;  %v714_v9 = vsel %vm365_vm8, %v5663_v62, %v5674_v8  ;;  %v3732_v44 = vld [vmem:[#allocation9 + $0x200] sm:$0xf]  ;;  %v3958_v31 = vld [vmem:[#allocation9 + $0x3e0] sm:$0xf0] }
 0x201   :  { %v715_v45 = vsel %vm367_vm9, %v714_v9, %v5641_v40  ;;  %v3476_v40 = vld [vmem:[#allocation9] sm:$0xf]  ;;  %v3733_v20 = vor.u32 %v4822_v18, %v3732_v44  ;;  %v4930_v43 = vld [vmem:[#allocation9 + $0x584] sm:$0xf] }
 0x202   :  { %2864 = vmatpush.bf16.msrb.mxu0 %v4277_v7  ;;  %v3477_v16 = vor.u32 %v4758_v60, %v3476_v40  ;;  %v4724_v32 = vld [vmem:[#allocation9 + $0x9c0] sm:$0xf]  ;;  %v3638_v9 = vld [vmem:[#allocation9 + $0x160] sm:$0xf0] }
 0x203   :  { %2824 = vmatpush.bf16.msra.mxu1 %v3541_v24  ;;  %2850 = vmatpush.bf16.msra.mxu3 %v4053_v35  ;;  %v4810_v24 = vld [vmem:[#allocation9 + $0x1c4] sm:$0xf]  ;;  %v4660_v6 = vld [vmem:[#allocation9 + $0x940] sm:$0xf] }
 0x204   :  { %2838 = vmatpush.bf16.msra.mxu2 %v3765_v5  ;;  %v3705_v34 = vor.u32 %v4810_v24, %v3702_v27  ;;  %v4938_v35 = vld [vmem:[#allocation9 + $0x5c4] sm:$0xf]  ;;  %v5054_v7 = vld [vmem:[#allocation9 + $0x95c] sm:$0xf0] }
 0x205   :  { %v649_v42 = vpop.permute.xlu1 %648  ;;  %v4217_v11 = vor.u32 %v4938_v35, %v4214_v12  ;;  %v3862_v40 = vld [vmem:[#allocation9 + $0x320] sm:$0xf0]  ;;  %v5038_v50 = vld [vmem:[#allocation9 + $0x8dc] sm:$0xf0] }
 0x206   :  { %v703_v4 = vsel %vm357_vm2, %v5588_v61, %v649_v42  ;;  %v4244_v61 = vld [vmem:[#allocation9 + $0x600] sm:$0xf]  ;;  %v4914_v60 = vld [vmem:[#allocation9 + $0x504] sm:$0xf]  ;;  %v4597_v24 = vor.u32 %v5038_v50, %v4596_v14 }
 0x207   :  { %v355_v26 = vpop.permute.xlu2 %354  ;;  %2825 = vmatpush.bf16.msra.mxu1 %v3509_v2  ;;  %2851 = vmatpush.bf16.msra.mxu3 %v4021_v49  ;;  %v5070_v42 = vld [vmem:[#allocation9 + $0x9dc] sm:$0xf0]  ;;  %v3926_v2 = vld [vmem:[#allocation9 + $0x3a0] sm:$0xf0] }
 0x208   :  { %v377_v17 = vsel %vm369_vm10, %v5670_v52, %v355_v26  ;;  %v816_v52 = vsel %vm363_vm7, %v815_v15, %v5540_v41  ;;  %2839 = vmatpush.bf16.msra.mxu2 %v3733_v20  ;;  %v4725_v28 = vor.u32 %v5070_v42, %v4724_v32  ;;  %v4692_v15 = vld [vmem:[#allocation9 + $0x980] sm:$0xf]  ;;  %v4182_v49 = vld [vmem:[#allocation9 + $0x5a0] sm:$0xf0] }
 0x209   :  { %v5694_v51 = vmul.f32 %v5689_v54, %v377_v17  ;;  %v817_v53 = vsel %vm365_vm8, %v816_v52, %v803_v19  ;;  %v5062_v26 = vld [vmem:[#allocation9 + $0x99c] sm:$0xf0]  ;;  %v4866_v17 = vld [vmem:[#allocation9 + $0x384] sm:$0xf]  ;;  %v4185_v29 = vor.u32 %v4930_v43, %v4182_v49 }
 0x20a   :  { %v818_v41 = vsel %vm367_vm9, %v817_v53, %v5462_v33  ;;  %v704_v33 = vsel %vm359_vm5, %v703_v4, %v5643_v39  ;;  %v4245_v39 = vor.u32 %v4950_v22, %v4244_v61  ;;  %v4693_v38 = vor.u32 %v5062_v26, %v4692_v15  ;;  %v4794_v52 = vld [vmem:[#allocation9 + $0x144] sm:$0xf]  ;;  %v4532_v63 = vld [vmem:[#allocation9 + $0x840] sm:$0xf] }
 0x20b   :  { %v5715_v8 = vsel %vm369_vm10, %v818_v41, %v811_v25  ;;  %2826 = vmatpush.bf16.msra.mxu1 %v3477_v16  ;;  %2852 = vmatpush.bf16.msra.mxu3 %v3989_v21  ;;  %v3929_v13 = vor.u32 %v4866_v17, %v3926_v2  ;;  %v4661_v53 = vor.u32 %v5054_v7, %v4660_v6  ;;  %v4858_v25 = vld [vmem:[#allocation9 + $0x344] sm:$0xf]  ;;  %v5022_v17 = vld [vmem:[#allocation9 + $0x85c] sm:$0xf0] }
 0x20c   :  { %2865 = vmatpush.bf16.msrb.mxu0 %v4245_v39  ;;  %2884 = vmatpush.bf16.msrb.mxu2 %v3705_v34  ;;  %v4150_v41 = vld [vmem:[#allocation9 + $0x560] sm:$0xf0]  ;;  %v4564_v34 = vld [vmem:[#allocation9 + $0x880] sm:$0xf] }
 0x20d   :  { %v311_v59 = vpop.permute.xlu1 %310  ;;  %v3606_v4 = vld [vmem:[#allocation9 + $0x120] sm:$0xf0] }
 0x20e   :  { %v362_v23 = vsel %vm361_vm6, %v360_v37, %v311_v59  ;;  %v3894_v37 = vld [vmem:[#allocation9 + $0x360] sm:$0xf0]  ;;  %v3641_v59 = vor.u32 %v4794_v52, %v3638_v9 }
 0x20f   :  { %v701_v10 = vpop.permute.xlu2 %700  ;;  %v364_v62 = vsel %vm363_vm7, %v362_v23, %v5645_v46  ;;  %2871 = vmatpush.bf16.msrb.mxu1 %v4725_v28  ;;  %v3897_v23 = vor.u32 %v4858_v25, %v3894_v37  ;;  %v4118_v18 = vld [vmem:[#allocation9 + $0x520] sm:$0xf0] }
 0x210   :  { %v716_v1 = vsel %vm369_vm10, %v715_v45, %v701_v10  ;;  %2910 = vmatpush.bf16.msra.mxu0 %v4217_v11  ;;  %2885 = vmatpush.bf16.msrb.mxu2 %v3673_v3  ;;  %v4628_v45 = vld [vmem:[#allocation9 + $0x900] sm:$0xf]  ;;  %v4121_v20 = vor.u32 %v4914_v60, %v4118_v18  ;;  %v4778_v21 = vld [vmem:[#allocation9 + $0xc4] sm:$0xf] }
 0x211   :  { %v5719_v36 = vmul.f32 %v5715_v8, %v716_v1  ;;  %v4786_v1 = vld [vmem:[#allocation9 + $0x104] sm:$0xf] }
 0x212   :  { %v3574_v61 = vld [vmem:[#allocation9 + $0xe0] sm:$0xf0] }
 0x213   :  { %2872 = vmatpush.bf16.msrb.mxu1 %v4693_v38  ;;  %v4842_v22 = vld [vmem:[#allocation9 + $0x2c4] sm:$0xf]  ;;  %v3577_v27 = vor.u32 %v4778_v21, %v3574_v61 }
 0x214   :  { %2911 = vmatpush.bf16.msra.mxu0 %v4185_v29  ;;  %2886 = vmatpush.bf16.msrb.mxu2 %v3641_v59  ;;  %v3830_v32 = vld [vmem:[#allocation9 + $0x2e0] sm:$0xf0]  ;;  %v4500_v59 = vld [vmem:[#allocation9 + $0x800] sm:$0xf] }
 0x215   :  { %v657_v0 = vpop.permute.xlu1 %656  ;;  %v4906_v39 = vld [vmem:[#allocation9 + $0x4c4] sm:$0xf]  ;;  %v3833_v28 = vor.u32 %v4842_v22, %v3830_v32  ;;  %v3708_v32 = vld [vmem:[#allocation9 + $0x1c8] sm:$0xf] }
 0x216   :  { %v705_v46 = vsel %vm361_vm6, %v704_v33, %v657_v0  ;;  %v4850_v0 = vld [vmem:[#allocation9 + $0x304] sm:$0xf] }
 0x217   :  { %v5728_v19 = vsel %vm363_vm7, %v705_v46, %v5649_v48  ;;  %v3961_v48 = vor.u32 %v4874_v30, %v3958_v31  ;;  %2873 = vmatpush.bf16.msrb.mxu1 %v4661_v53  ;;  %v3609_v46 = vor.u32 %v4786_v1, %v3606_v4  ;;  %v3865_v16 = vor.u32 %v4850_v0, %v3862_v40  ;;  %v4086_v42 = vld [vmem:[#allocation9 + $0x4e0] sm:$0xf0]  ;;  %v5030_v30 = vld [vmem:[#allocation9 + $0x89c] sm:$0xf0] }
 0x218   :  { %v4770_v31 = vld [vmem:[#allocation9 + $0x84] sm:$0xf]  ;;  %v4089_v35 = vor.u32 %v4906_v39, %v4086_v42  ;;  %v4565_v26 = vor.u32 %v5030_v30, %v4564_v34  ;;  %v4533_v53 = vor.u32 %v5022_v17, %v4532_v63  ;;  %v4815_v39 = vld [vmem:[#allocation9 + $0x1e4] sm:$0xf0] }
 0x219   :  { %2897 = vmatpush.bf16.msrb.mxu3 %v3961_v48  ;;  %2887 = vmatpush.bf16.msrb.mxu2 %v3609_v46  ;;  %v3542_v48 = vld [vmem:[#allocation9 + $0xa0] sm:$0xf0]  ;;  %v4879_v42 = vld [vmem:[#allocation9 + $0x3e4] sm:$0xf0] }
 0x21a   :  { %v4834_v12 = vld [vmem:[#allocation9 + $0x284] sm:$0xf] }
 0x21b   :  { %v3798_v11 = vld [vmem:[#allocation9 + $0x2a0] sm:$0xf0] }
 0x21c   :  { %v4054_v15 = vld [vmem:[#allocation9 + $0x4a0] sm:$0xf0]  ;;  %v3801_v38 = vor.u32 %v4834_v12, %v3798_v11  ;;  %v3932_v12 = vld [vmem:[#allocation9 + $0x388] sm:$0xf] }
 0x21d   :  { %v319_v47 = vpop.permute.xlu1 %318  ;;  %2898 = vmatpush.bf16.msrb.mxu3 %v3929_v13  ;;  %2888 = vmatpush.bf16.msrb.mxu2 %v3577_v27  ;;  %v4762_v2 = vld [vmem:[#allocation9 + $0x44] sm:$0xf]  ;;  %v4871_v11 = vld [vmem:[#allocation9 + $0x3a4] sm:$0xf0] }
 0x21e   :  { %v366_v56 = vsel %vm365_vm8, %v364_v62, %v319_v47  ;;  %v5046_v62 = vld [vmem:[#allocation9 + $0x91c] sm:$0xf0]  ;;  %v4898_v47 = vld [vmem:[#allocation9 + $0x484] sm:$0xf] }
 0x21f   :  { %v5733_v5 = vsel %vm367_vm9, %v366_v56, %v5656_v58  ;;  %v4922_v58 = vld [vmem:[#allocation9 + $0x544] sm:$0xf]  ;;  %v4629_v33 = vor.u32 %v5046_v62, %v4628_v45  ;;  %v3545_v56 = vor.u32 %v4770_v31, %v3542_v48  ;;  %v4057_v13 = vor.u32 %v4898_v47, %v4054_v15  ;;  %v4807_v48 = vld [vmem:[#allocation9 + $0x1a4] sm:$0xf0] }
 0x220   :  { %v4153_v10 = vor.u32 %v4922_v58, %v4150_v41  ;;  %v3510_v43 = vld [vmem:[#allocation9 + $0x60] sm:$0xf0] }
 0x221   :  { %2899 = vmatpush.bf16.msrb.mxu3 %v3897_v23  ;;  %2874 = vmatpush.bf16.msrb.mxu1 %v4629_v33  ;;  %v4826_v49 = vld [vmem:[#allocation9 + $0x244] sm:$0xf]  ;;  %v3513_v25 = vor.u32 %v4762_v2, %v3510_v43  ;;  %v5014_v23 = vld [vmem:[#allocation9 + $0x81c] sm:$0xf0]  ;;  %v3933_v43 = vor.u32 %v4871_v11, %v3932_v12  ;;  %v3516_v11 = vld [vmem:[#allocation9 + $0x48] sm:$0xf] }
 0x222   :  { %2912 = vmatpush.bf16.msra.mxu0 %v4153_v10  ;;  %v3766_v29 = vld [vmem:[#allocation9 + $0x260] sm:$0xf0]  ;;  %2889 = vmatpush.bf16.msrb.mxu2 %v3545_v56  ;;  %v4501_v4 = vor.u32 %v5014_v23, %v4500_v59 }
 0x223   :  { %v4890_v7 = vld [vmem:[#allocation9 + $0x444] sm:$0xf]  ;;  %v3769_v37 = vor.u32 %v4826_v49, %v3766_v29 }
 0x224   :  { %v4022_v52 = vld [vmem:[#allocation9 + $0x460] sm:$0xf0] }
 0x225   :  { %v665_v44 = vpop.permute.xlu1 %664  ;;  %2900 = vmatpush.bf16.msrb.mxu3 %v3865_v16  ;;  %2875 = vmatpush.bf16.msrb.mxu1 %v4597_v24  ;;  %v4025_v41 = vor.u32 %v4890_v7, %v4022_v52  ;;  %v3478_v45 = vld [vmem:[#allocation9 + $0x20] sm:$0xf0]  ;;  %v4799_v7 = vld [vmem:[#allocation9 + $0x164] sm:$0xf0] }
 0x226   :  { %2913 = vmatpush.bf16.msra.mxu0 %v4121_v20  ;;  %v707_v58 = vsel %vm365_vm8, %v5728_v19, %v665_v44  ;;  %v3734_v10 = vld [vmem:[#allocation9 + $0x220] sm:$0xf0]  ;;  %2890 = vmatpush.bf16.msrb.mxu2 %v3513_v25  ;;  %v3900_v52 = vld [vmem:[#allocation9 + $0x348] sm:$0xf] }
 0x227   :  { %v4882_v62 = vld [vmem:[#allocation9 + $0x404] sm:$0xf] }
 0x228   :  { %v3990_v1 = vld [vmem:[#allocation9 + $0x420] sm:$0xf0] }
 0x229   :  { %2901 = vmatpush.bf16.msrb.mxu3 %v3833_v28  ;;  %2876 = vmatpush.bf16.msrb.mxu1 %v4565_v26  ;;  %v3993_v19 = vor.u32 %v4882_v62, %v3990_v1  ;;  %v5002_v21 = vld [vmem:[#allocation9 + $0x7c4] sm:$0xf]  ;;  %v3709_v26 = vor.u32 %v4815_v39, %v3708_v32  ;;  %v4855_v62 = vld [vmem:[#allocation9 + $0x324] sm:$0xf0] }
 0x22a   :  { %2914 = vmatpush.bf16.msra.mxu0 %v4089_v35  ;;  %v4470_v61 = vld [vmem:[#allocation9 + $0x7e0] sm:$0xf0]  ;;  %v3676_v35 = vld [vmem:[#allocation9 + $0x188] sm:$0xf] }
 0x22b   :  { %v4726_v22 = vld [vmem:[#allocation9 + $0x9e0] sm:$0xf0]  ;;  %v4473_v30 = vor.u32 %v5002_v21, %v4470_v61  ;;  %v3548_v39 = vld [vmem:[#allocation9 + $0x88] sm:$0xf] }
 0x22c   :  { %v4994_v24 = vld [vmem:[#allocation9 + $0x784] sm:$0xf] }
 0x22d   :  { %v327_v57 = vpop.permute.xlu1 %326  ;;  %2902 = vmatpush.bf16.msrb.mxu3 %v3801_v38  ;;  %2877 = vmatpush.bf16.msrb.mxu1 %v4533_v53  ;;  %v4438_v27 = vld [vmem:[#allocation9 + $0x7a0] sm:$0xf0]  ;;  %v4863_v53 = vld [vmem:[#allocation9 + $0x364] sm:$0xf0] }
 0x22e   :  { %v370_v3 = vsel %vm369_vm10, %v5733_v5, %v327_v57  ;;  %v4754_v5 = vld [vmem:[#allocation9 + $0x4] sm:$0xf]  ;;  %2915 = vmatpush.bf16.msra.mxu0 %v4057_v13  ;;  %v4441_v63 = vor.u32 %v4994_v24, %v4438_v27  ;;  %v3677_v13 = vor.u32 %v4807_v48, %v3676_v35  ;;  %v4839_v24 = vld [vmem:[#allocation9 + $0x2a4] sm:$0xf0] }
 0x22f   :  { %v481_v6 = vmul.f32 %v5689_v54, %v370_v3  ;;  %v4818_v54 = vld [vmem:[#allocation9 + $0x204] sm:$0xf]  ;;  %v3481_v0 = vor.u32 %v4754_v5, %v3478_v45  ;;  %v3901_v5 = vor.u32 %v4863_v53, %v3900_v52  ;;  %v3612_v45 = vld [vmem:[#allocation9 + $0x108] sm:$0xf] }
 0x230   :  { %v3737_v40 = vor.u32 %v4818_v54, %v3734_v10  ;;  %v5058_v28 = vld [vmem:[#allocation9 + $0x984] sm:$0xf]  ;;  %v4791_v54 = vld [vmem:[#allocation9 + $0x124] sm:$0xf0] }
 0x231   :  { %v823_v9 = vpack.c.bf16 %v5694_v51, %v481_v6  ;;  %v708_v51 = vsel %vm367_vm9, %v707_v58, %v5665_v55  ;;  %2903 = vmatpush.bf16.msrb.mxu3 %v3769_v37  ;;  %2878 = vmatpush.bf16.msrb.mxu1 %v4501_v4  ;;  %v4694_v34 = vld [vmem:[#allocation9 + $0x9a0] sm:$0xf0]  ;;  %v3644_v6 = vld [vmem:[#allocation9 + $0x148] sm:$0xf] }
 0x232   :  { %2916 = vmatpush.bf16.msra.mxu0 %v4025_v41  ;;  %2891 = vmatpush.bf16.msrb.mxu2 %v3481_v0  ;;  %v4697_v17 = vor.u32 %v5058_v28, %v4694_v34  ;;  %v4986_v2 = vld [vmem:[#allocation9 + $0x744] sm:$0xf]  ;;  %v3645_v23 = vor.u32 %v4799_v7, %v3644_v6  ;;  %v3868_v10 = vld [vmem:[#allocation9 + $0x308] sm:$0xf]  ;;  %v3613_v0 = vor.u32 %v4791_v54, %v3612_v45  ;;  %v4811_v54 = vld [vmem:[#allocation9 + $0x1cc] sm:$0xf] }
 0x233   :  { %v829_v46 = vrot.slane %v823_v9, 2  ;;  %v4406_v3 = vld [vmem:[#allocation9 + $0x760] sm:$0xf0]  ;;  %v3484_v7 = vld [vmem:[#allocation9 + $0x8] sm:$0xf] }
 0x234   :  { %v5050_v49 = vld [vmem:[#allocation9 + $0x944] sm:$0xf]  ;;  %v4759_v52 = vld [vmem:[#allocation9 + $0x24] sm:$0xf0] }
 0x235   :  { %v673_v33 = vpop.permute.xlu1 %672  ;;  %2904 = vmatpush.bf16.msrb.mxu3 %v3737_v40  ;;  %v836_v14 = vsel %vm833_vm3, %v823_v9, %v829_v46  ;;  %v4662_v29 = vld [vmem:[#allocation9 + $0x960] sm:$0xf0]  ;;  %v4409_v9 = vor.u32 %v4986_v2, %v4406_v3  ;;  %v3869_v40 = vor.u32 %v4855_v62, %v3868_v10  ;;  %v4783_v46 = vld [vmem:[#allocation9 + $0xe4] sm:$0xf0]  ;;  %v3710_v10 = vld [vmem:[#allocation9 + $0x1e8] sm:$0xf0]  ;;  %v3485_v62 = vor.u32 %v4759_v52, %v3484_v7 }
 0x236   :  { %v709_v60 = vsel %vm369_vm10, %v708_v51, %v673_v33  ;;  %2917 = vmatpush.bf16.msra.mxu0 %v3993_v19  ;;  %v4665_v25 = vor.u32 %v5050_v49, %v4662_v29  ;;  %v4978_v37 = vld [vmem:[#allocation9 + $0x704] sm:$0xf]  ;;  %v3740_v53 = vld [vmem:[#allocation9 + $0x208] sm:$0xf] }
 0x237   :  { %v820_v44 = vmul.f32 %v5715_v8, %v709_v60  ;;  %v5066_v8 = vld [vmem:[#allocation9 + $0x9c4] sm:$0xf]  ;;  %v5071_v45 = vld [vmem:[#allocation9 + $0x9e4] sm:$0xf0] }
 0x238   :  { %v4729_v31 = vor.u32 %v5066_v8, %v4726_v22  ;;  %v4374_v59 = vld [vmem:[#allocation9 + $0x720] sm:$0xf0]  ;;  %v4975_v7 = vld [vmem:[#allocation9 + $0x6e4] sm:$0xf0] }
 0x239   :  { %v824_v16 = vpack.c.bf16 %v5719_v36, %v820_v44  ;;  %v3964_v36 = vld [vmem:[#allocation9 + $0x3c8] sm:$0xf]  ;;  %v5042_v58 = vld [vmem:[#allocation9 + $0x904] sm:$0xf]  ;;  %v4377_v1 = vor.u32 %v4978_v37, %v4374_v59 }
 0x23a   :  { %v3965_v57 = vor.u32 %v4879_v42, %v3964_v36  ;;  %v4630_v41 = vld [vmem:[#allocation9 + $0x920] sm:$0xf0]  ;;  %v3580_v44 = vld [vmem:[#allocation9 + $0xc8] sm:$0xf] }
 0x23b   :  { %v830_v55 = vrot.slane %v824_v16, 4  ;;  %v831_v18 = vrot.slane %v824_v16, 6  ;;  %v4633_v4 = vor.u32 %v5042_v58, %v4630_v41  ;;  %v4970_v51 = vld [vmem:[#allocation9 + $0x6c4] sm:$0xf]  ;;  %v3836_v16 = vld [vmem:[#allocation9 + $0x2c8] sm:$0xf]  ;;  %v3581_v61 = vor.u32 %v4783_v46, %v3580_v44 }
 0x23c   :  { %v4342_v33 = vld [vmem:[#allocation9 + $0x6e0] sm:$0xf0]  ;;  %v4775_v36 = vld [vmem:[#allocation9 + $0xa4] sm:$0xf0] }
 0x23d   :  { %v840_v50 = vsel %vm837_vm11, %v830_v55, %v831_v18  ;;  %v5034_v60 = vld [vmem:[#allocation9 + $0x8c4] sm:$0xf]  ;;  %v4847_v55 = vld [vmem:[#allocation9 + $0x2e4] sm:$0xf0] }
 0x23e   :  { %v842_v20 = vsel %vm841_vm12, %v836_v14, %v840_v50  ;;  %v4598_v19 = vld [vmem:[#allocation9 + $0x8e0] sm:$0xf0]  ;;  %v5760_v18 = vld.sshfl [vmem:[#allocation1 + $0x20] sm:$0xff pattern:$0x73625140]  ;;  %v4345_v14 = vor.u32 %v4970_v51, %v4342_v33  ;;  %v3837_v8 = vor.u32 %v4847_v55, %v3836_v16 }
 0x23f   :  { %1205 = vst [vmem:[#allocation1] ss:$4 sm:$0xff] %v842_v20  ;;  %v4601_v50 = vor.u32 %v5034_v60, %v4598_v19  ;;  %v4962_v20 = vld [vmem:[#allocation9 + $0x684] sm:$0xf]  ;;  %v3804_v42 = vld [vmem:[#allocation9 + $0x288] sm:$0xf]  ;;  %v3713_v60 = vor.u32 %v4811_v54, %v3710_v10 }
 0x240   :  { %v4310_v21 = vld [vmem:[#allocation9 + $0x6a0] sm:$0xf0]  ;;  %v3805_v35 = vor.u32 %v4839_v24, %v3804_v42  ;;  %v4943_v37 = vld [vmem:[#allocation9 + $0x5e4] sm:$0xf0]  ;;  %v4803_v55 = vld [vmem:[#allocation9 + $0x18c] sm:$0xf] }
 0x241   :  { %v5026_v22 = vld [vmem:[#allocation9 + $0x884] sm:$0xf]  ;;  %v4313_v27 = vor.u32 %v4962_v20, %v4310_v21  ;;  %v4476_v59 = vld [vmem:[#allocation9 + $0x7c8] sm:$0xf]  ;;  %v4795_v24 = vld [vmem:[#allocation9 + $0x14c] sm:$0xf] }
 0x242   :  { %v4566_v32 = vld [vmem:[#allocation9 + $0x8a0] sm:$0xf0]  ;;  %v4188_v33 = vld [vmem:[#allocation9 + $0x588] sm:$0xf] }
 0x243   :  { %v4569_v28 = vor.u32 %v5026_v22, %v4566_v32  ;;  %v4954_v34 = vld [vmem:[#allocation9 + $0x644] sm:$0xf]  ;;  %v4444_v19 = vld [vmem:[#allocation9 + $0x788] sm:$0xf] }
 0x244   :  { %v5018_v48 = vld [vmem:[#allocation9 + $0x844] sm:$0xf]  ;;  %v4999_v44 = vld [vmem:[#allocation9 + $0x7a4] sm:$0xf0] }
 0x245   :  { %v4534_v12 = vld [vmem:[#allocation9 + $0x860] sm:$0xf0]  ;;  %v4700_v46 = vld [vmem:[#allocation9 + $0x988] sm:$0xf]  ;;  %v4445_v20 = vor.u32 %v4999_v44, %v4444_v19 }
 0x246   :  { %v5748_v47 = vld.sshfl [vmem:[#allocation1] sm:$0xff pattern:$0x73625140]  ;;  %v5750_v15 = vld.sshfl [vmem:[#allocation1 + $0x8] sm:$0xff pattern:$0x73625140]  ;;  %v4537_v3 = vor.u32 %v5018_v48, %v4534_v12 }
 0x247   :  { %2827 = vmatmul.bf16.vlgmr.msra.gmra.mxu1 %v5748_v47  ;;  %2840 = vmatmul.bf16.vlgmr.msra.gmra.mxu2 %v5750_v15  ;;  %v5754_v56 = vld.sshfl [vmem:[#allocation1 + $0x10] sm:$0xff pattern:$0x73625140]  ;;  %v5756_v38 = vld.sshfl [vmem:[#allocation1 + $0x18] sm:$0xff pattern:$0x73625140] }
 0x248   :  { %2853 = vmatmul.bf16.vlgmr.msra.gmra.mxu3 %v5754_v56  ;;  %2866 = vmatmul.bf16.vlgmr.msrb.gmra.mxu0 %v5756_v38  ;;  %v4502_v49 = vld [vmem:[#allocation9 + $0x820] sm:$0xf0]  ;;  %v5063_v16 = vld [vmem:[#allocation9 + $0x9a4] sm:$0xf0] }
 0x249   :  { %2923 = vmatpush.bf16.msra.mxu1 %v4473_v30  ;;  %2936 = vmatpush.bf16.msra.mxu2 %v4729_v31  ;;  %v4278_v30 = vld [vmem:[#allocation9 + $0x660] sm:$0xf0]  ;;  %v3549_v31 = vor.u32 %v4775_v36, %v3548_v39  ;;  %v4156_v21 = vld [vmem:[#allocation9 + $0x548] sm:$0xf] }
 0x24a   :  { %2949 = vmatpush.bf16.msra.mxu3 %v3709_v26  ;;  %2962 = vmatpush.bf16.msrb.mxu0 %v3965_v57  ;;  %v4767_v26 = vld [vmem:[#allocation9 + $0x64] sm:$0xf0]  ;;  %v4281_v2 = vor.u32 %v4954_v34, %v4278_v30 }
 0x24b   :  { %v3772_v57 = vld [vmem:[#allocation9 + $0x248] sm:$0xf]  ;;  %v3517_v29 = vor.u32 %v4767_v26, %v3516_v11 }
 0x24c   :  { %v4412_v32 = vld [vmem:[#allocation9 + $0x748] sm:$0xf] }
 0x24d   :  { %2924 = vmatpush.bf16.msra.mxu1 %v4441_v63  ;;  %2937 = vmatpush.bf16.msra.mxu2 %v4697_v17  ;;  %v4831_v63 = vld [vmem:[#allocation9 + $0x264] sm:$0xf0]  ;;  %v4946_v17 = vld [vmem:[#allocation9 + $0x604] sm:$0xf] }
 0x24e   :  { %2950 = vmatpush.bf16.msra.mxu3 %v3677_v13  ;;  %2963 = vmatpush.bf16.msrb.mxu0 %v3933_v43  ;;  %v4246_v13 = vld [vmem:[#allocation9 + $0x620] sm:$0xf0]  ;;  %v3773_v6 = vor.u32 %v4831_v63, %v3772_v57  ;;  %v4991_v39 = vld [vmem:[#allocation9 + $0x764] sm:$0xf0]  ;;  %v4787_v63 = vld [vmem:[#allocation9 + $0x10c] sm:$0xf] }
 0x24f   :  { %v5010_v43 = vld [vmem:[#allocation9 + $0x804] sm:$0xf]  ;;  %v4249_v58 = vor.u32 %v4946_v17, %v4246_v13  ;;  %v4668_v36 = vld [vmem:[#allocation9 + $0x948] sm:$0xf]  ;;  %v4413_v34 = vor.u32 %v4991_v39, %v4412_v32  ;;  %v3614_v17 = vld [vmem:[#allocation9 + $0x128] sm:$0xf0] }
 0x250   :  { %v4505_v41 = vor.u32 %v5010_v43, %v4502_v49  ;;  %v5055_v42 = vld [vmem:[#allocation9 + $0x964] sm:$0xf0] }
 0x251   :  { %2925 = vmatpush.bf16.msra.mxu1 %v4409_v9  ;;  %2938 = vmatpush.bf16.msra.mxu2 %v4665_v25  ;;  %v4823_v9 = vld [vmem:[#allocation9 + $0x224] sm:$0xf0] }
 0x252   :  { %2951 = vmatpush.bf16.msra.mxu3 %v3645_v23  ;;  %2964 = vmatpush.bf16.msrb.mxu0 %v3901_v5  ;;  %v4220_v25 = vld [vmem:[#allocation9 + $0x5c8] sm:$0xf] }
 0x253   :  { %v5007_v23 = vld [vmem:[#allocation9 + $0x7e4] sm:$0xf0] }
 0x254   :  { %v4732_v5 = vld [vmem:[#allocation9 + $0x9c8] sm:$0xf]  ;;  %v4477_v51 = vor.u32 %v5007_v23, %v4476_v59 }
 0x255   :  { %2926 = vmatpush.bf16.msra.mxu1 %v4377_v1  ;;  %2939 = vmatpush.bf16.msra.mxu2 %v4633_v4  ;;  %v3741_v1 = vor.u32 %v4823_v9, %v3740_v53  ;;  %v4221_v4 = vor.u32 %v4943_v37, %v4220_v25  ;;  %v4124_v30 = vld [vmem:[#allocation9 + $0x508] sm:$0xf]  ;;  %v4779_v9 = vld [vmem:[#allocation9 + $0xcc] sm:$0xf] }
 0x256   :  { %2952 = vmatpush.bf16.msra.mxu3 %v3613_v0  ;;  %2965 = vmatpush.bf16.msrb.mxu0 %v3869_v40  ;;  %v4935_v0 = vld [vmem:[#allocation9 + $0x5a4] sm:$0xf0]  ;;  %v4733_v40 = vor.u32 %v5071_v45, %v4732_v5  ;;  %v3582_v25 = vld [vmem:[#allocation9 + $0xe8] sm:$0xf0] }
 0x257   :  { %2879 = vmatmul.bf16.vlgmr.msrb.gmra.mxu1 %v5760_v18  ;;  %2892 = vmatmul.bf16.vlgmr.msrb.gmra.mxu2 %v5748_v47  ;;  %v4380_v12 = vld [vmem:[#allocation9 + $0x708] sm:$0xf] }
 0x258   :  { %2905 = vmatmul.bf16.vlgmr.msrb.gmra.mxu3 %v5750_v15  ;;  %2918 = vmatmul.bf16.vlgmr.msra.gmra.mxu0 %v5754_v56  ;;  %v4983_v11 = vld [vmem:[#allocation9 + $0x724] sm:$0xf0] }
 0x259   :  { %2927 = vmatpush.bf16.msra.mxu1 %v4345_v14  ;;  %2940 = vmatpush.bf16.msra.mxu2 %v4601_v50  ;;  %v3678_v14 = vld [vmem:[#allocation9 + $0x1a8] sm:$0xf0]  ;;  %v4189_v50 = vor.u32 %v4935_v0, %v4188_v33  ;;  %v4636_v26 = vld [vmem:[#allocation9 + $0x908] sm:$0xf] }
 0x25a   :  { %2953 = vmatpush.bf16.msra.mxu3 %v3581_v61  ;;  %2966 = vmatpush.bf16.msrb.mxu0 %v3837_v8  ;;  %v4927_v61 = vld [vmem:[#allocation9 + $0x564] sm:$0xf0]  ;;  %v4701_v8 = vor.u32 %v5063_v16, %v4700_v46  ;;  %v3681_v22 = vor.u32 %v4803_v55, %v3678_v14  ;;  %v4763_v14 = vld [vmem:[#allocation9 + $0x4c] sm:$0xf] }
 0x25b   :  { %v5047_v57 = vld [vmem:[#allocation9 + $0x924] sm:$0xf0] }
 0x25c   :  { %v4092_v13 = vld [vmem:[#allocation9 + $0x4c8] sm:$0xf]  ;;  %v4637_v49 = vor.u32 %v5047_v57, %v4636_v26  ;;  %v4478_v26 = vld [vmem:[#allocation9 + $0x7e8] sm:$0xf0] }
 0x25d   :  { %2928 = vmatpush.bf16.msra.mxu1 %v4313_v27  ;;  %2941 = vmatpush.bf16.msra.mxu2 %v4569_v28  ;;  %v3646_v27 = vld [vmem:[#allocation9 + $0x168] sm:$0xf0]  ;;  %v4157_v28 = vor.u32 %v4927_v61, %v4156_v21  ;;  %v4911_v43 = vld [vmem:[#allocation9 + $0x4e4] sm:$0xf0] }
 0x25e   :  { %2954 = vmatpush.bf16.msra.mxu3 %v3549_v31  ;;  %2967 = vmatpush.bf16.msrb.mxu0 %v3805_v35  ;;  %v4919_v31 = vld [vmem:[#allocation9 + $0x524] sm:$0xf0]  ;;  %v4669_v35 = vor.u32 %v5055_v42, %v4668_v36  ;;  %v3649_v48 = vor.u32 %v4795_v24, %v3646_v27  ;;  %v4093_v37 = vor.u32 %v4911_v43, %v4092_v13  ;;  %v4755_v27 = vld [vmem:[#allocation9 + $0xc] sm:$0xf] }
 0x25f   :  { %v4604_v52 = vld [vmem:[#allocation9 + $0x8c8] sm:$0xf]  ;;  %v5067_v57 = vld [vmem:[#allocation9 + $0x9cc] sm:$0xf] }
 0x260   :  { %v5039_v53 = vld [vmem:[#allocation9 + $0x8e4] sm:$0xf0]  ;;  %v4867_v43 = vld [vmem:[#allocation9 + $0x38c] sm:$0xf] }
 0x261   :  { %2929 = vmatpush.bf16.msra.mxu1 %v4281_v2  ;;  %2942 = vmatpush.bf16.msra.mxu2 %v4537_v3  ;;  %v4125_v2 = vor.u32 %v4919_v31, %v4124_v30  ;;  %v4381_v3 = vor.u32 %v4983_v11, %v4380_v12  ;;  %v4060_v23 = vld [vmem:[#allocation9 + $0x488] sm:$0xf]  ;;  %v3966_v30 = vld [vmem:[#allocation9 + $0x3e8] sm:$0xf0] }
 0x262   :  { %2955 = vmatpush.bf16.msra.mxu3 %v3517_v29  ;;  %2968 = vmatpush.bf16.msrb.mxu0 %v3773_v6  ;;  %v3617_v29 = vor.u32 %v4787_v63, %v3614_v17  ;;  %v4348_v6 = vld [vmem:[#allocation9 + $0x6c8] sm:$0xf]  ;;  %v4939_v31 = vld [vmem:[#allocation9 + $0x5cc] sm:$0xf] }
 0x263   :  { %v4349_v59 = vor.u32 %v4975_v7, %v4348_v6  ;;  %v4903_v5 = vld [vmem:[#allocation9 + $0x4a4] sm:$0xf0]  ;;  %v4734_v63 = vld [vmem:[#allocation9 + $0x9e8] sm:$0xf0] }
 0x264   :  { %v4316_v45 = vld [vmem:[#allocation9 + $0x688] sm:$0xf]  ;;  %v4737_v6 = vor.u32 %v5067_v57, %v4734_v63  ;;  %v4931_v7 = vld [vmem:[#allocation9 + $0x58c] sm:$0xf] }
 0x265   :  { %2930 = vmatpush.bf16.msra.mxu1 %v4249_v58  ;;  %2943 = vmatpush.bf16.msra.mxu2 %v4505_v41  ;;  %v4605_v58 = vor.u32 %v5039_v53, %v4604_v52  ;;  %v3585_v41 = vor.u32 %v4779_v9, %v3582_v25  ;;  %v4967_v54 = vld [vmem:[#allocation9 + $0x6a4] sm:$0xf0]  ;;  %v4190_v52 = vld [vmem:[#allocation9 + $0x5a8] sm:$0xf0] }
 0x266   :  { %2956 = vmatpush.bf16.msra.mxu3 %v3485_v62  ;;  %2969 = vmatpush.bf16.msrb.mxu0 %v3741_v1  ;;  %v4572_v10 = vld [vmem:[#allocation9 + $0x888] sm:$0xf]  ;;  %v4771_v1 = vld [vmem:[#allocation9 + $0x8c] sm:$0xf]  ;;  %v4317_v33 = vor.u32 %v4967_v54, %v4316_v45 }
 0x267   :  { %v5031_v62 = vld [vmem:[#allocation9 + $0x8a4] sm:$0xf0]  ;;  %v4995_v53 = vld [vmem:[#allocation9 + $0x78c] sm:$0xf] }
 0x268   :  { %2931 = vmatmul.bf16.vlgmr.msra.gmra.mxu1 %v5756_v38  ;;  %2944 = vmatmul.bf16.vlgmr.msra.gmra.mxu2 %v5760_v18  ;;  %v4028_v0 = vld [vmem:[#allocation9 + $0x448] sm:$0xf]  ;;  %v4446_v9 = vld [vmem:[#allocation9 + $0x7a8] sm:$0xf0] }
 0x269   :  { %2975 = vmatpush.bf16.msrb.mxu1 %v4221_v4  ;;  %2988 = vmatpush.bf16.msrb.mxu2 %v4477_v51  ;;  %v3550_v4 = vld [vmem:[#allocation9 + $0xa8] sm:$0xf0]  ;;  %v4061_v51 = vor.u32 %v4903_v5, %v4060_v23  ;;  %v4284_v44 = vld [vmem:[#allocation9 + $0x648] sm:$0xf]  ;;  %v4193_v23 = vor.u32 %v4931_v7, %v4190_v52 }
 0x26a   :  { %3001 = vmatpush.bf16.msrb.mxu3 %v4733_v40  ;;  %3014 = vmatpush.bf16.msra.mxu0 %v3713_v60  ;;  %v4895_v40 = vld [vmem:[#allocation9 + $0x464] sm:$0xf0]  ;;  %v4573_v60 = vor.u32 %v5031_v62, %v4572_v10  ;;  %v3553_v19 = vor.u32 %v4771_v1, %v3550_v4  ;;  %v5059_v25 = vld [vmem:[#allocation9 + $0x98c] sm:$0xf] }
 0x26b   :  { %2957 = vmatmul.bf16.vlgmr.msra.gmra.mxu3 %v5748_v47  ;;  %2970 = vmatmul.bf16.vlgmr.msrb.gmra.mxu0 %v5750_v15  ;;  %v4959_v46 = vld [vmem:[#allocation9 + $0x664] sm:$0xf0]  ;;  %v4029_v21 = vor.u32 %v4895_v40, %v4028_v0  ;;  %v4859_v5 = vld [vmem:[#allocation9 + $0x34c] sm:$0xf] }
 0x26c   :  { %v4540_v16 = vld [vmem:[#allocation9 + $0x848] sm:$0xf]  ;;  %v4285_v61 = vor.u32 %v4959_v46, %v4284_v44  ;;  %v4923_v54 = vld [vmem:[#allocation9 + $0x54c] sm:$0xf] }
 0x26d   :  { %2976 = vmatpush.bf16.msrb.mxu1 %v4189_v50  ;;  %2989 = vmatpush.bf16.msrb.mxu2 %v4445_v20  ;;  %v5023_v55 = vld [vmem:[#allocation9 + $0x864] sm:$0xf0]  ;;  %v3518_v50 = vld [vmem:[#allocation9 + $0x68] sm:$0xf0] }
 0x26e   :  { %3002 = vmatpush.bf16.msrb.mxu3 %v4701_v8  ;;  %3015 = vmatpush.bf16.msra.mxu0 %v3681_v22  ;;  %v3996_v20 = vld [vmem:[#allocation9 + $0x408] sm:$0xf]  ;;  %v4541_v39 = vor.u32 %v5023_v55, %v4540_v16  ;;  %v3521_v36 = vor.u32 %v4763_v14, %v3518_v50  ;;  %v4158_v10 = vld [vmem:[#allocation9 + $0x568] sm:$0xf0] }
 0x26f   :  { %v4887_v8 = vld [vmem:[#allocation9 + $0x424] sm:$0xf0]  ;;  %v4987_v62 = vld [vmem:[#allocation9 + $0x74c] sm:$0xf]  ;;  %v4161_v0 = vor.u32 %v4923_v54, %v4158_v10 }
 0x270   :  { %v4252_v22 = vld [vmem:[#allocation9 + $0x608] sm:$0xf]  ;;  %v3997_v12 = vor.u32 %v4887_v8, %v3996_v20  ;;  %v4414_v1 = vld [vmem:[#allocation9 + $0x768] sm:$0xf0] }
 0x271   :  { %2977 = vmatpush.bf16.msrb.mxu1 %v4157_v28  ;;  %2990 = vmatpush.bf16.msrb.mxu2 %v4413_v34  ;;  %v4951_v32 = vld [vmem:[#allocation9 + $0x624] sm:$0xf0]  ;;  %v3486_v28 = vld [vmem:[#allocation9 + $0x28] sm:$0xf0] }
 0x272   :  { %3003 = vmatpush.bf16.msrb.mxu3 %v4669_v35  ;;  %3016 = vmatpush.bf16.msra.mxu0 %v3649_v48  ;;  %v4508_v42 = vld [vmem:[#allocation9 + $0x808] sm:$0xf]  ;;  %v4875_v34 = vld [vmem:[#allocation9 + $0x3cc] sm:$0xf]  ;;  %v4253_v11 = vor.u32 %v4951_v32, %v4252_v22 }
 0x273   :  { %v5015_v24 = vld [vmem:[#allocation9 + $0x824] sm:$0xf0]  ;;  %v4222_v35 = vld [vmem:[#allocation9 + $0x5e8] sm:$0xf0] }
 0x274   :  { %v5003_v48 = vld [vmem:[#allocation9 + $0x7cc] sm:$0xf]  ;;  %v4509_v17 = vor.u32 %v5015_v24, %v4508_v42  ;;  %v4225_v13 = vor.u32 %v4939_v31, %v4222_v35 }
 0x275   :  { %2978 = vmatpush.bf16.msrb.mxu1 %v4125_v2  ;;  %2991 = vmatpush.bf16.msrb.mxu2 %v4381_v3  ;;  %v3489_v2 = vor.u32 %v4755_v27, %v3486_v28  ;;  %v3969_v3 = vor.u32 %v4875_v34, %v3966_v30  ;;  %v5051_v4 = vld [vmem:[#allocation9 + $0x94c] sm:$0xf] }
 0x276   :  { %3004 = vmatpush.bf16.msrb.mxu3 %v4637_v49  ;;  %3017 = vmatpush.bf16.msra.mxu0 %v3617_v29  ;;  %v3934_v49 = vld [vmem:[#allocation9 + $0x3a8] sm:$0xf0]  ;;  %v4481_v29 = vor.u32 %v5003_v48, %v4478_v26 }
 0x277   :  { %v4851_v40 = vld [vmem:[#allocation9 + $0x30c] sm:$0xf] }
 0x278   :  { %v4915_v46 = vld [vmem:[#allocation9 + $0x50c] sm:$0xf] }
 0x279   :  { %2979 = vmatpush.bf16.msrb.mxu1 %v4093_v37  ;;  %2992 = vmatpush.bf16.msrb.mxu2 %v4349_v59  ;;  %v4702_v37 = vld [vmem:[#allocation9 + $0x9a8] sm:$0xf0]  ;;  %v3937_v59 = vor.u32 %v4867_v43, %v3934_v49 }
 0x27a   :  { %3005 = vmatpush.bf16.msrb.mxu3 %v4605_v58  ;;  %3018 = vmatpush.bf16.msra.mxu0 %v3585_v41  ;;  %v3902_v58 = vld [vmem:[#allocation9 + $0x368] sm:$0xf0]  ;;  %v4449_v41 = vor.u32 %v4995_v53, %v4446_v9  ;;  %v4705_v45 = vor.u32 %v5059_v25, %v4702_v37 }
 0x27b   :  { %v4126_v16 = vld [vmem:[#allocation9 + $0x528] sm:$0xf0] }
 0x27c   :  { %v4979_v55 = vld [vmem:[#allocation9 + $0x70c] sm:$0xf] }
 0x27d   :  { %2980 = vmatpush.bf16.msrb.mxu1 %v4061_v51  ;;  %2993 = vmatpush.bf16.msrb.mxu2 %v4317_v33  ;;  %v4670_v51 = vld [vmem:[#allocation9 + $0x968] sm:$0xf0]  ;;  %v3905_v33 = vor.u32 %v4859_v5, %v3902_v58 }
 0x27e   :  { %3006 = vmatpush.bf16.msrb.mxu3 %v4573_v60  ;;  %3019 = vmatpush.bf16.msra.mxu0 %v3553_v19  ;;  %v3870_v60 = vld [vmem:[#allocation9 + $0x328] sm:$0xf0]  ;;  %v4417_v19 = vor.u32 %v4987_v62, %v4414_v1  ;;  %v4673_v44 = vor.u32 %v5051_v4, %v4670_v51 }
 0x27f   :  { %v4382_v14 = vld [vmem:[#allocation9 + $0x728] sm:$0xf0] }
 0x280   :  { %v5043_v50 = vld [vmem:[#allocation9 + $0x90c] sm:$0xf]  ;;  %v4385_v22 = vor.u32 %v4979_v55, %v4382_v14  ;;  %v4484_v55 = vld [vmem:[#allocation9 + $0x7d0] sm:$0xf] }
 0x281   :  { %2981 = vmatpush.bf16.msrb.mxu1 %v4029_v21  ;;  %2994 = vmatpush.bf16.msrb.mxu2 %v4285_v61  ;;  %v4638_v20 = vld [vmem:[#allocation9 + $0x928] sm:$0xf0]  ;;  %v3873_v21 = vor.u32 %v4851_v40, %v3870_v60  ;;  %v3972_v40 = vld [vmem:[#allocation9 + $0x3d0] sm:$0xf] }
 0x282   :  { %3007 = vmatpush.bf16.msrb.mxu3 %v4541_v39  ;;  %3020 = vmatpush.bf16.msra.mxu0 %v3521_v36  ;;  %v4843_v61 = vld [vmem:[#allocation9 + $0x2cc] sm:$0xf]  ;;  %v4641_v32 = vor.u32 %v5043_v50, %v4638_v20  ;;  %v4880_v60 = vld [vmem:[#allocation9 + $0x3ec] sm:$0xf0] }
 0x283   :  { %v3838_v8 = vld [vmem:[#allocation9 + $0x2e8] sm:$0xf0]  ;;  %v5008_v14 = vld [vmem:[#allocation9 + $0x7ec] sm:$0xf0] }
 0x284   :  { %v4907_v39 = vld [vmem:[#allocation9 + $0x4cc] sm:$0xf]  ;;  %v3841_v34 = vor.u32 %v4843_v61, %v3838_v8  ;;  %v3684_v61 = vld [vmem:[#allocation9 + $0x190] sm:$0xf] }
 0x285   :  { %2982 = vmatpush.bf16.msrb.mxu1 %v3997_v12  ;;  %2995 = vmatpush.bf16.msrb.mxu2 %v4253_v11  ;;  %v4094_v36 = vld [vmem:[#allocation9 + $0x4e8] sm:$0xf0]  ;;  %v4808_v8 = vld [vmem:[#allocation9 + $0x1ac] sm:$0xf0] }
 0x286   :  { %3008 = vmatpush.bf16.msrb.mxu3 %v4509_v17  ;;  %3021 = vmatpush.bf16.msra.mxu0 %v3489_v2  ;;  %v4971_v42 = vld [vmem:[#allocation9 + $0x6cc] sm:$0xf]  ;;  %v4097_v30 = vor.u32 %v4907_v39, %v4094_v36  ;;  %v3940_v39 = vld [vmem:[#allocation9 + $0x390] sm:$0xf] }
 0x287   :  { %v4350_v24 = vld [vmem:[#allocation9 + $0x6e8] sm:$0xf0]  ;;  %v4872_v36 = vld [vmem:[#allocation9 + $0x3ac] sm:$0xf0] }
 0x288   :  { %2983 = vmatmul.bf16.vlgmr.msrb.gmra.mxu1 %v5754_v56  ;;  %2996 = vmatmul.bf16.vlgmr.msrb.gmra.mxu2 %v5756_v38  ;;  %v5035_v27 = vld [vmem:[#allocation9 + $0x8cc] sm:$0xf]  ;;  %v4353_v48 = vor.u32 %v4971_v42, %v4350_v24  ;;  %v4196_v42 = vld [vmem:[#allocation9 + $0x590] sm:$0xf] }
 0x289   :  { %3027 = vmatpush.bf16.msra.mxu1 %v3969_v3  ;;  %3040 = vmatpush.bf16.msra.mxu2 %v4225_v13  ;;  %v4606_v28 = vld [vmem:[#allocation9 + $0x8e8] sm:$0xf0]  ;;  %v4936_v24 = vld [vmem:[#allocation9 + $0x5ac] sm:$0xf0] }
 0x28a   :  { %3053 = vmatpush.bf16.msra.mxu3 %v4481_v29  ;;  %3066 = vmatpush.bf16.msrb.mxu0 %v4737_v6  ;;  %v4835_v31 = vld [vmem:[#allocation9 + $0x28c] sm:$0xf]  ;;  %v4609_v12 = vor.u32 %v5035_v27, %v4606_v28  ;;  %v4452_v27 = vld [vmem:[#allocation9 + $0x790] sm:$0xf] }
 0x28b   :  { %3009 = vmatmul.bf16.vlgmr.msrb.gmra.mxu3 %v5760_v18  ;;  %3022 = vmatmul.bf16.vlgmr.msra.gmra.mxu0 %v5748_v47  ;;  %v4129_v47 = vor.u32 %v4915_v46, %v4126_v16  ;;  %v3806_v35 = vld [vmem:[#allocation9 + $0x2a8] sm:$0xf0]  ;;  %v4944_v16 = vld [vmem:[#allocation9 + $0x5ec] sm:$0xf0] }
 0x28c   :  { %v4899_v11 = vld [vmem:[#allocation9 + $0x48c] sm:$0xf]  ;;  %v3809_v3 = vor.u32 %v4835_v31, %v3806_v35  ;;  %v5000_v28 = vld [vmem:[#allocation9 + $0x7ac] sm:$0xf0] }
 0x28d   :  { %3028 = vmatpush.bf16.msra.mxu1 %v3937_v59  ;;  %3041 = vmatpush.bf16.msra.mxu2 %v4193_v23  ;;  %v4062_v26 = vld [vmem:[#allocation9 + $0x4a8] sm:$0xf0]  ;;  %v3652_v31 = vld [vmem:[#allocation9 + $0x150] sm:$0xf] }
 0x28e   :  { %3054 = vmatpush.bf16.msra.mxu3 %v4449_v41  ;;  %3067 = vmatpush.bf16.msrb.mxu0 %v4705_v45  ;;  %v4963_v57 = vld [vmem:[#allocation9 + $0x68c] sm:$0xf]  ;;  %v4065_v13 = vor.u32 %v4899_v11, %v4062_v26  ;;  %v4800_v35 = vld [vmem:[#allocation9 + $0x16c] sm:$0xf0] }
 0x28f   :  { %v4318_v63 = vld [vmem:[#allocation9 + $0x6a8] sm:$0xf0]  ;;  %v3908_v11 = vld [vmem:[#allocation9 + $0x350] sm:$0xf] }
 0x290   :  { %v5027_v17 = vld [vmem:[#allocation9 + $0x88c] sm:$0xf]  ;;  %v4321_v29 = vor.u32 %v4963_v57, %v4318_v63  ;;  %v4864_v26 = vld [vmem:[#allocation9 + $0x36c] sm:$0xf0] }
 0x291   :  { %3029 = vmatpush.bf16.msra.mxu1 %v3905_v33  ;;  %3042 = vmatpush.bf16.msra.mxu2 %v4161_v0  ;;  %v4574_v2 = vld [vmem:[#allocation9 + $0x8a8] sm:$0xf0]  ;;  %v3716_v33 = vld [vmem:[#allocation9 + $0x1d0] sm:$0xf] }
 0x292   :  { %3055 = vmatpush.bf16.msra.mxu3 %v4417_v19  ;;  %3068 = vmatpush.bf16.msrb.mxu0 %v4673_v44  ;;  %v4827_v43 = vld [vmem:[#allocation9 + $0x24c] sm:$0xf]  ;;  %v4577_v6 = vor.u32 %v5027_v17, %v4574_v2  ;;  %v4816_v0 = vld [vmem:[#allocation9 + $0x1ec] sm:$0xf0] }
 0x293   :  { %v3774_v49 = vld [vmem:[#allocation9 + $0x268] sm:$0xf0]  ;;  %v4228_v19 = vld [vmem:[#allocation9 + $0x5d0] sm:$0xf] }
 0x294   :  { %v4891_v7 = vld [vmem:[#allocation9 + $0x44c] sm:$0xf]  ;;  %v3777_v23 = vor.u32 %v4827_v43, %v3774_v49  ;;  %v4164_v57 = vld [vmem:[#allocation9 + $0x550] sm:$0xf] }
 0x295   :  { %3030 = vmatpush.bf16.msra.mxu1 %v3873_v21  ;;  %3043 = vmatpush.bf16.msra.mxu2 %v4129_v47  ;;  %v4030_v52 = vld [vmem:[#allocation9 + $0x468] sm:$0xf0]  ;;  %v3717_v21 = vor.u32 %v4816_v0, %v3716_v33  ;;  %v3973_v47 = vor.u32 %v4880_v60, %v3972_v40  ;;  %v4928_v63 = vld [vmem:[#allocation9 + $0x56c] sm:$0xf0] }
 0x296   :  { %3056 = vmatpush.bf16.msra.mxu3 %v4385_v22  ;;  %3069 = vmatpush.bf16.msrb.mxu0 %v4641_v32  ;;  %v4955_v53 = vld [vmem:[#allocation9 + $0x64c] sm:$0xf]  ;;  %v4033_v5 = vor.u32 %v4891_v7, %v4030_v52  ;;  %v4229_v22 = vor.u32 %v4944_v16, %v4228_v19  ;;  %v4485_v32 = vor.u32 %v5008_v14, %v4484_v55  ;;  %v4420_v17 = vld [vmem:[#allocation9 + $0x750] sm:$0xf] }
 0x297   :  { %v4286_v9 = vld [vmem:[#allocation9 + $0x668] sm:$0xf0]  ;;  %v4992_v2 = vld [vmem:[#allocation9 + $0x76c] sm:$0xf0] }
 0x298   :  { %v5019_v25 = vld [vmem:[#allocation9 + $0x84c] sm:$0xf]  ;;  %v4289_v54 = vor.u32 %v4955_v53, %v4286_v9  ;;  %v3620_v43 = vld [vmem:[#allocation9 + $0x110] sm:$0xf] }
 0x299   :  { %3031 = vmatpush.bf16.msra.mxu1 %v3841_v34  ;;  %3044 = vmatpush.bf16.msra.mxu2 %v4097_v30  ;;  %v4542_v37 = vld [vmem:[#allocation9 + $0x868] sm:$0xf0]  ;;  %v3685_v34 = vor.u32 %v4808_v8, %v3684_v61  ;;  %v3941_v30 = vor.u32 %v4872_v36, %v3940_v39  ;;  %v4792_v49 = vld [vmem:[#allocation9 + $0x12c] sm:$0xf0] }
 0x29a   :  { %3057 = vmatpush.bf16.msra.mxu3 %v4353_v48  ;;  %3070 = vmatpush.bf16.msrb.mxu0 %v4609_v12  ;;  %v4819_v59 = vld [vmem:[#allocation9 + $0x20c] sm:$0xf]  ;;  %v4545_v10 = vor.u32 %v5019_v25, %v4542_v37  ;;  %v4197_v48 = vor.u32 %v4936_v24, %v4196_v42  ;;  %v4453_v12 = vor.u32 %v5000_v28, %v4452_v27  ;;  %v4856_v7 = vld [vmem:[#allocation9 + $0x32c] sm:$0xf0] }
 0x29b   :  { %v3742_v58 = vld [vmem:[#allocation9 + $0x228] sm:$0xf0]  ;;  %v4920_v52 = vld [vmem:[#allocation9 + $0x52c] sm:$0xf0] }
 0x29c   :  { %v4883_v41 = vld [vmem:[#allocation9 + $0x40c] sm:$0xf]  ;;  %v3745_v44 = vor.u32 %v4819_v59, %v3742_v58  ;;  %v4388_v53 = vld [vmem:[#allocation9 + $0x710] sm:$0xf] }
 0x29d   :  { %3032 = vmatpush.bf16.msra.mxu1 %v3809_v3  ;;  %3045 = vmatpush.bf16.msra.mxu2 %v4065_v13  ;;  %v3998_v45 = vld [vmem:[#allocation9 + $0x428] sm:$0xf0]  ;;  %v3653_v3 = vor.u32 %v4800_v35, %v3652_v31  ;;  %v3909_v13 = vor.u32 %v4864_v26, %v3908_v11  ;;  %v4984_v9 = vld [vmem:[#allocation9 + $0x72c] sm:$0xf0] }
 0x29e   :  { %3058 = vmatpush.bf16.msra.mxu3 %v4321_v29  ;;  %3071 = vmatpush.bf16.msrb.mxu0 %v4577_v6  ;;  %v4947_v62 = vld [vmem:[#allocation9 + $0x60c] sm:$0xf]  ;;  %v4001_v46 = vor.u32 %v4883_v41, %v3998_v45  ;;  %v4165_v29 = vor.u32 %v4928_v63, %v4164_v57  ;;  %v4421_v6 = vor.u32 %v4992_v2, %v4420_v17  ;;  %v3588_v25 = vld [vmem:[#allocation9 + $0xd0] sm:$0xf]  ;;  %v4812_v17 = vld [vmem:[#allocation9 + $0x1d4] sm:$0xf] }
 0x29f   :  { %v4254_v1 = vld [vmem:[#allocation9 + $0x628] sm:$0xf0]  ;;  %v4784_v37 = vld [vmem:[#allocation9 + $0xec] sm:$0xf0]  ;;  %v3718_v2 = vld [vmem:[#allocation9 + $0x1f0] sm:$0xf0] }
 0x2a0   :  { %v5011_v4 = vld [vmem:[#allocation9 + $0x80c] sm:$0xf]  ;;  %v4257_v50 = vor.u32 %v4947_v62, %v4254_v1  ;;  %v4848_v58 = vld [vmem:[#allocation9 + $0x2ec] sm:$0xf0]  ;;  %v3589_v62 = vor.u32 %v4784_v37, %v3588_v25  ;;  %v4804_v25 = vld [vmem:[#allocation9 + $0x194] sm:$0xf] }
 0x2a1   :  { %v4510_v51 = vld [vmem:[#allocation9 + $0x828] sm:$0xf0]  ;;  %3033 = vmatpush.bf16.msra.mxu1 %v3777_v23  ;;  %3046 = vmatpush.bf16.msra.mxu2 %v4033_v5  ;;  %v4389_v23 = vor.u32 %v4984_v9, %v4388_v53  ;;  %v3844_v5 = vld [vmem:[#allocation9 + $0x2d0] sm:$0xf]  ;;  %v3686_v37 = vld [vmem:[#allocation9 + $0x1b0] sm:$0xf0] }
 0x2a2   :  { %3059 = vmatpush.bf16.msra.mxu3 %v4289_v54  ;;  %3072 = vmatpush.bf16.msrb.mxu0 %v4545_v10  ;;  %v4513_v20 = vor.u32 %v5011_v4, %v4510_v51  ;;  %v4100_v41 = vld [vmem:[#allocation9 + $0x4d0] sm:$0xf]  ;;  %v3845_v1 = vor.u32 %v4848_v58, %v3844_v5  ;;  %v4932_v5 = vld [vmem:[#allocation9 + $0x594] sm:$0xf] }
 0x2a3   :  { %v4912_v45 = vld [vmem:[#allocation9 + $0x4ec] sm:$0xf0]  ;;  %v4198_v58 = vld [vmem:[#allocation9 + $0x5b0] sm:$0xf0] }
 0x2a4   :  { %v4356_v54 = vld [vmem:[#allocation9 + $0x6d0] sm:$0xf]  ;;  %v4101_v33 = vor.u32 %v4912_v45, %v4100_v41  ;;  %v3689_v45 = vor.u32 %v4804_v25, %v3686_v37  ;;  %v5798_v25 = vld [vmem:[#allocation11] sm:$0xff] }
 0x2a5   :  { %3034 = vmatpush.bf16.msra.mxu1 %v3745_v44  ;;  %3047 = vmatpush.bf16.msra.mxu2 %v4001_v46  ;;  %v4976_v10 = vld [vmem:[#allocation9 + $0x6ec] sm:$0xf0] }
 0x2a6   :  { %3060 = vmatpush.bf16.msra.mxu3 %v4257_v50  ;;  %3073 = vmatpush.bf16.msrb.mxu0 %v4513_v20  ;;  %v3556_v4 = vld [vmem:[#allocation9 + $0x90] sm:$0xf]  ;;  %v4357_v0 = vor.u32 %v4976_v10, %v4356_v54 }
 0x2a7   :  { %v4776_v51 = vld [vmem:[#allocation9 + $0xac] sm:$0xf0] }
 0x2a8   :  { %3035 = vmatmul.bf16.vlgmr.msra.gmra.mxu1 %v5750_v15  ;;  %3048 = vmatmul.bf16.vlgmr.msra.gmra.mxu2 %v5754_v56  ;;  %v3876_v15 = vld [vmem:[#allocation9 + $0x310] sm:$0xf]  ;;  %v3557_v55 = vor.u32 %v4776_v51, %v3556_v4  ;;  %v4796_v4 = vld [vmem:[#allocation9 + $0x154] sm:$0xf] }
 0x2a9   :  { %3079 = vmatpush.bf16.msrb.mxu1 %v3717_v21  ;;  %3092 = vmatpush.bf16.msrb.mxu2 %v3973_v47  ;;  %v4132_v56 = vld [vmem:[#allocation9 + $0x510] sm:$0xf]  ;;  %v3654_v51 = vld [vmem:[#allocation9 + $0x170] sm:$0xf0] }
 0x2aa   :  { %3105 = vmatpush.bf16.msrb.mxu3 %v4229_v22  ;;  %3118 = vmatpush.bf16.msra.mxu0 %v4485_v32  ;;  %v4133_v59 = vor.u32 %v4920_v52, %v4132_v56  ;;  %v3812_v40 = vld [vmem:[#allocation9 + $0x290] sm:$0xf]  ;;  %v3721_v52 = vor.u32 %v4812_v17, %v3718_v2  ;;  %v4908_v17 = vld [vmem:[#allocation9 + $0x4d4] sm:$0xf] }
 0x2ab   :  { %3061 = vmatmul.bf16.vlgmr.msra.gmra.mxu3 %v5756_v38  ;;  %3074 = vmatmul.bf16.vlgmr.msrb.gmra.mxu0 %v5760_v18  ;;  %v3621_v38 = vor.u32 %v4792_v49, %v3620_v43  ;;  %v3877_v18 = vor.u32 %v4856_v7, %v3876_v15  ;;  %v4840_v60 = vld [vmem:[#allocation9 + $0x2ac] sm:$0xf0]  ;;  %v3974_v49 = vld [vmem:[#allocation9 + $0x3f0] sm:$0xf0] }
 0x2ac   :  { %v4068_v19 = vld [vmem:[#allocation9 + $0x490] sm:$0xf]  ;;  %v3813_v14 = vor.u32 %v4840_v60, %v3812_v40  ;;  %v5781_v40 = vld.sshfl [vmem:[#allocation1 + $0x8] sm:$0xff pattern:$0x73625140] }
 0x2ad   :  { %3080 = vmatpush.bf16.msrb.mxu1 %v3685_v34  ;;  %3093 = vmatpush.bf16.msrb.mxu2 %v3941_v30  ;;  %v4904_v44 = vld [vmem:[#allocation9 + $0x4ac] sm:$0xf0]  ;;  %v3910_v60 = vld [vmem:[#allocation9 + $0x370] sm:$0xf0] }
 0x2ae   :  { %3106 = vmatpush.bf16.msrb.mxu3 %v4197_v48  ;;  %3119 = vmatpush.bf16.msra.mxu0 %v4453_v12  ;;  %v4324_v46 = vld [vmem:[#allocation9 + $0x690] sm:$0xf]  ;;  %v4069_v21 = vor.u32 %v4904_v44, %v4068_v19  ;;  %v4924_v19 = vld [vmem:[#allocation9 + $0x554] sm:$0xf] }
 0x2af   :  { %v4968_v16 = vld [vmem:[#allocation9 + $0x6ac] sm:$0xf0]  ;;  %v4166_v44 = vld [vmem:[#allocation9 + $0x570] sm:$0xf0] }
 0x2b0   :  { %v3524_v50 = vld [vmem:[#allocation9 + $0x50] sm:$0xf]  ;;  %v4325_v47 = vor.u32 %v4968_v16, %v4324_v46  ;;  %v5784_v46 = vld.sshfl [vmem:[#allocation1 + $0x10] sm:$0xff pattern:$0x73625140] }
 0x2b1   :  { %3081 = vmatpush.bf16.msrb.mxu1 %v3653_v3  ;;  %3094 = vmatpush.bf16.msrb.mxu2 %v3909_v13  ;;  %v4768_v20 = vld [vmem:[#allocation9 + $0x6c] sm:$0xf0]  ;;  %v4876_v3 = vld [vmem:[#allocation9 + $0x3d4] sm:$0xf] }
 0x2b2   :  { %3107 = vmatpush.bf16.msrb.mxu3 %v4165_v29  ;;  %3120 = vmatpush.bf16.msra.mxu0 %v4421_v6  ;;  %v3780_v61 = vld [vmem:[#allocation9 + $0x250] sm:$0xf]  ;;  %v3525_v24 = vor.u32 %v4768_v20, %v3524_v50  ;;  %v4940_v29 = vld [vmem:[#allocation9 + $0x5d4] sm:$0xf]  ;;  %v3657_v50 = vor.u32 %v4796_v4, %v3654_v51 }
 0x2b3   :  { %v4832_v8 = vld [vmem:[#allocation9 + $0x26c] sm:$0xf0]  ;;  %v4230_v6 = vld [vmem:[#allocation9 + $0x5f0] sm:$0xf0] }
 0x2b4   :  { %v4036_v22 = vld [vmem:[#allocation9 + $0x450] sm:$0xf]  ;;  %v3781_v27 = vor.u32 %v4832_v8, %v3780_v61  ;;  %v4169_v8 = vor.u32 %v4924_v19, %v4166_v44  ;;  %v4102_v2 = vld [vmem:[#allocation9 + $0x4f0] sm:$0xf0] }
 0x2b5   :  { %3082 = vmatpush.bf16.msrb.mxu1 %v3621_v38  ;;  %3095 = vmatpush.bf16.msrb.mxu2 %v3877_v18  ;;  %v4896_v32 = vld [vmem:[#allocation9 + $0x46c] sm:$0xf0]  ;;  %v3977_v38 = vor.u32 %v4876_v3, %v3974_v49  ;;  %v4233_v18 = vor.u32 %v4940_v29, %v4230_v6  ;;  %v3782_v4 = vld [vmem:[#allocation9 + $0x270] sm:$0xf0] }
 0x2b6   :  { %3108 = vmatpush.bf16.msrb.mxu3 %v4133_v59  ;;  %3121 = vmatpush.bf16.msra.mxu0 %v4389_v23  ;;  %v4292_v39 = vld [vmem:[#allocation9 + $0x650] sm:$0xf]  ;;  %v4037_v31 = vor.u32 %v4896_v32, %v4036_v22  ;;  %v4868_v59 = vld [vmem:[#allocation9 + $0x394] sm:$0xf] }
 0x2b7   :  { %v4960_v36 = vld [vmem:[#allocation9 + $0x66c] sm:$0xf0]  ;;  %v3942_v23 = vld [vmem:[#allocation9 + $0x3b0] sm:$0xf0] }
 0x2b8   :  { %v3492_v42 = vld [vmem:[#allocation9 + $0x10] sm:$0xf]  ;;  %v4293_v35 = vor.u32 %v4960_v36, %v4292_v39  ;;  %v4788_v22 = vld [vmem:[#allocation9 + $0x114] sm:$0xf] }
 0x2b9   :  { %3083 = vmatpush.bf16.msrb.mxu1 %v3589_v62  ;;  %3096 = vmatpush.bf16.msrb.mxu2 %v3845_v1  ;;  %v4760_v28 = vld [vmem:[#allocation9 + $0x2c] sm:$0xf0]  ;;  %v3945_v62 = vor.u32 %v4868_v59, %v3942_v23  ;;  %v4201_v1 = vor.u32 %v4932_v5, %v4198_v58  ;;  %v3622_v32 = vld [vmem:[#allocation9 + $0x130] sm:$0xf0] }
 0x2ba   :  { %3109 = vmatpush.bf16.msrb.mxu3 %v4101_v33  ;;  %3122 = vmatpush.bf16.msra.mxu0 %v4357_v0  ;;  %v3748_v34 = vld [vmem:[#allocation9 + $0x210] sm:$0xf]  ;;  %v3493_v13 = vor.u32 %v4760_v28, %v3492_v42  ;;  %v4860_v33 = vld [vmem:[#allocation9 + $0x354] sm:$0xf]  ;;  %v3625_v28 = vor.u32 %v4788_v22, %v3622_v32 }
 0x2bb   :  { %v4824_v30 = vld [vmem:[#allocation9 + $0x22c] sm:$0xf0]  ;;  %v5778_v0 = vld.sshfl [vmem:[#allocation1] sm:$0xff pattern:$0x73625140]  ;;  %v3913_v61 = vor.u32 %v4860_v33, %v3910_v60  ;;  %v1180_v60 = vperm.slane %v5798_v25, 0 }
 0x2bc   :  { %v4004_v48 = vld [vmem:[#allocation9 + $0x410] sm:$0xf]  ;;  %v3749_v43 = vor.u32 %v4824_v30, %v3748_v34  ;;  %v4852_v39 = vld [vmem:[#allocation9 + $0x314] sm:$0xf] }
 0x2bd   :  { %3084 = vmatpush.bf16.msrb.mxu1 %v3557_v55  ;;  %3097 = vmatpush.bf16.msrb.mxu2 %v3813_v14  ;;  %v4888_v12 = vld [vmem:[#allocation9 + $0x42c] sm:$0xf0]  ;;  %v3878_v36 = vld [vmem:[#allocation9 + $0x330] sm:$0xf0] }
 0x2be   :  { %3110 = vmatpush.bf16.msrb.mxu3 %v4069_v21  ;;  %3123 = vmatpush.bf16.msra.mxu0 %v4325_v47  ;;  %v4260_v11 = vld [vmem:[#allocation9 + $0x610] sm:$0xf]  ;;  %v4005_v15 = vor.u32 %v4888_v12, %v4004_v48  ;;  %v4916_v42 = vld [vmem:[#allocation9 + $0x514] sm:$0xf] }
 0x2bf   :  { %v4952_v26 = vld [vmem:[#allocation9 + $0x62c] sm:$0xf0]  ;;  %v4780_v12 = vld [vmem:[#allocation9 + $0xd4] sm:$0xf] }
 0x2c0   :  { %v4740_v57 = vld [vmem:[#allocation9 + $0x9d0] sm:$0xf]  ;;  %v4261_v7 = vor.u32 %v4952_v26, %v4260_v11  ;;  %v3590_v11 = vld [vmem:[#allocation9 + $0xf0] sm:$0xf0] }
 0x2c1   :  { %v5072_v63 = vld [vmem:[#allocation9 + $0x9ec] sm:$0xf0]  ;;  %3085 = vmatpush.bf16.msrb.mxu1 %v3525_v24  ;;  %3098 = vmatpush.bf16.msrb.mxu2 %v3781_v27  ;;  %v4134_v24 = vld [vmem:[#allocation9 + $0x530] sm:$0xf0] }
 0x2c2   :  { %3111 = vmatpush.bf16.msrb.mxu3 %v4037_v31  ;;  %3124 = vmatpush.bf16.msra.mxu0 %v4293_v35  ;;  %v4741_v56 = vor.u32 %v5072_v63, %v4740_v57  ;;  %v4708_v53 = vld [vmem:[#allocation9 + $0x990] sm:$0xf]  ;;  %v3881_v31 = vor.u32 %v4852_v39, %v3878_v36  ;;  %v4137_v35 = vor.u32 %v4916_v42, %v4134_v24  ;;  %v4844_v26 = vld [vmem:[#allocation9 + $0x2d4] sm:$0xf] }
 0x2c3   :  { %v5064_v9 = vld [vmem:[#allocation9 + $0x9ac] sm:$0xf0]  ;;  %v3846_v63 = vld [vmem:[#allocation9 + $0x2f0] sm:$0xf0] }
 0x2c4   :  { %v4709_v41 = vor.u32 %v5064_v9, %v4708_v53  ;;  %v4676_v54 = vld [vmem:[#allocation9 + $0x950] sm:$0xf]  ;;  %v5790_v55 = vpop.f32.mrf.mxu1  ;;  %v4836_v53 = vld [vmem:[#allocation9 + $0x294] sm:$0xf] }
 0x2c5   :  { %3086 = vmatpush.bf16.msrb.mxu1 %v3493_v13  ;;  %3099 = vmatpush.bf16.msrb.mxu2 %v3749_v43  ;;  %v5056_v10 = vld [vmem:[#allocation9 + $0x96c] sm:$0xf0]  ;;  %v5792_v20 = vpop.f32.mrf.mxu0  ;;  %v3593_v43 = vor.u32 %v4780_v12, %v3590_v11  ;;  %v3814_v9 = vld [vmem:[#allocation9 + $0x2b0] sm:$0xf0] }
 0x2c6   :  { %3112 = vmatpush.bf16.msrb.mxu3 %v4005_v15  ;;  %3125 = vmatpush.bf16.msra.mxu0 %v4261_v7  ;;  %v5787_v16 = vld.sshfl [vmem:[#allocation1 + $0x18] sm:$0xff pattern:$0x73625140]  ;;  %v4677_v14 = vor.u32 %v5056_v10, %v4676_v54  ;;  %v3849_v15 = vor.u32 %v4844_v26, %v3846_v63  ;;  %v4105_v7 = vor.u32 %v4908_v17, %v4102_v2  ;;  %v4764_v54 = vld [vmem:[#allocation9 + $0x54] sm:$0xf]  ;;  %v1196_v2 = vperm.slane %v1180_v60, 0 }
 0x2c7   :  { %v4644_v21 = vld [vmem:[#allocation9 + $0x910] sm:$0xf]  ;;  %v3817_v58 = vor.u32 %v4836_v53, %v3814_v9  ;;  %v3526_v10 = vld [vmem:[#allocation9 + $0x70] sm:$0xf0]  ;;  %v4817_v26 = vld [vmem:[#allocation9 + $0x1f4] sm:$0xf0] }
 0x2c8   :  { %3087 = vmatmul.bf16.vlgmr.msrb.gmra.mxu1 %v5778_v0  ;;  %3100 = vmatmul.bf16.vlgmr.msrb.gmra.mxu2 %v5781_v40  ;;  %v5048_v47 = vld [vmem:[#allocation9 + $0x92c] sm:$0xf0]  ;;  %v4892_v51 = vld [vmem:[#allocation9 + $0x454] sm:$0xf]  ;;  %v3980_v63 = vld [vmem:[#allocation9 + $0x3d8] sm:$0xf] }
 0x2c9   :  { %3131 = vmatpush.bf16.msra.mxu1 %v4741_v56  ;;  %3144 = vmatpush.bf16.msra.mxu2 %v3721_v52  ;;  %v4645_v27 = vor.u32 %v5048_v47, %v4644_v21  ;;  %v4612_v34 = vld [vmem:[#allocation9 + $0x8d0] sm:$0xf]  ;;  %v4772_v56 = vld [vmem:[#allocation9 + $0x94] sm:$0xf]  ;;  %v3529_v21 = vor.u32 %v4764_v54, %v3526_v10  ;;  %v4881_v17 = vld [vmem:[#allocation9 + $0x3f4] sm:$0xf0] }
 0x2ca   :  { %3157 = vmatpush.bf16.msra.mxu3 %v3977_v38  ;;  %3170 = vmatpush.bf16.msrb.mxu0 %v4233_v18  ;;  %v5040_v30 = vld [vmem:[#allocation9 + $0x8ec] sm:$0xf0]  ;;  %v5794_v48 = vpop.f32.mrf.mxu2  ;;  %v3558_v52 = vld [vmem:[#allocation9 + $0xb0] sm:$0xf0]  ;;  %v3981_v53 = vor.u32 %v4881_v17, %v3980_v63  ;;  %v3660_v60 = vld [vmem:[#allocation9 + $0x158] sm:$0xf] }
 0x2cb   :  { %3113 = vmatmul.bf16.vlgmr.msrb.gmra.mxu3 %v5784_v46  ;;  %3126 = vmatmul.bf16.vlgmr.msra.gmra.mxu0 %v5787_v16  ;;  %v5796_v57 = vpop.f32.mrf.mxu3  ;;  %v4613_v13 = vor.u32 %v5040_v30, %v4612_v34  ;;  %v4580_v29 = vld [vmem:[#allocation9 + $0x890] sm:$0xf]  ;;  %v4900_v38 = vld [vmem:[#allocation9 + $0x494] sm:$0xf]  ;;  %v3561_v59 = vor.u32 %v4772_v56, %v3558_v52 }
 0x2cc   :  { %v2830_v3 = vpop.f32.mrf.mxu1  ;;  %v5032_v6 = vld [vmem:[#allocation9 + $0x8ac] sm:$0xf0]  ;;  %v4070_v18 = vld [vmem:[#allocation9 + $0x4b0] sm:$0xf0] }
 0x2cd   :  { %3132 = vmatpush.bf16.msra.mxu1 %v4709_v41  ;;  %3145 = vmatpush.bf16.msra.mxu2 %v3689_v45  ;;  %v2869_v49 = vpop.f32.mrf.mxu0  ;;  %v4581_v37 = vor.u32 %v5032_v6, %v4580_v29  ;;  %v4548_v23 = vld [vmem:[#allocation9 + $0x850] sm:$0xf]  ;;  %v4073_v41 = vor.u32 %v4900_v38, %v4070_v18  ;;  %v4038_v33 = vld [vmem:[#allocation9 + $0x470] sm:$0xf0] }
 0x2ce   :  { %3158 = vmatpush.bf16.msra.mxu3 %v3945_v62  ;;  %3171 = vmatpush.bf16.msrb.mxu0 %v4201_v1  ;;  %v5024_v5 = vld [vmem:[#allocation9 + $0x86c] sm:$0xf0]  ;;  %v4828_v62 = vld [vmem:[#allocation9 + $0x254] sm:$0xf]  ;;  %v4041_v39 = vor.u32 %v4892_v51, %v4038_v33 }
 0x2cf   :  { %v4516_v44 = vld [vmem:[#allocation9 + $0x810] sm:$0xf]  ;;  %v4820_v22 = vld [vmem:[#allocation9 + $0x214] sm:$0xf]  ;;  %v3785_v32 = vor.u32 %v4828_v62, %v3782_v4 }
 0x2d0   :  { %v3750_v36 = vld [vmem:[#allocation9 + $0x230] sm:$0xf0] }
 0x2d1   :  { %3133 = vmatpush.bf16.msra.mxu1 %v4677_v14  ;;  %3146 = vmatpush.bf16.msra.mxu2 %v3657_v50  ;;  %v5016_v14 = vld [vmem:[#allocation9 + $0x82c] sm:$0xf0]  ;;  %v4549_v50 = vor.u32 %v5024_v5, %v4548_v23  ;;  %v4884_v42 = vld [vmem:[#allocation9 + $0x414] sm:$0xf]  ;;  %v3753_v3 = vor.u32 %v4820_v22, %v3750_v36  ;;  %v4809_v23 = vld [vmem:[#allocation9 + $0x1b4] sm:$0xf0] }
 0x2d2   :  { %3159 = vmatpush.bf16.msra.mxu3 %v3913_v61  ;;  %3172 = vmatpush.bf16.msrb.mxu0 %v4169_v8  ;;  %v2843_v45 = vpop.f32.mrf.mxu2  ;;  %v4756_v61 = vld [vmem:[#allocation9 + $0x14] sm:$0xf]  ;;  %v4517_v12 = vor.u32 %v5016_v14, %v4516_v44  ;;  %v3948_v5 = vld [vmem:[#allocation9 + $0x398] sm:$0xf] }
 0x2d3   :  { %v2856_v1 = vpop.f32.mrf.mxu3  ;;  %v3494_v8 = vld [vmem:[#allocation9 + $0x30] sm:$0xf0] }
 0x2d4   :  { %v5801_v19 = vpop.f32.mrf.mxu1  ;;  %v4006_v24 = vld [vmem:[#allocation9 + $0x430] sm:$0xf0]  ;;  %v3497_v11 = vor.u32 %v4756_v61, %v3494_v8  ;;  %v4865_v61 = vld [vmem:[#allocation9 + $0x374] sm:$0xf0] }
 0x2d5   :  { %3134 = vmatpush.bf16.msra.mxu1 %v4645_v27  ;;  %3147 = vmatpush.bf16.msra.mxu2 %v3625_v28  ;;  %v5803_v47 = vpop.f32.mrf.mxu0  ;;  %v5004_v27 = vld [vmem:[#allocation9 + $0x7d4] sm:$0xf] }
 0x2d6   :  { %3160 = vmatpush.bf16.msra.mxu3 %v3881_v31  ;;  %3173 = vmatpush.bf16.msrb.mxu0 %v4137_v35  ;;  %v4486_v28 = vld [vmem:[#allocation9 + $0x7f0] sm:$0xf0]  ;;  %v3724_v31 = vld [vmem:[#allocation9 + $0x1d8] sm:$0xf]  ;;  %v1181_v35 = vperm.slane %v5798_v25, 2 }
 0x2d7   :  { %v5068_v34 = vld [vmem:[#allocation9 + $0x9d4] sm:$0xf]  ;;  %v4489_v49 = vor.u32 %v5004_v27, %v4486_v28  ;;  %v3725_v52 = vor.u32 %v4817_v26, %v3724_v31 }
 0x2d8   :  { %v4742_v30 = vld [vmem:[#allocation9 + $0x9f0] sm:$0xf0]  ;;  %v1197_v9 = vperm.slane %v1181_v35, 0  ;;  %v4793_v35 = vld [vmem:[#allocation9 + $0x134] sm:$0xf0] }
 0x2d9   :  { %3135 = vmatpush.bf16.msra.mxu1 %v4613_v13  ;;  %3148 = vmatpush.bf16.msra.mxu2 %v3593_v43  ;;  %v4009_v13 = vor.u32 %v4884_v42, %v4006_v24  ;;  %v4745_v29 = vor.u32 %v5068_v34, %v4742_v30  ;;  %v5060_v56 = vld [vmem:[#allocation9 + $0x994] sm:$0xf]  ;;  %v3628_v34 = vld [vmem:[#allocation9 + $0x118] sm:$0xf] }
 0x2da   :  { %3161 = vmatpush.bf16.msra.mxu3 %v3849_v15  ;;  %3174 = vmatpush.bf16.msrb.mxu0 %v4105_v7  ;;  %v2893_v43 = vpop.f32.mrf.mxu2  ;;  %v4996_v15 = vld [vmem:[#allocation9 + $0x794] sm:$0xf] }
 0x2db   :  { %v2906_v6 = vpop.f32.mrf.mxu3  ;;  %v4454_v7 = vld [vmem:[#allocation9 + $0x7b0] sm:$0xf0]  ;;  %v2894_v14 = vadd.f32 %v2893_v43, %v1197_v9  ;;  %v3352_v43 = vperm.slane %v5798_v25, 3  ;;  %v4849_v9 = vld [vmem:[#allocation9 + $0x2f4] sm:$0xf0] }
 0x2dc   :  { %v2882_v38 = vpop.f32.mrf.mxu1  ;;  %v4710_v18 = vld [vmem:[#allocation9 + $0x9b0] sm:$0xf0]  ;;  %v4457_v45 = vor.u32 %v4996_v15, %v4454_v7  ;;  %v3596_v15 = vld [vmem:[#allocation9 + $0xd8] sm:$0xf] }
 0x2dd   :  { %3136 = vmatpush.bf16.msra.mxu1 %v4581_v37  ;;  %3149 = vmatpush.bf16.msra.mxu2 %v3561_v59  ;;  %v3692_v37 = vld [vmem:[#allocation9 + $0x198] sm:$0xf]  ;;  %v2921_v59 = vpop.f32.mrf.mxu0  ;;  %v4713_v54 = vor.u32 %v5060_v56, %v4710_v18  ;;  %v4988_v10 = vld [vmem:[#allocation9 + $0x754] sm:$0xf]  ;;  %v2907_v31 = vadd.f32 %v2906_v6, %v2894_v14  ;;  %v3351_v38 = vperm.slane %v5798_v25, 1 }
 0x2de   :  { %3162 = vmatpush.bf16.msra.mxu3 %v3817_v58  ;;  %3175 = vmatpush.bf16.msrb.mxu0 %v4073_v41  ;;  %v4873_v58 = vld [vmem:[#allocation9 + $0x3b4] sm:$0xf0]  ;;  %v2829_v41 = vadd.f32 %v5790_v55, %v1196_v2  ;;  %v4422_v62 = vld [vmem:[#allocation9 + $0x770] sm:$0xf0]  ;;  %v3693_v1 = vor.u32 %v4809_v23, %v3692_v37 }
 0x2df   :  { %v3949_v4 = vor.u32 %v4873_v58, %v3948_v5  ;;  %v5052_v51 = vld [vmem:[#allocation9 + $0x954] sm:$0xf]  ;;  %v4801_v55 = vld [vmem:[#allocation9 + $0x174] sm:$0xf0]  ;;  %v4425_v22 = vor.u32 %v4988_v10, %v4422_v62  ;;  %v2920_v56 = vadd.f32 %v5803_v47, %v2907_v31  ;;  %v3368_v5 = vperm.slane %v3352_v43, 1 }
 0x2e0   :  { %v4678_v33 = vld [vmem:[#allocation9 + $0x970] sm:$0xf0]  ;;  %v2842_v44 = vadd.f32 %v5794_v48, %v2829_v41  ;;  %v3661_v42 = vor.u32 %v4801_v55, %v3660_v60  ;;  %v3564_v62 = vld [vmem:[#allocation9 + $0x98] sm:$0xf]  ;;  %v3367_v60 = vperm.slane %v3351_v38, 1 }
 0x2e1   :  { %3137 = vmatpush.bf16.msra.mxu1 %v4549_v50  ;;  %3150 = vmatpush.bf16.msra.mxu2 %v3529_v21  ;;  %v5808_v50 = vld.sshfl [vmem:[#allocation1 + $0x20] sm:$0xff pattern:$0x73625140] }
 0x2e2   :  { %3163 = vmatpush.bf16.msra.mxu3 %v3785_v32  ;;  %3176 = vmatpush.bf16.msrb.mxu0 %v4041_v39  ;;  %v3916_v21 = vld [vmem:[#allocation9 + $0x358] sm:$0xf]  ;;  %v2895_v8 = vpop.f32.mrf.mxu2  ;;  %v4681_v32 = vor.u32 %v5052_v51, %v4678_v33  ;;  %v4980_v39 = vld [vmem:[#allocation9 + $0x714] sm:$0xf]  ;;  %v2855_v30 = vadd.f32 %v5796_v57, %v2842_v44 }
 0x2e3   :  { %v2908_v48 = vpop.f32.mrf.mxu3  ;;  %v4390_v36 = vld [vmem:[#allocation9 + $0x730] sm:$0xf0]  ;;  %v3917_v24 = vor.u32 %v4865_v61, %v3916_v21  ;;  %v4777_v51 = vld [vmem:[#allocation9 + $0xb4] sm:$0xf0] }
 0x2e4   :  { %v5044_v27 = vld [vmem:[#allocation9 + $0x914] sm:$0xf]  ;;  %v4393_v17 = vor.u32 %v4980_v39, %v4390_v36  ;;  %v2868_v7 = vadd.f32 %v5792_v20, %v2855_v30  ;;  %v4841_v33 = vld [vmem:[#allocation9 + $0x2b4] sm:$0xf0]  ;;  %v3565_v48 = vor.u32 %v4777_v51, %v3564_v62 }
 0x2e5   :  { %3138 = vmatpush.bf16.msra.mxu1 %v4517_v12  ;;  %3151 = vmatpush.bf16.msra.mxu2 %v3497_v11  ;;  %v4646_v28 = vld [vmem:[#allocation9 + $0x930] sm:$0xf0]  ;;  %v3884_v12 = vld [vmem:[#allocation9 + $0x318] sm:$0xf]  ;;  %v2932_v26 = vpop.f32.mrf.mxu1 }
 0x2e6   :  { %3164 = vmatpush.bf16.msra.mxu3 %v3753_v3  ;;  %3177 = vmatpush.bf16.msrb.mxu0 %v4009_v13  ;;  %v4857_v11 = vld [vmem:[#allocation9 + $0x334] sm:$0xf0]  ;;  %v4649_v2 = vor.u32 %v5044_v27, %v4646_v28  ;;  %v4972_v3 = vld [vmem:[#allocation9 + $0x6d4] sm:$0xf]  ;;  %v2881_v37 = vadd.f32 %v5801_v19, %v2868_v7  ;;  %v2933_v59 = vadd.f32 %v2932_v26, %v2920_v56 }
 0x2e7   :  { %v4358_v13 = vld [vmem:[#allocation9 + $0x6f0] sm:$0xf0]  ;;  %v3820_v19 = vld [vmem:[#allocation9 + $0x298] sm:$0xf] }
 0x2e8   :  { %3139 = vmatmul.bf16.vlgmr.msra.gmra.mxu1 %v5808_v50  ;;  %3152 = vmatmul.bf16.vlgmr.msra.gmra.mxu2 %v5778_v0  ;;  %v5815_v63 = vpop.f32.mrf.mxu0  ;;  %v5036_v57 = vld [vmem:[#allocation9 + $0x8d4] sm:$0xf]  ;;  %v4361_v18 = vor.u32 %v4972_v3, %v4358_v13  ;;  %v3339_v14 = vmax.f32 %v2881_v37, 0.0  ;;  %v3821_v39 = vor.u32 %v4841_v33, %v3820_v19  ;;  %v4769_v28 = vld [vmem:[#allocation9 + $0x74] sm:$0xf0] }
 0x2e9   :  { %3183 = vmatpush.bf16.msrb.mxu1 %v4489_v49  ;;  %3196 = vmatpush.bf16.msrb.mxu2 %v4745_v29  ;;  %v3629_v49 = vor.u32 %v4793_v35, %v3628_v34  ;;  %v3885_v29 = vor.u32 %v4857_v11, %v3884_v12  ;;  %v4614_v6 = vld [vmem:[#allocation9 + $0x8f0] sm:$0xf0]  ;;  %v3788_v34 = vld [vmem:[#allocation9 + $0x258] sm:$0xf] }
 0x2ea   :  { %3209 = vmatpush.bf16.msrb.mxu3 %v3725_v52  ;;  %3222 = vmatpush.bf16.msra.mxu0 %v3981_v53  ;;  %v4785_v52 = vld [vmem:[#allocation9 + $0xf4] sm:$0xf0]  ;;  %v4617_v23 = vor.u32 %v5036_v57, %v4614_v6  ;;  %v4964_v58 = vld [vmem:[#allocation9 + $0x694] sm:$0xf]  ;;  %v3375_v11 = vmul.f32 %v3367_v60, %v3339_v14  ;;  %v3694_v14 = vld [vmem:[#allocation9 + $0x1b8] sm:$0xf0] }
 0x2eb   :  { %3165 = vmatmul.bf16.vlgmr.msra.gmra.mxu3 %v5781_v40  ;;  %3178 = vmatmul.bf16.vlgmr.msrb.gmra.mxu0 %v5784_v46  ;;  %v3852_v53 = vld [vmem:[#allocation9 + $0x2d8] sm:$0xf]  ;;  %v4326_v41 = vld [vmem:[#allocation9 + $0x6b0] sm:$0xf0]  ;;  %v3597_v20 = vor.u32 %v4785_v52, %v3596_v15  ;;  %v2945_v47 = vpop.f32.mrf.mxu2 }
 0x2ec   :  { %v4582_v10 = vld [vmem:[#allocation9 + $0x8b0] sm:$0xf0]  ;;  %v4329_v61 = vor.u32 %v4964_v58, %v4326_v41  ;;  %v4833_v30 = vld [vmem:[#allocation9 + $0x274] sm:$0xf0]  ;;  %v3726_v58 = vld [vmem:[#allocation9 + $0x1f8] sm:$0xf0] }
 0x2ed   :  { %3184 = vmatpush.bf16.msrb.mxu1 %v4457_v45  ;;  %3197 = vmatpush.bf16.msrb.mxu2 %v4713_v54  ;;  %v3853_v45 = vor.u32 %v4849_v9, %v3852_v53  ;;  %v5028_v54 = vld [vmem:[#allocation9 + $0x894] sm:$0xf]  ;;  %v2934_v44 = vpop.f32.mrf.mxu1  ;;  %v3500_v13 = vld [vmem:[#allocation9 + $0x18] sm:$0xf] }
 0x2ee   :  { %3210 = vmatpush.bf16.msrb.mxu3 %v3693_v1  ;;  %3223 = vmatpush.bf16.msra.mxu0 %v3949_v4  ;;  %v2946_v1 = vadd.f32 %v2945_v47, %v2933_v59  ;;  %v5822_v4 = vpop.f32.mrf.mxu3  ;;  %v4585_v8 = vor.u32 %v5028_v54, %v4582_v10  ;;  %v5020_v36 = vld [vmem:[#allocation9 + $0x854] sm:$0xf]  ;;  %v4761_v57 = vld [vmem:[#allocation9 + $0x34] sm:$0xf0]  ;;  %v4805_v44 = vld [vmem:[#allocation9 + $0x19c] sm:$0xf] }
 0x2ef   :  { %v4948_v31 = vld [vmem:[#allocation9 + $0x614] sm:$0xf]  ;;  %v3756_v6 = vld [vmem:[#allocation9 + $0x218] sm:$0xf]  ;;  %v3501_v41 = vor.u32 %v4761_v57, %v3500_v13  ;;  %v3630_v13 = vld [vmem:[#allocation9 + $0x138] sm:$0xf0] }
 0x2f0   :  { %v3340_v55 = vmax.f32 %v2946_v1, 0.0  ;;  %v2973_v21 = vpop.f32.mrf.mxu0  ;;  %v4262_v35 = vld [vmem:[#allocation9 + $0x630] sm:$0xf0]  ;;  %v4825_v15 = vld [vmem:[#allocation9 + $0x234] sm:$0xf0] }
 0x2f1   :  { %3185 = vmatpush.bf16.msrb.mxu1 %v4425_v22  ;;  %3198 = vmatpush.bf16.msrb.mxu2 %v4681_v32  ;;  %v4956_v22 = vld [vmem:[#allocation9 + $0x654] sm:$0xf]  ;;  %v4236_v52 = vld [vmem:[#allocation9 + $0x5d8] sm:$0xf]  ;;  %v4265_v37 = vor.u32 %v4948_v31, %v4262_v35 }
 0x2f2   :  { %3211 = vmatpush.bf16.msrb.mxu3 %v3661_v42  ;;  %3224 = vmatpush.bf16.msra.mxu0 %v3917_v24  ;;  %v4294_v32 = vld [vmem:[#allocation9 + $0x670] sm:$0xf0]  ;;  %v3532_v24 = vld [vmem:[#allocation9 + $0x58] sm:$0xf]  ;;  %v3376_v27 = vmul.f32 %v3368_v5, %v3340_v55  ;;  %v4813_v5 = vld [vmem:[#allocation9 + $0x1dc] sm:$0xf] }
 0x2f3   :  { %v4550_v42 = vld [vmem:[#allocation9 + $0x870] sm:$0xf0]  ;;  %v3533_v43 = vor.u32 %v4769_v28, %v3532_v24  ;;  %v4945_v53 = vld [vmem:[#allocation9 + $0x5f4] sm:$0xf0]  ;;  %v3729_v1 = vor.u32 %v4813_v5, %v3726_v58  ;;  %v4797_v24 = vld [vmem:[#allocation9 + $0x15c] sm:$0xf] }
 0x2f4   :  { %v5012_v12 = vld [vmem:[#allocation9 + $0x814] sm:$0xf]  ;;  %v3391_v26 = vrot.slane %v3376_v27, 4  ;;  %v4492_v9 = vld [vmem:[#allocation9 + $0x7d8] sm:$0xf] }
 0x2f5   :  { %3186 = vmatpush.bf16.msrb.mxu1 %v4393_v17  ;;  %3199 = vmatpush.bf16.msrb.mxu2 %v4649_v2  ;;  %v4297_v17 = vor.u32 %v4956_v22, %v4294_v32  ;;  %v4553_v2 = vor.u32 %v5020_v36, %v4550_v42  ;;  %v4518_v3 = vld [vmem:[#allocation9 + $0x830] sm:$0xf0]  ;;  %v5009_v38 = vld [vmem:[#allocation9 + $0x7f4] sm:$0xf0]  ;;  %v3697_v32 = vor.u32 %v4805_v44, %v3694_v14  ;;  %v3662_v27 = vld [vmem:[#allocation9 + $0x178] sm:$0xf0] }
 0x2f6   :  { %3212 = vmatpush.bf16.msrb.mxu3 %v3629_v49  ;;  %3225 = vmatpush.bf16.msra.mxu0 %v3885_v29  ;;  %v3789_v49 = vor.u32 %v4833_v30, %v3788_v34  ;;  %v2947_v29 = vpop.f32.mrf.mxu2  ;;  %v3396_v7 = vsel %vm841_vm12, %v3375_v11, %v3391_v26  ;;  %v2960_v56 = vpop.f32.mrf.mxu3  ;;  %v4521_v59 = vor.u32 %v5012_v12, %v4518_v3  ;;  %v4204_v54 = vld [vmem:[#allocation9 + $0x598] sm:$0xf]  ;;  %v4789_v3 = vld [vmem:[#allocation9 + $0x11c] sm:$0xf] }
 0x2f7   :  { %3423 = vst [vmem:[#allocation1] ss:$2 sm:$0xff] %v3396_v7  ;;  %v4493_v47 = vor.u32 %v5009_v38, %v4492_v9  ;;  %v4937_v10 = vld [vmem:[#allocation9 + $0x5b4] sm:$0xf0]  ;;  %v3665_v12 = vor.u32 %v4797_v24, %v3662_v27  ;;  %v3633_v56 = vor.u32 %v4789_v3, %v3630_v13  ;;  %v3502_v13 = vld [vmem:[#allocation9 + $0x38] sm:$0xf0] }
 0x2f8   :  { %v4460_v51 = vld [vmem:[#allocation9 + $0x798] sm:$0xf]  ;;  %v4205_v55 = vor.u32 %v4937_v10, %v4204_v54 }
 0x2f9   :  { %3187 = vmatpush.bf16.msrb.mxu1 %v4361_v18  ;;  %3200 = vmatpush.bf16.msrb.mxu2 %v4617_v23  ;;  %v4748_v18 = vld [vmem:[#allocation9 + $0x9d8] sm:$0xf] }
 0x2fa   :  { %3213 = vmatpush.bf16.msrb.mxu3 %v3597_v20  ;;  %3226 = vmatpush.bf16.msra.mxu0 %v3853_v45  ;;  %v5073_v23 = vld [vmem:[#allocation9 + $0x9f4] sm:$0xf0]  ;;  %v3757_v20 = vor.u32 %v4825_v15, %v3756_v6  ;;  %v4237_v45 = vor.u32 %v4945_v53, %v4236_v52 }
 0x2fb   :  { %v4749_v62 = vor.u32 %v5073_v23, %v4748_v18  ;;  %v5001_v19 = vld [vmem:[#allocation9 + $0x7b4] sm:$0xf0]  ;;  %v4781_v18 = vld [vmem:[#allocation9 + $0xdc] sm:$0xf] }
 0x2fc   :  { %v4716_v33 = vld [vmem:[#allocation9 + $0x998] sm:$0xf]  ;;  %v4461_v21 = vor.u32 %v5001_v19, %v4460_v51  ;;  %v4773_v51 = vld [vmem:[#allocation9 + $0x9c] sm:$0xf] }
 0x2fd   :  { %3188 = vmatpush.bf16.msrb.mxu1 %v4329_v61  ;;  %3201 = vmatpush.bf16.msrb.mxu2 %v4585_v8  ;;  %v5065_v60 = vld [vmem:[#allocation9 + $0x9b4] sm:$0xf0]  ;;  %v3566_v19 = vld [vmem:[#allocation9 + $0xb8] sm:$0xf0] }
 0x2fe   :  { %3214 = vmatpush.bf16.msrb.mxu3 %v3565_v48  ;;  %3227 = vmatpush.bf16.msra.mxu0 %v3821_v39  ;;  %v4172_v61 = vld [vmem:[#allocation9 + $0x558] sm:$0xf]  ;;  %v4717_v22 = vor.u32 %v5065_v60, %v4716_v33 }
 0x2ff   :  { %v4929_v8 = vld [vmem:[#allocation9 + $0x574] sm:$0xf0] }
 0x300   :  { %v4428_v48 = vld [vmem:[#allocation9 + $0x758] sm:$0xf]  ;;  %v4173_v28 = vor.u32 %v4929_v8, %v4172_v61  ;;  %v3569_v8 = vor.u32 %v4773_v51, %v3566_v19  ;;  %v4462_v51 = vld [vmem:[#allocation9 + $0x7b8] sm:$0xf0] }
 0x301   :  { %3189 = vmatpush.bf16.msrb.mxu1 %v4297_v17  ;;  %3202 = vmatpush.bf16.msrb.mxu2 %v4553_v2  ;;  %v4993_v39 = vld [vmem:[#allocation9 + $0x774] sm:$0xf0]  ;;  %v5061_v19 = vld [vmem:[#allocation9 + $0x99c] sm:$0xf] }
 0x302   :  { %3215 = vmatpush.bf16.msrb.mxu3 %v3533_v43  ;;  %3228 = vmatpush.bf16.msra.mxu0 %v3789_v49  ;;  %v4684_v36 = vld [vmem:[#allocation9 + $0x958] sm:$0xf]  ;;  %v4429_v34 = vor.u32 %v4993_v39, %v4428_v48 }
 0x303   :  { %v5057_v42 = vld [vmem:[#allocation9 + $0x974] sm:$0xf0] }
 0x304   :  { %v4140_v30 = vld [vmem:[#allocation9 + $0x518] sm:$0xf]  ;;  %v4685_v35 = vor.u32 %v5057_v42, %v4684_v36  ;;  %v4765_v36 = vld [vmem:[#allocation9 + $0x5c] sm:$0xf] }
 0x305   :  { %3190 = vmatpush.bf16.msrb.mxu1 %v4265_v37  ;;  %3203 = vmatpush.bf16.msrb.mxu2 %v4521_v59  ;;  %v4921_v31 = vld [vmem:[#allocation9 + $0x534] sm:$0xf0]  ;;  %v5829_v43 = vpop.f32.mrf.mxu1  ;;  %v3598_v37 = vld [vmem:[#allocation9 + $0xf8] sm:$0xf0] }
 0x306   :  { %3216 = vmatpush.bf16.msrb.mxu3 %v3501_v41  ;;  %3229 = vmatpush.bf16.msra.mxu0 %v3757_v20  ;;  %v4396_v11 = vld [vmem:[#allocation9 + $0x718] sm:$0xf]  ;;  %v4141_v29 = vor.u32 %v4921_v31, %v4140_v30  ;;  %v3601_v20 = vor.u32 %v4781_v18, %v3598_v37  ;;  %v3534_v42 = vld [vmem:[#allocation9 + $0x78] sm:$0xf0]  ;;  %v1182_v18 = vperm.slane %v5798_v25, 4 }
 0x307   :  { %v4985_v26 = vld [vmem:[#allocation9 + $0x734] sm:$0xf0] }
 0x308   :  { %3191 = vmatmul.bf16.vlgmr.msrb.gmra.mxu1 %v5787_v16  ;;  %3204 = vmatmul.bf16.vlgmr.msrb.gmra.mxu2 %v5808_v50  ;;  %v4652_v17 = vld [vmem:[#allocation9 + $0x918] sm:$0xf]  ;;  %v5831_v49 = vpop.f32.mrf.mxu0  ;;  %v4397_v57 = vor.u32 %v4985_v26, %v4396_v11 }
 0x309   :  { %3235 = vmatpush.bf16.msra.mxu1 %v4237_v45  ;;  %3248 = vmatpush.bf16.msra.mxu2 %v4493_v47  ;;  %v5049_v2 = vld [vmem:[#allocation9 + $0x934] sm:$0xf0] }
 0x30a   :  { %3261 = vmatpush.bf16.msra.mxu3 %v4749_v62  ;;  %3274 = vmatpush.bf16.msrb.mxu0 %v3729_v1  ;;  %v4108_v6 = vld [vmem:[#allocation9 + $0x4d8] sm:$0xf]  ;;  %v4653_v7 = vor.u32 %v5049_v2, %v4652_v17  ;;  %v4757_v2 = vld [vmem:[#allocation9 + $0x1c] sm:$0xf] }
 0x30b   :  { %3217 = vmatmul.bf16.vlgmr.msrb.gmra.mxu3 %v5778_v0  ;;  %3230 = vmatmul.bf16.vlgmr.msra.gmra.mxu0 %v5781_v40  ;;  %v4913_v15 = vld [vmem:[#allocation9 + $0x4f4] sm:$0xf0]  ;;  %v5833_v45 = vpop.f32.mrf.mxu2 }
 0x30c   :  { %v4364_v52 = vld [vmem:[#allocation9 + $0x6d8] sm:$0xf]  ;;  %v4109_v59 = vor.u32 %v4913_v15, %v4108_v6  ;;  %v4941_v6 = vld [vmem:[#allocation9 + $0x5dc] sm:$0xf] }
 0x30d   :  { %3236 = vmatpush.bf16.msra.mxu1 %v4205_v55  ;;  %3249 = vmatpush.bf16.msra.mxu2 %v4461_v21  ;;  %v4977_v53 = vld [vmem:[#allocation9 + $0x6f4] sm:$0xf0]  ;;  %v2986_v33 = vpop.f32.mrf.mxu1  ;;  %v4238_v15 = vld [vmem:[#allocation9 + $0x5f8] sm:$0xf0] }
 0x30e   :  { %3262 = vmatpush.bf16.msra.mxu3 %v4717_v22  ;;  %3275 = vmatpush.bf16.msrb.mxu0 %v3697_v32  ;;  %v4620_v9 = vld [vmem:[#allocation9 + $0x8d8] sm:$0xf]  ;;  %v4365_v23 = vor.u32 %v4977_v53, %v4364_v52  ;;  %v5835_v62 = vpop.f32.mrf.mxu3  ;;  %v4494_v53 = vld [vmem:[#allocation9 + $0x7f8] sm:$0xf0] }
 0x30f   :  { %v5041_v38 = vld [vmem:[#allocation9 + $0x8f4] sm:$0xf0]  ;;  %v4718_v33 = vld [vmem:[#allocation9 + $0x9b8] sm:$0xf0] }
 0x310   :  { %v4076_v5 = vld [vmem:[#allocation9 + $0x498] sm:$0xf]  ;;  %v4621_v41 = vor.u32 %v5041_v38, %v4620_v9  ;;  %v3025_v60 = vpop.f32.mrf.mxu0  ;;  %v5069_v9 = vld [vmem:[#allocation9 + $0x9dc] sm:$0xf] }
 0x311   :  { %3237 = vmatpush.bf16.msra.mxu1 %v4173_v28  ;;  %3250 = vmatpush.bf16.msra.mxu2 %v4429_v34  ;;  %v4905_v58 = vld [vmem:[#allocation9 + $0x4b4] sm:$0xf0]  ;;  %v4750_v38 = vld [vmem:[#allocation9 + $0x9f8] sm:$0xf0]  ;;  %v1198_v60 = vperm.slane %v1182_v18, 0 }
 0x312   :  { %3263 = vmatpush.bf16.msra.mxu3 %v4685_v35  ;;  %3276 = vmatpush.bf16.msrb.mxu0 %v3665_v12  ;;  %v4332_v47 = vld [vmem:[#allocation9 + $0x698] sm:$0xf]  ;;  %v4077_v44 = vor.u32 %v4905_v58, %v4076_v5  ;;  %v3537_v12 = vor.u32 %v4765_v36, %v3534_v42  ;;  %v4241_v5 = vor.u32 %v4941_v6, %v4238_v15  ;;  %v4869_v58 = vld [vmem:[#allocation9 + $0x39c] sm:$0xf] }
 0x313   :  { %v4969_v54 = vld [vmem:[#allocation9 + $0x6b4] sm:$0xf0]  ;;  %v2999_v11 = vpop.f32.mrf.mxu2  ;;  %v4430_v36 = vld [vmem:[#allocation9 + $0x778] sm:$0xf0] }
 0x314   :  { %v4588_v10 = vld [vmem:[#allocation9 + $0x898] sm:$0xf]  ;;  %v4333_v14 = vor.u32 %v4969_v54, %v4332_v47  ;;  %v4753_v47 = vor.u32 %v5069_v9, %v4750_v38  ;;  %v4933_v54 = vld [vmem:[#allocation9 + $0x59c] sm:$0xf] }
 0x315   :  { %3238 = vmatpush.bf16.msra.mxu1 %v4141_v29  ;;  %3251 = vmatpush.bf16.msra.mxu2 %v4397_v57  ;;  %v5033_v1 = vld [vmem:[#allocation9 + $0x8b4] sm:$0xf0]  ;;  %v4877_v29 = vld [vmem:[#allocation9 + $0x3dc] sm:$0xf] }
 0x316   :  { %3264 = vmatpush.bf16.msra.mxu3 %v4653_v7  ;;  %3277 = vmatpush.bf16.msrb.mxu0 %v3633_v56  ;;  %v4044_v55 = vld [vmem:[#allocation9 + $0x458] sm:$0xf]  ;;  %v4589_v61 = vor.u32 %v5033_v1, %v4588_v10  ;;  %v3012_v3 = vpop.f32.mrf.mxu3  ;;  %v3982_v57 = vld [vmem:[#allocation9 + $0x3f8] sm:$0xf0] }
 0x317   :  { %v4897_v21 = vld [vmem:[#allocation9 + $0x474] sm:$0xf0]  ;;  %v5005_v7 = vld [vmem:[#allocation9 + $0x7dc] sm:$0xf] }
 0x318   :  { %v4300_v22 = vld [vmem:[#allocation9 + $0x658] sm:$0xf]  ;;  %v4045_v27 = vor.u32 %v4897_v21, %v4044_v55  ;;  %v4206_v10 = vld [vmem:[#allocation9 + $0x5b8] sm:$0xf0] }
 0x319   :  { %3239 = vmatpush.bf16.msra.mxu1 %v4109_v59  ;;  %3252 = vmatpush.bf16.msra.mxu2 %v4365_v23  ;;  %v4961_v32 = vld [vmem:[#allocation9 + $0x674] sm:$0xf0]  ;;  %v3505_v59 = vor.u32 %v4757_v2, %v3502_v13  ;;  %v3985_v23 = vor.u32 %v4877_v29, %v3982_v57  ;;  %v4997_v1 = vld [vmem:[#allocation9 + $0x79c] sm:$0xf]  ;;  %v4209_v55 = vor.u32 %v4933_v54, %v4206_v10 }
 0x31a   :  { %3265 = vmatpush.bf16.msra.mxu3 %v4621_v41  ;;  %3278 = vmatpush.bf16.msrb.mxu0 %v3601_v20  ;;  %v4556_v48 = vld [vmem:[#allocation9 + $0x858] sm:$0xf]  ;;  %v4301_v28 = vor.u32 %v4961_v32, %v4300_v22  ;;  %v3950_v41 = vld [vmem:[#allocation9 + $0x3b8] sm:$0xf0]  ;;  %v4497_v20 = vor.u32 %v5005_v7, %v4494_v53  ;;  %v4721_v22 = vor.u32 %v5061_v19, %v4718_v33 }
 0x31b   :  { %v5025_v39 = vld [vmem:[#allocation9 + $0x874] sm:$0xf0]  ;;  %v4861_v21 = vld [vmem:[#allocation9 + $0x35c] sm:$0xf] }
 0x31c   :  { %v4012_v24 = vld [vmem:[#allocation9 + $0x418] sm:$0xf]  ;;  %v4557_v35 = vor.u32 %v5025_v39, %v4556_v48  ;;  %v4925_v32 = vld [vmem:[#allocation9 + $0x55c] sm:$0xf] }
 0x31d   :  { %3240 = vmatpush.bf16.msra.mxu1 %v4077_v44  ;;  %3253 = vmatpush.bf16.msra.mxu2 %v4333_v14  ;;  %v4889_v34 = vld [vmem:[#allocation9 + $0x434] sm:$0xf0]  ;;  %v1183_v44 = vperm.slane %v5798_v25, 6  ;;  %v3953_v14 = vor.u32 %v4869_v58, %v3950_v41  ;;  %v4174_v48 = vld [vmem:[#allocation9 + $0x578] sm:$0xf0] }
 0x31e   :  { %v4268_v30 = vld [vmem:[#allocation9 + $0x618] sm:$0xf]  ;;  %3266 = vmatpush.bf16.msra.mxu3 %v4589_v61  ;;  %3279 = vmatpush.bf16.msrb.mxu0 %v3569_v8  ;;  %v4013_v56 = vor.u32 %v4889_v34, %v4012_v24  ;;  %v3918_v61 = vld [vmem:[#allocation9 + $0x378] sm:$0xf0]  ;;  %v4465_v8 = vor.u32 %v4997_v1, %v4462_v51 }
 0x31f   :  { %v4953_v31 = vld [vmem:[#allocation9 + $0x634] sm:$0xf0]  ;;  %v4989_v39 = vld [vmem:[#allocation9 + $0x75c] sm:$0xf]  ;;  %v3921_v34 = vor.u32 %v4861_v21, %v3918_v61 }
 0x320   :  { %v4524_v26 = vld [vmem:[#allocation9 + $0x818] sm:$0xf]  ;;  %v4269_v52 = vor.u32 %v4953_v31, %v4268_v30  ;;  %v5053_v42 = vld [vmem:[#allocation9 + $0x95c] sm:$0xf]  ;;  %v4177_v30 = vor.u32 %v4925_v32, %v4174_v48 }
 0x321   :  { %v5017_v17 = vld [vmem:[#allocation9 + $0x834] sm:$0xf0]  ;;  %3241 = vmatpush.bf16.msra.mxu1 %v4045_v27  ;;  %3254 = vmatpush.bf16.msra.mxu2 %v4301_v28  ;;  %v4686_v24 = vld [vmem:[#allocation9 + $0x978] sm:$0xf0]  ;;  %v2959_v27 = vadd.f32 %v5822_v4, %v1198_v60  ;;  %v1199_v28 = vperm.slane %v1183_v44, 0 }
 0x322   :  { %3267 = vmatpush.bf16.msra.mxu3 %v4557_v35  ;;  %3280 = vmatpush.bf16.msrb.mxu0 %v3537_v12  ;;  %v4525_v37 = vor.u32 %v5017_v17, %v4524_v26  ;;  %v4853_v31 = vld [vmem:[#allocation9 + $0x31c] sm:$0xf]  ;;  %v4433_v12 = vor.u32 %v4989_v39, %v4430_v36  ;;  %v4689_v11 = vor.u32 %v5053_v42, %v4686_v24 }
 0x323   :  { %v3886_v35 = vld [vmem:[#allocation9 + $0x338] sm:$0xf0]  ;;  %v2972_v29 = vadd.f32 %v5815_v63, %v2959_v27 }
 0x324   :  { %v4917_v26 = vld [vmem:[#allocation9 + $0x51c] sm:$0xf]  ;;  %v3889_v6 = vor.u32 %v4853_v31, %v3886_v35 }
 0x325   :  { %3242 = vmatpush.bf16.msra.mxu1 %v4013_v56  ;;  %3255 = vmatpush.bf16.msra.mxu2 %v4269_v52  ;;  %v4142_v17 = vld [vmem:[#allocation9 + $0x538] sm:$0xf0]  ;;  %v2985_v52 = vadd.f32 %v5829_v43, %v2972_v29  ;;  %v3354_v43 = vperm.slane %v5798_v25, 7 }
 0x326   :  { %3268 = vmatpush.bf16.msra.mxu3 %v4525_v37  ;;  %3281 = vmatpush.bf16.msrb.mxu0 %v3505_v59  ;;  %v4981_v2 = vld [vmem:[#allocation9 + $0x71c] sm:$0xf]  ;;  %v4145_v15 = vor.u32 %v4917_v26, %v4142_v17  ;;  %v3024_v59 = vadd.f32 %v5831_v49, %v1199_v28 }
 0x327   :  { %v4398_v3 = vld [vmem:[#allocation9 + $0x738] sm:$0xf0]  ;;  %v2998_v58 = vadd.f32 %v5833_v45, %v2985_v52  ;;  %v3370_v48 = vperm.slane %v3354_v43, 1 }
 0x328   :  { %3243 = vmatmul.bf16.vlgmr.msra.gmra.mxu1 %v5784_v46  ;;  %3256 = vmatmul.bf16.vlgmr.msra.gmra.mxu2 %v5787_v16  ;;  %v5045_v4 = vld [vmem:[#allocation9 + $0x91c] sm:$0xf]  ;;  %v3075_v57 = vpop.f32.mrf.mxu0  ;;  %v4401_v53 = vor.u32 %v4981_v2, %v4398_v3 }
 0x329   :  { %3287 = vmatpush.bf16.msrb.mxu1 %v3985_v23  ;;  %3300 = vmatpush.bf16.msrb.mxu2 %v4241_v5  ;;  %v4654_v13 = vld [vmem:[#allocation9 + $0x938] sm:$0xf0]  ;;  %v3011_v61 = vadd.f32 %v5835_v62, %v2998_v58 }
 0x32a   :  { %3313 = vmatpush.bf16.msrb.mxu3 %v4497_v20  ;;  %3326 = vmatpush.bf16.msra.mxu0 %v4753_v47  ;;  %v4845_v7 = vld [vmem:[#allocation9 + $0x2dc] sm:$0xf]  ;;  %v4657_v9 = vor.u32 %v5045_v4, %v4654_v13 }
 0x32b   :  { %3269 = vmatmul.bf16.vlgmr.msra.gmra.mxu3 %v5808_v50  ;;  %3282 = vmatmul.bf16.vlgmr.msrb.gmra.mxu0 %v5778_v0  ;;  %v3036_v0 = vpop.f32.mrf.mxu1  ;;  %v3854_v56 = vld [vmem:[#allocation9 + $0x2f8] sm:$0xf0]  ;;  %v3049_v19 = vpop.f32.mrf.mxu2  ;;  %v3341_v17 = vmax.f32 %v3011_v61, 0.0 }
 0x32c   :  { %v4909_v38 = vld [vmem:[#allocation9 + $0x4dc] sm:$0xf]  ;;  %v3037_v41 = vadd.f32 %v3036_v0, %v3024_v59  ;;  %v3857_v20 = vor.u32 %v4845_v7, %v3854_v56 }
 0x32d   :  { %3288 = vmatpush.bf16.msrb.mxu1 %v3953_v14  ;;  %3301 = vmatpush.bf16.msrb.mxu2 %v4209_v55  ;;  %v4110_v18 = vld [vmem:[#allocation9 + $0x4f8] sm:$0xf0] }
 0x32e   :  { %3314 = vmatpush.bf16.msrb.mxu3 %v4465_v8  ;;  %3327 = vmatpush.bf16.msra.mxu0 %v4721_v22  ;;  %v4973_v37 = vld [vmem:[#allocation9 + $0x6dc] sm:$0xf]  ;;  %v4113_v47 = vor.u32 %v4909_v38, %v4110_v18  ;;  %v3050_v44 = vadd.f32 %v3049_v19, %v3037_v41  ;;  %v3062_v14 = vpop.f32.mrf.mxu3  ;;  %v3353_v8 = vperm.slane %v5798_v25, 5 }
 0x32f   :  { %v4366_v63 = vld [vmem:[#allocation9 + $0x6f8] sm:$0xf0] }
 0x330   :  { %v5037_v23 = vld [vmem:[#allocation9 + $0x8dc] sm:$0xf]  ;;  %v4369_v1 = vor.u32 %v4973_v37, %v4366_v63  ;;  %v3063_v32 = vadd.f32 %v3062_v14, %v3050_v44  ;;  %v3077_v39 = vpop.f32.mrf.mxu0  ;;  %v3369_v26 = vperm.slane %v3353_v8, 1 }
 0x331   :  { %3289 = vmatpush.bf16.msrb.mxu1 %v3921_v34  ;;  %3302 = vmatpush.bf16.msrb.mxu2 %v4177_v30  ;;  %v4622_v5 = vld [vmem:[#allocation9 + $0x8f8] sm:$0xf0] }
 0x332   :  { %3315 = vmatpush.bf16.msrb.mxu3 %v4433_v12  ;;  %3328 = vmatpush.bf16.msra.mxu0 %v4689_v11  ;;  %v4837_v54 = vld [vmem:[#allocation9 + $0x29c] sm:$0xf]  ;;  %v4625_v51 = vor.u32 %v5037_v23, %v4622_v5  ;;  %v3076_v62 = vadd.f32 %v3075_v57, %v3063_v32  ;;  %v3377_v37 = vmul.f32 %v3369_v26, %v3341_v17 }
 0x333   :  { %v3822_v10 = vld [vmem:[#allocation9 + $0x2b8] sm:$0xf0]  ;;  %v3038_v22 = vpop.f32.mrf.mxu1 }
 0x334   :  { %v4901_v49 = vld [vmem:[#allocation9 + $0x49c] sm:$0xf]  ;;  %v3825_v36 = vor.u32 %v4837_v54, %v3822_v10  ;;  %v3342_v2 = vmax.f32 %v3076_v62, 0.0 }
 0x335   :  { %3290 = vmatpush.bf16.msrb.mxu1 %v3889_v6  ;;  %3303 = vmatpush.bf16.msrb.mxu2 %v4145_v15  ;;  %v4078_v33 = vld [vmem:[#allocation9 + $0x4b8] sm:$0xf0]  ;;  %v3051_v15 = vpop.f32.mrf.mxu2 }
 0x336   :  { %3316 = vmatpush.bf16.msrb.mxu3 %v4401_v53  ;;  %3329 = vmatpush.bf16.msra.mxu0 %v4657_v9  ;;  %v4965_v60 = vld [vmem:[#allocation9 + $0x69c] sm:$0xf]  ;;  %v4081_v42 = vor.u32 %v4901_v49, %v4078_v33  ;;  %v3378_v52 = vmul.f32 %v3370_v48, %v3342_v2  ;;  %v3064_v53 = vpop.f32.mrf.mxu3 }
 0x337   :  { %v4334_v45 = vld [vmem:[#allocation9 + $0x6b8] sm:$0xf0] }
 0x338   :  { %v5029_v55 = vld [vmem:[#allocation9 + $0x89c] sm:$0xf]  ;;  %v4337_v28 = vor.u32 %v4965_v60, %v4334_v45  ;;  %v3392_v59 = vrot.slane %v3378_v52, 4  ;;  %v5856_v45 = vld [vmem:[#allocation11 + $0x8] sm:$0xff] }
 0x339   :  { %v4590_v21 = vld [vmem:[#allocation9 + $0x8b8] sm:$0xf0]  ;;  %3291 = vmatpush.bf16.msrb.mxu1 %v3857_v20  ;;  %3304 = vmatpush.bf16.msrb.mxu2 %v4113_v47 }
 0x33a   :  { %v4829_v24 = vld [vmem:[#allocation9 + $0x25c] sm:$0xf]  ;;  %3317 = vmatpush.bf16.msrb.mxu3 %v4369_v1  ;;  %3330 = vmatpush.bf16.msra.mxu0 %v4625_v51  ;;  %v4593_v34 = vor.u32 %v5029_v55, %v4590_v21  ;;  %v3397_v41 = vsel %vm841_vm12, %v3377_v37, %v3392_v59  ;;  %v1185_v55 = vperm.slane %v5856_v45, 2  ;;  %v1186_v37 = vperm.slane %v5856_v45, 4 }
 0x33b   :  { %v3790_v27 = vld [vmem:[#allocation9 + $0x278] sm:$0xf0]  ;;  %3425 = vst [vmem:[#allocation1 + $0x10] ss:$2 sm:$0xff] %v3397_v41 }
 0x33c   :  { %v4893_v30 = vld [vmem:[#allocation9 + $0x45c] sm:$0xf]  ;;  %v3793_v3 = vor.u32 %v4829_v24, %v3790_v27  ;;  %v1201_v61 = vperm.slane %v1185_v55, 0  ;;  %v1202_v59 = vperm.slane %v1186_v37, 0 }
 0x33d   :  { %v4046_v31 = vld [vmem:[#allocation9 + $0x478] sm:$0xf0]  ;;  %3292 = vmatpush.bf16.msrb.mxu1 %v3825_v36  ;;  %3305 = vmatpush.bf16.msrb.mxu2 %v4081_v42 }
 0x33e   :  { %v4957_v35 = vld [vmem:[#allocation9 + $0x65c] sm:$0xf]  ;;  %v4049_v4 = vor.u32 %v4893_v30, %v4046_v31  ;;  %3318 = vmatpush.bf16.msrb.mxu3 %v4337_v28  ;;  %3331 = vmatpush.bf16.msra.mxu0 %v4593_v34  ;;  %v3356_v28 = vperm.slane %v5856_v45, 3  ;;  %v3355_v30 = vperm.slane %v5856_v45, 1 }
 0x33f   :  { %v4302_v12 = vld [vmem:[#allocation9 + $0x678] sm:$0xf0] }
 0x340   :  { %v5021_v25 = vld [vmem:[#allocation9 + $0x85c] sm:$0xf]  ;;  %v4305_v0 = vor.u32 %v4957_v35, %v4302_v12  ;;  %v3372_v12 = vperm.slane %v3356_v28, 1  ;;  %v3371_v17 = vperm.slane %v3355_v30, 1 }
 0x341   :  { %v4558_v11 = vld [vmem:[#allocation9 + $0x878] sm:$0xf0]  ;;  %3293 = vmatpush.bf16.msrb.mxu1 %v3793_v3  ;;  %3306 = vmatpush.bf16.msrb.mxu2 %v4049_v4 }
 0x342   :  { %v4821_v13 = vld [vmem:[#allocation9 + $0x21c] sm:$0xf]  ;;  %v4561_v6 = vor.u32 %v5021_v25, %v4558_v11  ;;  %3319 = vmatpush.bf16.msrb.mxu3 %v4305_v0 }
 0x343   :  { %v3758_v29 = vld [vmem:[#allocation9 + $0x238] sm:$0xf0] }
 0x344   :  { %v4885_v7 = vld [vmem:[#allocation9 + $0x41c] sm:$0xf]  ;;  %v3761_v63 = vor.u32 %v4821_v13, %v3758_v29  ;;  %3332 = vmatpush.bf16.msra.mxu0 %v4561_v6 }
 0x345   :  { %v4014_v56 = vld [vmem:[#allocation9 + $0x438] sm:$0xf0]  ;;  %v3088_v20 = vpop.f32.mrf.mxu1 }
 0x346   :  { %v4949_v57 = vld [vmem:[#allocation9 + $0x61c] sm:$0xf]  ;;  %v4017_v23 = vor.u32 %v4885_v7, %v4014_v56  ;;  %3294 = vmatpush.bf16.msrb.mxu1 %v3761_v63  ;;  %v1187_v63 = vperm.slane %v5856_v45, 6 }
 0x347   :  { %v4270_v9 = vld [vmem:[#allocation9 + $0x638] sm:$0xf0] }
 0x348   :  { %v5013_v38 = vld [vmem:[#allocation9 + $0x81c] sm:$0xf]  ;;  %v4273_v5 = vor.u32 %v4949_v57, %v4270_v9  ;;  %3307 = vmatpush.bf16.msrb.mxu2 %v4017_v23  ;;  %v3127_v47 = vpop.f32.mrf.mxu0 }
 0x349   :  { %v4526_v18 = vld [vmem:[#allocation9 + $0x838] sm:$0xf0]  ;;  %3295 = vmatmul.bf16.vlgmr.msrb.gmra.mxu1 %v5781_v40 }
 0x34a   :  { %v4529_v58 = vor.u32 %v5013_v38, %v4526_v18  ;;  %3320 = vmatpush.bf16.msrb.mxu3 %v4273_v5  ;;  %v1203_v5 = vperm.slane %v1187_v63, 0 }
 0x34b   :  { %3308 = vmatmul.bf16.vlgmr.msrb.gmra.mxu2 %v5784_v46  ;;  %v3101_v43 = vpop.f32.mrf.mxu2 }
 0x34c   :  { %3333 = vmatpush.bf16.msra.mxu0 %v4529_v58 }
 0x34d   :  { %3321 = vmatmul.bf16.vlgmr.msrb.gmra.mxu3 %v5787_v16  ;;  %v3090_v10 = vpop.f32.mrf.mxu1  ;;  %v1184_v16 = vperm.slane %v5856_v45, 0 }
 0x34e   :  { %v3114_v54 = vpop.f32.mrf.mxu3 }
 0x34f   :  { %3334 = vmatmul.bf16.vlgmr.msra.gmra.mxu0 %v5808_v50  ;;  %v1200_v21 = vperm.slane %v1184_v16, 0  ;;  %v3431_v16 = vld.sshfl [vmem:[#allocation1 + $0x8] sm:$0xff pattern:$0x75316420] }
 0x350   :  { %v3129_v1 = vpop.f32.mrf.mxu0 }
 0x351   :  { %v3089_v8 = vadd.f32 %v3088_v20, %v1200_v21  ;;  %v3432_v21 = vld.sshfl [vmem:[#allocation1 + $0x10] sm:$0xff pattern:$0x75316420] }
 0x353   :  { %v3103_v51 = vpop.f32.mrf.mxu2  ;;  %v3102_v22 = vadd.f32 %v3101_v43, %v3089_v8  ;;  %v3447_v8 = vsel %vm841_vm12, %v3431_v16, 0.0 }
 0x355   :  { %v3115_v48 = vadd.f32 %v3114_v54, %v3102_v22 }
 0x356   :  { %v3116_v19 = vpop.f32.mrf.mxu3 }
 0x357   :  { %v3128_v24 = vadd.f32 %v3127_v47, %v3115_v48 }
 0x365   :  { %v3140_v49 = vpop.f32.mrf.mxu1 }
 0x366   :  { %v3141_v34 = vadd.f32 %v3140_v49, %v3128_v24  ;;  %v3358_v49 = vperm.slane %v5856_v45, 7 }
 0x368   :  { %v3179_v33 = vpop.f32.mrf.mxu0  ;;  %v3343_v26 = vmax.f32 %v3141_v34, 0.0  ;;  %v3374_v55 = vperm.slane %v3358_v49, 1 }
 0x36a   :  { %v3379_v13 = vmul.f32 %v3371_v17, %v3343_v26 }
 0x36b   :  { %v3153_v60 = vpop.f32.mrf.mxu2 }
 0x36c   :  { %v3154_v32 = vadd.f32 %v3153_v60, %v1201_v61  ;;  %v3430_v60 = vld.sshfl [vmem:[#allocation1] sm:$0xff pattern:$0x75316420] }
 0x36d   :  { %v3142_v14 = vpop.f32.mrf.mxu1  ;;  %v3446_v61 = vsel %vm841_vm12, %v3430_v60, 0.0 }
 0x36e   :  { %v3166_v44 = vpop.f32.mrf.mxu3  ;;  %v3357_v14 = vperm.slane %v5856_v45, 5  ;;  %v3433_v45 = vld.sshfl [vmem:[#allocation1 + $0x18] sm:$0xff pattern:$0x75316420] }
 0x36f   :  { %v3167_v39 = vadd.f32 %v3166_v44, %v3154_v32 }
 0x370   :  { %v3181_v40 = vpop.f32.mrf.mxu0  ;;  %v3373_v32 = vperm.slane %v3357_v14, 1 }
 0x371   :  { %v3180_v27 = vadd.f32 %v3179_v33, %v3167_v39 }
 0x373   :  { %v3155_v46 = vpop.f32.mrf.mxu2 }
 0x376   :  { %v3168_v50 = vpop.f32.mrf.mxu3 }
 0x385   :  { %v3192_v36 = vpop.f32.mrf.mxu1 }
 0x386   :  { %v3193_v31 = vadd.f32 %v3192_v36, %v3180_v27  ;;  %v3449_v36 = vsel %vm841_vm12, %v3432_v21, 0.0  ;;  %v3448_v27 = vadd.f32 %v3447_v8, %v3446_v61 }
 0x388   :  { %v3231_v42 = vpop.f32.mrf.mxu0 }
 0x38b   :  { %v3205_v35 = vpop.f32.mrf.mxu2 }
 0x38c   :  { %v3206_v62 = vadd.f32 %v3205_v35, %v3193_v31  ;;  %v3450_v31 = vadd.f32 %v3449_v36, %v3448_v27 }
 0x38d   :  { %v3194_v11 = vpop.f32.mrf.mxu1 }
 0x38e   :  { %v3218_v25 = vpop.f32.mrf.mxu3  ;;  %v3344_v2 = vmax.f32 %v3206_v62, 0.0  ;;  %v3451_v62 = vsel %vm841_vm12, %v3433_v45, 0.0 }
 0x38f   :  { %v3219_v23 = vadd.f32 %v3218_v25, %v1202_v59  ;;  %v3452_v25 = vadd.f32 %v3451_v62, %v3450_v31 }
 0x390   :  { %v3233_v3 = vpop.f32.mrf.mxu0  ;;  %v3380_v4 = vmul.f32 %v3372_v12, %v3344_v2 }
 0x391   :  { %v3232_v41 = vadd.f32 %v3231_v42, %v3219_v23 }
 0x392   :  { %v3393_v29 = vrot.slane %v3380_v4, 4 }
 0x393   :  { %v3207_v0 = vpop.f32.mrf.mxu2 }
 0x394   :  { %v3398_v6 = vsel %vm841_vm12, %v3379_v13, %v3393_v29 }
 0x395   :  { %3427 = vst [vmem:[#allocation1 + $0x20] ss:$2 sm:$0xff] %v3398_v6 }
 0x396   :  { %v3220_v15 = vpop.f32.mrf.mxu3 }
 0x39c   :  { %v3434_v30 = vld.sshfl [vmem:[#allocation1 + $0x20] sm:$0xff pattern:$0x75316420]  ;;  %v3435_v11 = vld.sshfl [vmem:[#allocation1 + $0x28] sm:$0xff pattern:$0x75316420] }
 0x39d   :  { %v3453_v12 = vsel %vm841_vm12, %v3434_v30, 0.0  ;;  %v3455_v17 = vsel %vm841_vm12, %v3435_v11, 0.0 }
 0x39e   :  { %v3454_v26 = vadd.f32 %v3453_v12, %v3452_v25 }
 0x3a0   :  { %v3456_v4 = vadd.f32 %v3455_v17, %v3454_v26 }
 0x3a5   :  { %v3244_v7 = vpop.f32.mrf.mxu1 }
 0x3a6   :  { %v3245_v47 = vadd.f32 %v3244_v7, %v3232_v41 }
 0x3a8   :  { %v3283_v56 = vpop.f32.mrf.mxu0 }
 0x3a9   :  { %v3284_v43 = vadd.f32 %v3283_v56, %v1203_v5 }
 0x3ab   :  { %v3257_v57 = vpop.f32.mrf.mxu2 }
 0x3ac   :  { %v3258_v54 = vadd.f32 %v3257_v57, %v3245_v47 }
 0x3ad   :  { %v3246_v53 = vpop.f32.mrf.mxu1 }
 0x3ae   :  { %v3270_v52 = vpop.f32.mrf.mxu3 }
 0x3af   :  { %v3271_v44 = vadd.f32 %v3270_v52, %v3258_v54 }
 0x3b0   :  { %v3285_v9 = vpop.f32.mrf.mxu0 }
 0x3b1   :  { %v3345_v22 = vmax.f32 %v3271_v44, 0.0 }
 0x3b3   :  { %v3259_v38 = vpop.f32.mrf.mxu2  ;;  %v3381_v28 = vmul.f32 %v3373_v32, %v3345_v22 }
 0x3b6   :  { %v3272_v18 = vpop.f32.mrf.mxu3 }
 0x3c6   :  { %v3296_v58 = vpop.f32.mrf.mxu1 }
 0x3c7   :  { %v3297_v10 = vadd.f32 %v3296_v58, %v3284_v43 }
 0x3cc   :  { %v3335_v20 = vpop.f32.mrf.mxu0 }
 0x3ce   :  { %v3309_v1 = vpop.f32.mrf.mxu2  ;;  %v3298_v33 = vpop.f32.mrf.mxu1 }
 0x3cf   :  { %v3310_v51 = vadd.f32 %v3309_v1, %v3297_v10 }
 0x3d0   :  { %v3322_v19 = vpop.f32.mrf.mxu3 }
 0x3d1   :  { %v3323_v40 = vadd.f32 %v3322_v19, %v3310_v51 }
 0x3d3   :  { %v3336_v50 = vadd.f32 %v3335_v20, %v3323_v40 }
 0x3d4   :  { %v3337_v46 = vpop.f32.mrf.mxu0 }
 0x3d5   :  { %v3346_v48 = vmax.f32 %v3336_v50, 0.0 }
 0x3d6   :  { %v3311_v39 = vpop.f32.mrf.mxu2 }
 0x3d7   :  { %v3382_v42 = vmul.f32 %v3374_v55, %v3346_v48 }
 0x3d8   :  { %v3324_v24 = vpop.f32.mrf.mxu3 }
 0x3d9   :  { %v3394_v34 = vrot.slane %v3382_v42, 4 }
 0x3db   :  { %v3399_v35 = vsel %vm841_vm12, %v3381_v28, %v3394_v34 }
 0x3dc   :  { %3429 = vst [vmem:[#allocation1 + $0x30] ss:$2 sm:$0xff] %v3399_v35 }
 0x3e3   :  { %v3436_v2 = vld.sshfl [vmem:[#allocation1 + $0x30] sm:$0xff pattern:$0x75316420]  ;;  %v3437_v3 = vld.sshfl [vmem:[#allocation1 + $0x38] sm:$0xff pattern:$0x75316420] }
 0x3e4   :  { %v3457_v13 = vsel %vm841_vm12, %v3436_v2, 0.0  ;;  %v3459_v0 = vsel %vm841_vm12, %v3437_v3, 0.0 }
 0x3e5   :  { %v3458_v29 = vadd.f32 %v3457_v13, %v3456_v4 }
 0x3e7   :  { %v3460_v6 = vadd.f32 %v3459_v0, %v3458_v29 }
 0x3e9   :  { %3461 = vadd.xlane.f32.xlu1 %v3460_v6 }
 0x45c   :  { %v3462_v15 = vpop.xlane.xlu1 %3461 }
 0x45d   :  { %3464 = vst.msk [vmem:[%s5884_s5] sm:$0xf] %vm3463_vm13, %v3462_v15 }
 0x45e   :  { %3469 = vsyncpa [#allocation5], 1 }
 0x45f   :  { %3470 = vsyncpa [#allocation7], 1 }
 0x460   :  { %3471 = vsyncpa [#allocation10], 1 }

</bundles_post_ra>
